<compile_context>
chip_gen: v5e
topology: v5e:2x2
jax: 0.10.0
libtpu: 0.0.40
codegen_flags: <defaults>
</compile_context>

<pallas_src>
import functools

import jax
import jax.numpy as jnp
from jax.experimental import pallas as pl
from jax.experimental.pallas import tpu as pltpu

_EPS = 1e-5
LANE = 128        # channel dims padded to multiples of the lane width
TM = 256          # matmul M tile
TK_MAX = 2048     # matmul K tile cap (bf16)
TM_CONV = 512     # conv3x3 rows-per-strip cap


def _round_up(n, m):
    return ((n + m - 1) // m) * m


# -------------------------- generation-aware config -------------------------

@functools.lru_cache(maxsize=None)
def _device_kind():
    try:
        return jax.devices()[0].device_kind.lower()
    except Exception:
        return ""


@functools.lru_cache(maxsize=None)
def _default_tn():
    kind = _device_kind()
    for old in ("v2", "v3", "v4", "v5"):
        if old in kind:
            return 128          # 128-wide MXU generations (e.g. v5e: 4x128x128)
    return 256                  # v6e / v7x: 2x256x256 MXU


@functools.lru_cache(maxsize=None)
def _vmem_limit_bytes():
    cap = None
    try:
        cap = getattr(pltpu.get_tpu_info(), "vmem_capacity_bytes", None)
    except Exception:
        cap = None
    if not cap:
        kind = _device_kind()
        cap = 64 * 1024 * 1024 if "v7" in kind else 128 * 1024 * 1024
    # Leave headroom for compiler-internal scratch / double buffers.
    return max(32 * 1024 * 1024, int(cap) * 3 // 4)


def _pick_tn(cout_p):
    tn = _default_tn()
    return tn if cout_p % tn == 0 else 128


def _pick_strip(oh, ow, cap):
    """Rows-per-grid-step strip for the conv3x3 kernels.

    Returns (th, rows, rows_p): th divides oh; rows = th*ow (<= cap when
    possible, preferring a multiple of 8); rows_p = rows rounded up to 8
    (per-strip output rows are padded when rows % 8 != 0 and stripped later).
    """
    divs = [t for t in range(1, oh + 1) if oh % t == 0]
    fits = [t for t in divs if t * ow <= cap] or [1]
    pref = [t for t in fits if (t * ow) % 8 == 0]
    th = max(pref) if pref else max(fits)
    rows = th * ow
    return th, rows, _round_up(rows, 8)


# ----------------------------- Pallas kernels ------------------------------

def _matmul_bias_kernel(p_ref, w_ref, bias_ref, out_ref, acc_ref, *, relu):
    # p: (TM, tk) bf16, w: (tk, tn) bf16, bias: (1, tn) f32, acc: (TM, tn) f32
    k = pl.program_id(2)

    @pl.when(k == 0)
    def _():
        acc_ref[...] = jnp.zeros_like(acc_ref)

    acc_ref[...] += jnp.dot(p_ref[...], w_ref[...],
                            preferred_element_type=jnp.float32)

    @pl.when(k == pl.num_programs(2) - 1)
    def _():
        y = acc_ref[...] + bias_ref[...]
        if relu:
            y = jnp.maximum(y, 0.0)
        out_ref[...] = y.astype(out_ref.dtype)


def _matmul_bias_skip_kernel(p_ref, w_ref, bias_ref, skip_ref, out_ref,
                             acc_ref, *, relu):
    # conv3 (no own ReLU) + residual add + final ReLU, fused.
    k = pl.program_id(2)

    @pl.when(k == 0)
    def _():
        acc_ref[...] = jnp.zeros_like(acc_ref)

    acc_ref[...] += jnp.dot(p_ref[...], w_ref[...],
                            preferred_element_type=jnp.float32)

    @pl.when(k == pl.num_programs(2) - 1)
    def _():
        y = acc_ref[...] + bias_ref[...] + skip_ref[...].astype(jnp.float32)
        if relu:
            y = jnp.maximum(y, 0.0)
        out_ref[...] = y.astype(out_ref.dtype)


def _conv3x3_s1_kernel(x_ref, w_ref, bias_ref, out_ref, *, th, ow, rows, relu):
    # Stride-1 3x3 conv, pad 1.  The padded image of one batch element is
    # VMEM-resident.  Per kernel row di we load ONE (th, W+2, cin_p) row slab,
    # slice the three dj windows from it in-register, concatenate along the
    # lane (channel) dim and issue a single dot with K = 3*cin_p.
    # x_ref:  (1, H+2, W+2, cin_p) bf16
    # w_ref:  (3, 3*cin_p, tn)     bf16 (BN scale folded; dj-major channel fold)
    # bias:   (1, tn) f32 ; out: (rows_p, tn)
    h0 = pl.program_id(2) * th
    cin_p = x_ref.shape[-1]
    acc = None
    for di in range(3):
        xrow = x_ref[0, pl.ds(h0 + di, th), :, :]            # (th, W+2, cin_p)
        op = jnp.concatenate([xrow[:, dj:dj + ow, :] for dj in range(3)],
                             axis=-1).reshape(rows, 3 * cin_p)
        d = jnp.dot(op, w_ref[di], preferred_element_type=jnp.float32)
        acc = d if acc is None else acc + d
    y = acc + bias_ref[...]
    if relu:
        y = jnp.maximum(y, 0.0)
    if rows == out_ref.shape[0]:
        out_ref[...] = y.astype(out_ref.dtype)
    else:
        out_ref[0:rows, :] = y.astype(out_ref.dtype)


def _conv3x3_s2_kernel(x_ref, w_ref, bias_ref, out_ref, *, th, ow, rows, relu):
    # Stride-2 3x3 conv, pad 1, on a parity-split (space-to-depth) padded
    # image: x_ref[0, 2*ph+pw, hq, wq, :] == xpad[2*hq+ph, 2*wq+pw, :].
    # Tap (di, dj) of output pixel (oh, owp) reads plane (di%2, dj%2) at
    # (oh + di//2, owp + dj//2) -> all window loads are contiguous.
    # x_ref:  (1, 4, Hh, Wh, cin_p) bf16
    # w_ref:  (3, 3*cin_p, tn) bf16 ; bias: (1, tn) f32 ; out: (rows_p, tn)
    oh0 = pl.program_id(2) * th
    cin_p = x_ref.shape[-1]
    acc = None
    for di in range(3):
        ph, hoff = di % 2, di // 2
        r0 = x_ref[0, 2 * ph + 0, pl.ds(oh0 + hoff, th), :, :]   # (th, Wh, cin_p)
        r1 = x_ref[0, 2 * ph + 1, pl.ds(oh0 + hoff, th), :, :]
        # dj = 0 -> (pw=0, off 0); dj = 1 -> (pw=1, off 0); dj = 2 -> (pw=0, off 1)
        op = jnp.concatenate(
            [r0[:, 0:ow, :], r1[:, 0:ow, :], r0[:, 1:1 + ow, :]],
            axis=-1).reshape(rows, 3 * cin_p)
        d = jnp.dot(op, w_ref[di], preferred_element_type=jnp.float32)
        acc = d if acc is None else acc + d
    y = acc + bias_ref[...]
    if relu:
        y = jnp.maximum(y, 0.0)
    if rows == out_ref.shape[0]:
        out_ref[...] = y.astype(out_ref.dtype)
    else:
        out_ref[0:rows, :] = y.astype(out_ref.dtype)


# ------------------------------ kernel wrappers -----------------------------

def _fused_matmul(p, w, bias, *, skip=None, relu=True, out_dtype=jnp.float32):
    """(M, K) @ (K, Cout_p) + bias [+ skip] [+ ReLU]; bf16 MXU, f32 VMEM acc."""
    M, K = p.shape
    Cp = w.shape[1]
    assert w.shape[0] == K and Cp % LANE == 0
    tn = _pick_tn(Cp)
    tk = K if K <= TK_MAX else TK_MAX
    Mp = _round_up(M, TM)
    Kp = _round_up(K, tk)

    pb = jnp.pad(p.astype(jnp.bfloat16), ((0, Mp - M), (0, Kp - K)))
    wb = jnp.pad(w.astype(jnp.bfloat16), ((0, Kp - K), (0, 0)))
    bias2 = bias.reshape(1, Cp).astype(jnp.float32)

    in_specs = [
        pl.BlockSpec((TM, tk), lambda i, j, k: (i, k)),
        pl.BlockSpec((tk, tn), lambda i, j, k: (k, j)),
        pl.BlockSpec((1, tn), lambda i, j, k: (0, j)),
    ]
    args = [pb, wb, bias2]
    if skip is not None:
        sk = jnp.pad(skip.astype(jnp.bfloat16), ((0, Mp - M), (0, 0)))
        in_specs.append(pl.BlockSpec((TM, tn), lambda i, j, k: (i, j)))
        args.append(sk)
        kernel = functools.partial(_matmul_bias_skip_kernel, relu=relu)
    else:
        kernel = functools.partial(_matmul_bias_kernel, relu=relu)

    out = pl.pallas_call(
        kernel,
        out_shape=jax.ShapeDtypeStruct((Mp, Cp), out_dtype),
        grid=(Mp // TM, Cp // tn, Kp // tk),
        in_specs=in_specs,
        out_specs=pl.BlockSpec((TM, tn), lambda i, j, k: (i, j)),
        scratch_shapes=[pltpu.VMEM((TM, tn), jnp.float32)],
        compiler_params=pltpu.CompilerParams(
            dimension_semantics=("parallel", "parallel", "arbitrary"),
            vmem_limit_bytes=_vmem_limit_bytes()),
        cost_estimate=pl.CostEstimate(
            flops=2 * Mp * Kp * Cp, transcendentals=0,
            bytes_accessed=2 * (Mp * Kp + Kp * Cp)
            + Mp * Cp * jnp.dtype(out_dtype).itemsize),
    )(*args)
    return out[:M]


def _fold_bn(p):
    scale = p["gamma"] / jnp.sqrt(p["var"] + _EPS)
    bias = (p["b"] - p["mean"]) * scale + p["beta"]
    return scale, bias


def _conv1x1(x2d, p, *, relu, skip2d=None, out_dtype=jnp.bfloat16):
    """1x1 conv + BN [+ ReLU] as a plain tiled matmul.
    If skip2d is given: conv + BN + skip-add [+ ReLU], fused."""
    cin_p = x2d.shape[1]
    cout, cin = p["w"].shape[0], p["w"].shape[1]
    cout_p = _round_up(cout, LANE)
    scale, bias = _fold_bn(p)
    wm = p["w"].reshape(cout, cin).T * scale[None, :]        # (cin, cout), BN folded
    wm = jnp.pad(wm, ((0, cin_p - cin), (0, cout_p - cout)))
    bias_p = jnp.pad(bias, (0, cout_p - cout))
    return _fused_matmul(x2d, wm, bias_p, skip=skip2d, relu=relu,
                         out_dtype=out_dtype)


def _conv3x3(x4d, p, *, stride, relu, out_dtype=jnp.bfloat16):
    """3x3 conv (pad 1) + BN [+ ReLU], stride 1 or 2, fully in-VMEM taps.
    Returns a lane-dense (N*OH*OW, cout_p) 2-D activation."""
    N, H, W, cin_p = x4d.shape
    cout, cin = p["w"].shape[0], p["w"].shape[1]
    cout_p = _round_up(cout, LANE)
    tn = _pick_tn(cout_p)
    scale, bias = _fold_bn(p)
    w_r = jnp.transpose(p["w"], (2, 3, 1, 0)) * scale        # (3,3,cin,cout)
    w_r = jnp.pad(w_r, ((0, 0), (0, 0), (0, cin_p - cin), (0, cout_p - cout)))
    w_fold = w_r.reshape(3, 3 * cin_p, cout_p).astype(jnp.bfloat16)  # dj-major
    bias_p = jnp.pad(bias, (0, cout_p - cout)).reshape(1, cout_p).astype(jnp.float32)

    OH = (H - 1) // stride + 1
    OW = (W - 1) // stride + 1
    th, rows, rows_p = _pick_strip(OH, OW, TM_CONV)
    nH = OH // th

    cparams = pltpu.CompilerParams(
        # Grid is (batch, cout tiles, row strips): the folded weight block only
        # depends on the cout-tile axis, so it stays VMEM-resident across the
        # whole strip sweep.  Batch leads so both v7x TensorCores get work.
        dimension_semantics=("parallel", "parallel", "parallel"),
        vmem_limit_bytes=_vmem_limit_bytes())
    cost = pl.CostEstimate(
        flops=2 * N * OH * OW * 9 * cin_p * cout_p, transcendentals=0,
        bytes_accessed=N * (H + 2) * (W + 2) * cin_p * 2 + int(w_fold.size) * 2
        + N * nH * rows_p * cout_p * jnp.dtype(out_dtype).itemsize)

    if stride == 1:
        xpad = jnp.pad(x4d, ((0, 0), (1, 1), (1, 1), (0, 0)))
        Hp, Wp = H + 2, W + 2
        out = pl.pallas_call(
            functools.partial(_conv3x3_s1_kernel, th=th, ow=OW, rows=rows,
                              relu=relu),
            out_shape=jax.ShapeDtypeStruct((N * nH * rows_p, cout_p), out_dtype),
            grid=(N, cout_p // tn, nH),
            in_specs=[
                pl.BlockSpec((1, Hp, Wp, cin_p), lambda n, j, i: (n, 0, 0, 0)),
                pl.BlockSpec((3, 3 * cin_p, tn), lambda n, j, i: (0, 0, j)),
                pl.BlockSpec((1, tn), lambda n, j, i: (0, j)),
            ],
            out_specs=pl.BlockSpec((rows_p, tn), lambda n, j, i: (n * nH + i, j)),
            compiler_params=cparams,
            cost_estimate=cost,
        )(xpad, w_fold, bias_p)
    else:  # stride == 2: parity-split (space-to-depth) padded image, no im2col
        Hp = _round_up(H + 2, 2)
        Wp = _round_up(W + 2, 2)
        xpad = jnp.pad(x4d, ((0, 0), (1, Hp - H - 1), (1, Wp - W - 1), (0, 0)))
        Hh, Wh = Hp // 2, Wp // 2
        xsp = xpad.reshape(N, Hh, 2, Wh, 2, cin_p).transpose(0, 2, 4, 1, 3, 5)
        xsp = xsp.reshape(N, 4, Hh, Wh, cin_p)
        out = pl.pallas_call(
            functools.partial(_conv3x3_s2_kernel, th=th, ow=OW, rows=rows,
                              relu=relu),
            out_shape=jax.ShapeDtypeStruct((N * nH * rows_p, cout_p), out_dtype),
            grid=(N, cout_p // tn, nH),
            in_specs=[
                pl.BlockSpec((1, 4, Hh, Wh, cin_p), lambda n, j, i: (n, 0, 0, 0, 0)),
                pl.BlockSpec((3, 3 * cin_p, tn), lambda n, j, i: (0, 0, j)),
                pl.BlockSpec((1, tn), lambda n, j, i: (0, j)),
            ],
            out_specs=pl.BlockSpec((rows_p, tn), lambda n, j, i: (n * nH + i, j)),
            compiler_params=cparams,
            cost_estimate=cost,
        )(xsp, w_fold, bias_p)

    if rows_p != rows:  # strip per-strip row padding (no-op at typical shapes)
        out = out.reshape(N * nH, rows_p, cout_p)[:, :rows, :]
    return out.reshape(N * OH * OW, cout_p)


# ------------------------------- forward pass -------------------------------

def bottleneck_forward(x, params, down_sample=False):
    stride = 2 if down_sample else 1
    N, Cin, H, W = x.shape
    cin_p = _round_up(Cin, LANE)
    mid = params["conv1"]["w"].shape[0]
    cout = params["conv3"]["w"].shape[0]
    mid_p = _round_up(mid, LANE)
    OH = (H - 1) // stride + 1
    OW = (W - 1) // stride + 1

    # NCHW -> lane-dense, channel-padded NHWC bf16 (single layout change).
    x4d = jnp.pad(x.transpose(0, 2, 3, 1).astype(jnp.bfloat16),
                  ((0, 0), (0, 0), (0, 0), (0, cin_p - Cin)))

    # --- main branch ---
    if stride == 1:
        x2d = x4d.reshape(N * H * W, cin_p)
    else:  # 1x1 conv with stride: subsample, then matmul
        x2d = x4d[:, ::stride, ::stride, :].reshape(N * OH * OW, cin_p)
    y = _conv1x1(x2d, params["conv1"], relu=True)                       # (M, mid_p)
    y = _conv3x3(y.reshape(N, OH, OW, mid_p), params["conv2"],
                 stride=1, relu=True)                                   # (M, mid_p)

    # --- shortcut branch: 3x3 conv + BN + ReLU (stride = main stride) ---
    skip = _conv3x3(x4d, params["down"], stride=stride, relu=True)      # (M, cout_p)

    # --- conv3 (no own ReLU) + residual add + final ReLU, fused ---
    out2d = _conv1x1(y, params["conv3"], relu=True, skip2d=skip,
                     out_dtype=jnp.float32)                             # (M, cout_p)

    return out2d[:, :cout].reshape(N, OH, OW, cout).transpose(0, 3, 1, 2)


# ------------------------- parameter initialization -------------------------

def _init_conv_bn(key, cout, cin, k):
    ks = jax.random.split(key, 6)
    return dict(
        w=0.1 * jax.random.normal(ks[0], (cout, cin, k, k), jnp.float32),
        b=0.1 * jax.random.normal(ks[1], (cout,), jnp.float32),
        gamma=1.0 + 0.1 * jax.random.normal(ks[2], (cout,), jnp.float32),
        beta=0.1 * jax.random.normal(ks[3], (cout,), jnp.float32),
        mean=0.1 * jax.random.normal(ks[4], (cout,), jnp.float32),
        var=jax.random.uniform(ks[5], (cout,), jnp.float32, 0.5, 1.5),
    )


def init_bottleneck(key, in_channel, out_channel):
    mid = out_channel // 4
    k1, k2, k3, k4 = jax.random.split(key, 4)
    return dict(
        down=_init_conv_bn(k1, out_channel, in_channel, 3),
        conv1=_init_conv_bn(k2, mid, in_channel, 1),
        conv2=_init_conv_bn(k3, mid, mid, 3),
        conv3=_init_conv_bn(k4, out_channel, mid, 1),
    )


# ------------------------------ pure-JAX reference ---------------------------

def _ref_conv_bn(x, p, stride, relu):
    pad = 1 if p["w"].shape[2] == 3 else 0
    y = jax.lax.conv_general_dilated(
        x, p["w"], (stride, stride), [(pad, pad), (pad, pad)],
        dimension_numbers=("NCHW", "OIHW", "NCHW"))
    y = y + p["b"][None, :, None, None]
    scale = (p["gamma"] / jnp.sqrt(p["var"] + _EPS))[None, :, None, None]
    y = (y - p["mean"][None, :, None, None]) * scale + p["beta"][None, :, None, None]
    if relu:
        y = jnp.maximum(y, 0.0)
    return y


def _ref_bottleneck(x, params, down_sample=False):
    stride = 2 if down_sample else 1
    y = _ref_conv_bn(x, params["conv1"], stride, True)
    y = _ref_conv_bn(y, params["conv2"], 1, True)
    y = _ref_conv_bn(y, params["conv3"], 1, False)
    s = _ref_conv_bn(x, params["down"], stride, True)
    return jnp.maximum(y + s, 0.0)


# ---------------------------------- main -------------------------------------

if __name__ == "__main__":
    key = jax.random.PRNGKey(0)
    k_params, k_x = jax.random.split(key)

    N, Cin, H, W = 2, 4, 16, 16
    Cout = 8

    x = jax.random.normal(k_x, (N, Cin, H, W), jnp.float32)
    params = init_bottleneck(k_params, Cin, Cout)

    fwd = jax.jit(bottleneck_forward, static_argnames=("down_sample",))

    for down_sample in (False, True):
        out = jax.block_until_ready(fwd(x, params, down_sample=down_sample))
        ref = _ref_bottleneck(x, params, down_sample=down_sample)
        assert out.shape == ref.shape
        # bf16 MXU inputs -> relaxed tolerance vs. the f32 reference.
        assert jnp.allclose(out, ref, atol=5e-2, rtol=5e-2), float(
            jnp.max(jnp.abs(out - ref)))

    print("KERNEL_OK")
</pallas_src>

<mosaic_0001>
module attributes {stable_mosaic.version = 11 : i64} {
  func.func @_matmul_bias_kernel(%arg0: i32, %arg1: i32, %arg2: i32, %arg3: memref<256x128xbf16, #tpu.memory_space<vmem>>, %arg4: memref<128x128xbf16, #tpu.memory_space<vmem>>, %arg5: memref<1x128xf32, #tpu.memory_space<vmem>>, %arg6: memref<256x128xbf16, #tpu.memory_space<vmem>>, %arg7: memref<256x128xf32, #tpu.memory_space<vmem>>) attributes {dimension_semantics = [#tpu.dimension_semantics<parallel>, #tpu.dimension_semantics<parallel>, #tpu.dimension_semantics<arbitrary>], iteration_bounds = array<i64: 2, 1, 1>, scalar_prefetch = 0 : i64, scratch_operands = 1 : i64, tpu.core_type = #tpu.core_type<tc>, window_params = [{transform_indices = @transform_0, window_bounds = array<i64: 256, 128>}, {transform_indices = @transform_1, window_bounds = array<i64: 128, 128>}, {transform_indices = @transform_2, window_bounds = array<i64: 1, 128>}, {transform_indices = @transform_3, window_bounds = array<i64: 256, 128>}]} {
    %c0_i32 = arith.constant 0 : i32
    %0 = arith.cmpi eq, %arg2, %c0_i32 : i32
    %1 = arith.extui %0 : i1 to i32
    %c0_i32_0 = arith.constant 0 : i32
    %2 = arith.cmpi ne, %1, %c0_i32_0 : i32
    scf.if %2 {
      %cst_10 = arith.constant 0.000000e+00 : f32
      %12 = vector.broadcast %cst_10 : f32 to vector<256x128xf32>
      %c0_11 = arith.constant 0 : index
      %c0_12 = arith.constant 0 : index
      %13 = vector.load %arg7[%c0_11, %c0_12] : memref<256x128xf32, #tpu.memory_space<vmem>>, vector<256x128xf32>
      tpu.vector_store %arg7[%c0_11, %c0_12], %12 {strides = array<i32>} : memref<256x128xf32, #tpu.memory_space<vmem>>, vector<256x128xf32>,
    } else {
    }
    %c0 = arith.constant 0 : index
    %c0_1 = arith.constant 0 : index
    %3 = vector.load %arg7[%c0, %c0_1] : memref<256x128xf32, #tpu.memory_space<vmem>>, vector<256x128xf32>
    %c0_2 = arith.constant 0 : index
    %c0_3 = arith.constant 0 : index
    %4 = vector.load %arg3[%c0_2, %c0_3] : memref<256x128xbf16, #tpu.memory_space<vmem>>, vector<256x128xbf16>
    %c0_4 = arith.constant 0 : index
    %c0_5 = arith.constant 0 : index
    %5 = vector.load %arg4[%c0_4, %c0_5] : memref<128x128xbf16, #tpu.memory_space<vmem>>, vector<128x128xbf16>
    %cst = arith.constant dense<0.000000e+00> : vector<256x128xf32>
    %6 = tpu.matmul %4, %5, %cst {dimension_numbers = #tpu.dot_dimension_numbers<[1], [0], [0], [1], [0, 0, 1, 1], [], []>} : vector<256x128xbf16>, vector<128x128xbf16>, vector<256x128xf32> -> vector<256x128xf32>
    %7 = arith.addf %3, %6 : vector<256x128xf32>
    %c0_6 = arith.constant 0 : index
    %c0_7 = arith.constant 0 : index
    %8 = vector.load %arg7[%c0_6, %c0_7] : memref<256x128xf32, #tpu.memory_space<vmem>>, vector<256x128xf32>
    tpu.vector_store %arg7[%c0_6, %c0_7], %7 {strides = array<i32>} : memref<256x128xf32, #tpu.memory_space<vmem>>, vector<256x128xf32>,
    %c0_i32_8 = arith.constant 0 : i32
    %9 = arith.cmpi eq, %arg2, %c0_i32_8 : i32
    %10 = arith.extui %9 : i1 to i32
    %c0_i32_9 = arith.constant 0 : i32
    %11 = arith.cmpi ne, %10, %c0_i32_9 : i32
    scf.if %11 {
      %c0_10 = arith.constant 0 : index
      %c0_11 = arith.constant 0 : index
      %12 = vector.load %arg7[%c0_10, %c0_11] : memref<256x128xf32, #tpu.memory_space<vmem>>, vector<256x128xf32>
      %c0_12 = arith.constant 0 : index
      %c0_13 = arith.constant 0 : index
      %13 = vector.load %arg5[%c0_12, %c0_13] : memref<1x128xf32, #tpu.memory_space<vmem>>, vector<1x128xf32>
      %14 = vector.broadcast %13 : vector<1x128xf32> to vector<256x128xf32>
      %15 = arith.addf %12, %14 : vector<256x128xf32>
      %cst_14 = arith.constant 0.000000e+00 : f32
      %16 = vector.broadcast %cst_14 : f32 to vector<256x128xf32>
      %17 = arith.maximumf %15, %16 : vector<256x128xf32>
      %18 = arith.truncf %17 : vector<256x128xf32> to vector<256x128xbf16>
      %c0_15 = arith.constant 0 : index
      %c0_16 = arith.constant 0 : index
      %19 = vector.load %arg6[%c0_15, %c0_16] : memref<256x128xbf16, #tpu.memory_space<vmem>>, vector<256x128xbf16>
      tpu.vector_store %arg6[%c0_15, %c0_16], %18 {strides = array<i32>} : memref<256x128xbf16, #tpu.memory_space<vmem>>, vector<256x128xbf16>,
    } else {
    }
    return
  }
  func.func @transform_0(%arg0: i32, %arg1: i32, %arg2: i32) -> (i32, i32) {
    %c0_i32 = arith.constant 0 : i32
    return %arg0, %arg2 : i32, i32
  }
  func.func @transform_1(%arg0: i32, %arg1: i32, %arg2: i32) -> (i32, i32) {
    %c0_i32 = arith.constant 0 : i32
    return %arg2, %arg1 : i32, i32
  }
  func.func @transform_2(%arg0: i32, %arg1: i32, %arg2: i32) -> (i32, i32) {
    %c0_i32 = arith.constant 0 : i32
    %c0_i32_0 = arith.constant 0 : i32
    return %c0_i32, %arg1 : i32, i32
  }
  func.func @transform_3(%arg0: i32, %arg1: i32, %arg2: i32) -> (i32, i32) {
    %c0_i32 = arith.constant 0 : i32
    return %arg0, %arg1 : i32, i32
  }
}

module attributes {stable_mosaic.version = 11 : i64} {
  func.func @_conv3x3_s1_kernel(%arg0: i32, %arg1: i32, %arg2: i32, %arg3: memref<1x18x18x128xbf16, #tpu.memory_space<vmem>>, %arg4: memref<3x384x128xbf16, #tpu.memory_space<vmem>>, %arg5: memref<1x128xf32, #tpu.memory_space<vmem>>, %arg6: memref<256x128xbf16, #tpu.memory_space<vmem>>) attributes {dimension_semantics = [#tpu.dimension_semantics<parallel>, #tpu.dimension_semantics<parallel>, #tpu.dimension_semantics<parallel>], iteration_bounds = array<i64: 2, 1, 1>, scalar_prefetch = 0 : i64, scratch_operands = 0 : i64, tpu.core_type = #tpu.core_type<tc>, window_params = [{transform_indices = @transform_0, window_bounds = array<i64: 1, 18, 18, 128>}, {transform_indices = @transform_1, window_bounds = array<i64: 3, 384, 128>}, {transform_indices = @transform_2, window_bounds = array<i64: 1, 128>}, {transform_indices = @transform_3, window_bounds = array<i64: 256, 128>}]} {
    %c16_i32 = arith.constant 16 : i32
    %0 = arith.muli %arg2, %c16_i32 : i32
    %c0_i32 = arith.constant 0 : i32
    %1 = arith.addi %0, %c0_i32 : i32
    %c0 = arith.constant 0 : index
    %2 = arith.index_cast %1 : i32 to index
    %c0_0 = arith.constant 0 : index
    %c0_1 = arith.constant 0 : index
    %3 = vector.load %arg3[%c0, %2, %c0_0, %c0_1] : memref<1x18x18x128xbf16, #tpu.memory_space<vmem>>, vector<1x16x18x128xbf16>
    %4 = vector.shape_cast %3 : vector<1x16x18x128xbf16> to vector<16x18x128xbf16>
    %5 = vector.extract_strided_slice %4 {offsets = [0, 0, 0], sizes = [16, 16, 128], strides = [1, 1, 1]} : vector<16x18x128xbf16> to vector<16x16x128xbf16>
    %6 = vector.extract_strided_slice %4 {offsets = [0, 1, 0], sizes = [16, 16, 128], strides = [1, 1, 1]} : vector<16x18x128xbf16> to vector<16x16x128xbf16>
    %7 = vector.extract_strided_slice %4 {offsets = [0, 2, 0], sizes = [16, 16, 128], strides = [1, 1, 1]} : vector<16x18x128xbf16> to vector<16x16x128xbf16>
    %8 = tpu.concatenate %5, %6, %7 in 2 : vector<16x16x128xbf16>, vector<16x16x128xbf16>, vector<16x16x128xbf16> -> vector<16x16x384xbf16>
    %9 = vector.shape_cast %8 : vector<16x16x384xbf16> to vector<256x384xbf16>
    %c0_2 = arith.constant 0 : index
    %c0_3 = arith.constant 0 : index
    %c0_4 = arith.constant 0 : index
    %10 = vector.load %arg4[%c0_2, %c0_3, %c0_4] : memref<3x384x128xbf16, #tpu.memory_space<vmem>>, vector<1x384x128xbf16>
    %11 = vector.shape_cast %10 : vector<1x384x128xbf16> to vector<384x128xbf16>
    %cst = arith.constant dense<0.000000e+00> : vector<256x128xf32>
    %12 = tpu.matmul %9, %11, %cst {dimension_numbers = #tpu.dot_dimension_numbers<[1], [0], [0], [1], [0, 0, 1, 1], [], []>} : vector<256x384xbf16>, vector<384x128xbf16>, vector<256x128xf32> -> vector<256x128xf32>
    %c1_i32 = arith.constant 1 : i32
    %13 = arith.addi %0, %c1_i32 : i32
    %c0_5 = arith.constant 0 : index
    %14 = arith.index_cast %13 : i32 to index
    %c0_6 = arith.constant 0 : index
    %c0_7 = arith.constant 0 : index
    %15 = vector.load %arg3[%c0_5, %14, %c0_6, %c0_7] : memref<1x18x18x128xbf16, #tpu.memory_space<vmem>>, vector<1x16x18x128xbf16>
    %16 = vector.shape_cast %15 : vector<1x16x18x128xbf16> to vector<16x18x128xbf16>
    %17 = vector.extract_strided_slice %16 {offsets = [0, 0, 0], sizes = [16, 16, 128], strides = [1, 1, 1]} : vector<16x18x128xbf16> to vector<16x16x128xbf16>
    %18 = vector.extract_strided_slice %16 {offsets = [0, 1, 0], sizes = [16, 16, 128], strides = [1, 1, 1]} : vector<16x18x128xbf16> to vector<16x16x128xbf16>
    %19 = vector.extract_strided_slice %16 {offsets = [0, 2, 0], sizes = [16, 16, 128], strides = [1, 1, 1]} : vector<16x18x128xbf16> to vector<16x16x128xbf16>
    %20 = tpu.concatenate %17, %18, %19 in 2 : vector<16x16x128xbf16>, vector<16x16x128xbf16>, vector<16x16x128xbf16> -> vector<16x16x384xbf16>
    %21 = vector.shape_cast %20 : vector<16x16x384xbf16> to vector<256x384xbf16>
    %c1 = arith.constant 1 : index
    %c0_8 = arith.constant 0 : index
    %c0_9 = arith.constant 0 : index
    %22 = vector.load %arg4[%c1, %c0_8, %c0_9] : memref<3x384x128xbf16, #tpu.memory_space<vmem>>, vector<1x384x128xbf16>
    %23 = vector.shape_cast %22 : vector<1x384x128xbf16> to vector<384x128xbf16>
    %cst_10 = arith.constant dense<0.000000e+00> : vector<256x128xf32>
    %24 = tpu.matmul %21, %23, %cst_10 {dimension_numbers = #tpu.dot_dimension_numbers<[1], [0], [0], [1], [0, 0, 1, 1], [], []>} : vector<256x384xbf16>, vector<384x128xbf16>, vector<256x128xf32> -> vector<256x128xf32>
    %25 = arith.addf %12, %24 : vector<256x128xf32>
    %c2_i32 = arith.constant 2 : i32
    %26 = arith.addi %0, %c2_i32 : i32
    %c0_11 = arith.constant 0 : index
    %27 = arith.index_cast %26 : i32 to index
    %c0_12 = arith.constant 0 : index
    %c0_13 = arith.constant 0 : index
    %28 = vector.load %arg3[%c0_11, %27, %c0_12, %c0_13] : memref<1x18x18x128xbf16, #tpu.memory_space<vmem>>, vector<1x16x18x128xbf16>
    %29 = vector.shape_cast %28 : vector<1x16x18x128xbf16> to vector<16x18x128xbf16>
    %30 = vector.extract_strided_slice %29 {offsets = [0, 0, 0], sizes = [16, 16, 128], strides = [1, 1, 1]} : vector<16x18x128xbf16> to vector<16x16x128xbf16>
    %31 = vector.extract_strided_slice %29 {offsets = [0, 1, 0], sizes = [16, 16, 128], strides = [1, 1, 1]} : vector<16x18x128xbf16> to vector<16x16x128xbf16>
    %32 = vector.extract_strided_slice %29 {offsets = [0, 2, 0], sizes = [16, 16, 128], strides = [1, 1, 1]} : vector<16x18x128xbf16> to vector<16x16x128xbf16>
    %33 = tpu.concatenate %30, %31, %32 in 2 : vector<16x16x128xbf16>, vector<16x16x128xbf16>, vector<16x16x128xbf16> -> vector<16x16x384xbf16>
    %34 = vector.shape_cast %33 : vector<16x16x384xbf16> to vector<256x384xbf16>
    %c2 = arith.constant 2 : index
    %c0_14 = arith.constant 0 : index
    %c0_15 = arith.constant 0 : index
    %35 = vector.load %arg4[%c2, %c0_14, %c0_15] : memref<3x384x128xbf16, #tpu.memory_space<vmem>>, vector<1x384x128xbf16>
    %36 = vector.shape_cast %35 : vector<1x384x128xbf16> to vector<384x128xbf16>
    %cst_16 = arith.constant dense<0.000000e+00> : vector<256x128xf32>
    %37 = tpu.matmul %34, %36, %cst_16 {dimension_numbers = #tpu.dot_dimension_numbers<[1], [0], [0], [1], [0, 0, 1, 1], [], []>} : vector<256x384xbf16>, vector<384x128xbf16>, vector<256x128xf32> -> vector<256x128xf32>
    %38 = arith.addf %25, %37 : vector<256x128xf32>
    %c0_17 = arith.constant 0 : index
    %c0_18 = arith.constant 0 : index
    %39 = vector.load %arg5[%c0_17, %c0_18] : memref<1x128xf32, #tpu.memory_space<vmem>>, vector<1x128xf32>
    %40 = vector.broadcast %39 : vector<1x128xf32> to vector<256x128xf32>
    %41 = arith.addf %38, %40 : vector<256x128xf32>
    %cst_19 = arith.constant 0.000000e+00 : f32
    %42 = vector.broadcast %cst_19 : f32 to vector<256x128xf32>
    %43 = arith.maximumf %41, %42 : vector<256x128xf32>
    %44 = arith.truncf %43 : vector<256x128xf32> to vector<256x128xbf16>
    %c0_20 = arith.constant 0 : index
    %c0_21 = arith.constant 0 : index
    %45 = vector.load %arg6[%c0_20, %c0_21] : memref<256x128xbf16, #tpu.memory_space<vmem>>, vector<256x128xbf16>
    tpu.vector_store %arg6[%c0_20, %c0_21], %44 {strides = array<i32>} : memref<256x128xbf16, #tpu.memory_space<vmem>>, vector<256x128xbf16>,
    return
  }
  func.func @transform_0(%arg0: i32, %arg1: i32, %arg2: i32) -> (i32, i32, i32, i32) {
    %c0_i32 = arith.constant 0 : i32
    %c0_i32_0 = arith.constant 0 : i32
    %c0_i32_1 = arith.constant 0 : i32
    %c0_i32_2 = arith.constant 0 : i32
    return %arg0, %c0_i32, %c0_i32_0, %c0_i32_1 : i32, i32, i32, i32
  }
  func.func @transform_1(%arg0: i32, %arg1: i32, %arg2: i32) -> (i32, i32, i32) {
    %c0_i32 = arith.constant 0 : i32
    %c0_i32_0 = arith.constant 0 : i32
    %c0_i32_1 = arith.constant 0 : i32
    return %c0_i32, %c0_i32_0, %arg1 : i32, i32, i32
  }
  func.func @transform_2(%arg0: i32, %arg1: i32, %arg2: i32) -> (i32, i32) {
    %c0_i32 = arith.constant 0 : i32
    %c0_i32_0 = arith.constant 0 : i32
    return %c0_i32, %arg1 : i32, i32
  }
  func.func @transform_3(%arg0: i32, %arg1: i32, %arg2: i32) -> (i32, i32) {
    %c1_i32 = arith.constant 1 : i32
    %0 = arith.muli %arg0, %c1_i32 : i32
    %1 = arith.addi %0, %arg2 : i32
    %c0_i32 = arith.constant 0 : i32
    return %1, %arg1 : i32, i32
  }
}

module attributes {stable_mosaic.version = 11 : i64} {
  func.func @_matmul_bias_skip_kernel(%arg0: i32, %arg1: i32, %arg2: i32, %arg3: memref<256x128xbf16, #tpu.memory_space<vmem>>, %arg4: memref<128x128xbf16, #tpu.memory_space<vmem>>, %arg5: memref<1x128xf32, #tpu.memory_space<vmem>>, %arg6: memref<256x128xbf16, #tpu.memory_space<vmem>>, %arg7: memref<256x128xf32, #tpu.memory_space<vmem>>, %arg8: memref<256x128xf32, #tpu.memory_space<vmem>>) attributes {dimension_semantics = [#tpu.dimension_semantics<parallel>, #tpu.dimension_semantics<parallel>, #tpu.dimension_semantics<arbitrary>], iteration_bounds = array<i64: 2, 1, 1>, scalar_prefetch = 0 : i64, scratch_operands = 1 : i64, tpu.core_type = #tpu.core_type<tc>, window_params = [{transform_indices = @transform_0, window_bounds = array<i64: 256, 128>}, {transform_indices = @transform_1, window_bounds = array<i64: 128, 128>}, {transform_indices = @transform_2, window_bounds = array<i64: 1, 128>}, {transform_indices = @transform_3, window_bounds = array<i64: 256, 128>}, {transform_indices = @transform_4, window_bounds = array<i64: 256, 128>}]} {
    %c0_i32 = arith.constant 0 : i32
    %0 = arith.cmpi eq, %arg2, %c0_i32 : i32
    %1 = arith.extui %0 : i1 to i32
    %c0_i32_0 = arith.constant 0 : i32
    %2 = arith.cmpi ne, %1, %c0_i32_0 : i32
    scf.if %2 {
      %cst_10 = arith.constant 0.000000e+00 : f32
      %12 = vector.broadcast %cst_10 : f32 to vector<256x128xf32>
      %c0_11 = arith.constant 0 : index
      %c0_12 = arith.constant 0 : index
      %13 = vector.load %arg8[%c0_11, %c0_12] : memref<256x128xf32, #tpu.memory_space<vmem>>, vector<256x128xf32>
      tpu.vector_store %arg8[%c0_11, %c0_12], %12 {strides = array<i32>} : memref<256x128xf32, #tpu.memory_space<vmem>>, vector<256x128xf32>,
    } else {
    }
    %c0 = arith.constant 0 : index
    %c0_1 = arith.constant 0 : index
    %3 = vector.load %arg8[%c0, %c0_1] : memref<256x128xf32, #tpu.memory_space<vmem>>, vector<256x128xf32>
    %c0_2 = arith.constant 0 : index
    %c0_3 = arith.constant 0 : index
    %4 = vector.load %arg3[%c0_2, %c0_3] : memref<256x128xbf16, #tpu.memory_space<vmem>>, vector<256x128xbf16>
    %c0_4 = arith.constant 0 : index
    %c0_5 = arith.constant 0 : index
    %5 = vector.load %arg4[%c0_4, %c0_5] : memref<128x128xbf16, #tpu.memory_space<vmem>>, vector<128x128xbf16>
    %cst = arith.constant dense<0.000000e+00> : vector<256x128xf32>
    %6 = tpu.matmul %4, %5, %cst {dimension_numbers = #tpu.dot_dimension_numbers<[1], [0], [0], [1], [0, 0, 1, 1], [], []>} : vector<256x128xbf16>, vector<128x128xbf16>, vector<256x128xf32> -> vector<256x128xf32>
    %7 = arith.addf %3, %6 : vector<256x128xf32>
    %c0_6 = arith.constant 0 : index
    %c0_7 = arith.constant 0 : index
    %8 = vector.load %arg8[%c0_6, %c0_7] : memref<256x128xf32, #tpu.memory_space<vmem>>, vector<256x128xf32>
    tpu.vector_store %arg8[%c0_6, %c0_7], %7 {strides = array<i32>} : memref<256x128xf32, #tpu.memory_space<vmem>>, vector<256x128xf32>,
    %c0_i32_8 = arith.constant 0 : i32
    %9 = arith.cmpi eq, %arg2, %c0_i32_8 : i32
    %10 = arith.extui %9 : i1 to i32
    %c0_i32_9 = arith.constant 0 : i32
    %11 = arith.cmpi ne, %10, %c0_i32_9 : i32
    scf.if %11 {
      %c0_10 = arith.constant 0 : index
      %c0_11 = arith.constant 0 : index
      %12 = vector.load %arg8[%c0_10, %c0_11] : memref<256x128xf32, #tpu.memory_space<vmem>>, vector<256x128xf32>
      %c0_12 = arith.constant 0 : index
      %c0_13 = arith.constant 0 : index
      %13 = vector.load %arg5[%c0_12, %c0_13] : memref<1x128xf32, #tpu.memory_space<vmem>>, vector<1x128xf32>
      %14 = vector.broadcast %13 : vector<1x128xf32> to vector<256x128xf32>
      %15 = arith.addf %12, %14 : vector<256x128xf32>
      %c0_14 = arith.constant 0 : index
      %c0_15 = arith.constant 0 : index
      %16 = vector.load %arg6[%c0_14, %c0_15] : memref<256x128xbf16, #tpu.memory_space<vmem>>, vector<256x128xbf16>
      %17 = arith.extf %16 : vector<256x128xbf16> to vector<256x128xf32>
      %18 = arith.addf %15, %17 : vector<256x128xf32>
      %cst_16 = arith.constant 0.000000e+00 : f32
      %19 = vector.broadcast %cst_16 : f32 to vector<256x128xf32>
      %20 = arith.maximumf %18, %19 : vector<256x128xf32>
      %c0_17 = arith.constant 0 : index
      %c0_18 = arith.constant 0 : index
      %21 = vector.load %arg7[%c0_17, %c0_18] : memref<256x128xf32, #tpu.memory_space<vmem>>, vector<256x128xf32>
      tpu.vector_store %arg7[%c0_17, %c0_18], %20 {strides = array<i32>} : memref<256x128xf32, #tpu.memory_space<vmem>>, vector<256x128xf32>,
    } else {
    }
    return
  }
  func.func @transform_0(%arg0: i32, %arg1: i32, %arg2: i32) -> (i32, i32) {
    %c0_i32 = arith.constant 0 : i32
    return %arg0, %arg2 : i32, i32
  }
  func.func @transform_1(%arg0: i32, %arg1: i32, %arg2: i32) -> (i32, i32) {
    %c0_i32 = arith.constant 0 : i32
    return %arg2, %arg1 : i32, i32
  }
  func.func @transform_2(%arg0: i32, %arg1: i32, %arg2: i32) -> (i32, i32) {
    %c0_i32 = arith.constant 0 : i32
    %c0_i32_0 = arith.constant 0 : i32
    return %c0_i32, %arg1 : i32, i32
  }
  func.func @transform_3(%arg0: i32, %arg1: i32, %arg2: i32) -> (i32, i32) {
    %c0_i32 = arith.constant 0 : i32
    return %arg0, %arg1 : i32, i32
  }
  func.func @transform_4(%arg0: i32, %arg1: i32, %arg2: i32) -> (i32, i32) {
    %c0_i32 = arith.constant 0 : i32
    return %arg0, %arg1 : i32, i32
  }
}

</mosaic_0001>

<bundles_post_ra>
// kernel: bottleneck_forward.7
= control target key start
LH: loop header
LB: loop body
LE: loop exit
PB: predicated region body
PF: predicated region fallthrough
CT: control target
= control target key end

     0   :  { %s1401_s15 = smov 0   ;;  %s1403_s16 = smov 0   ;;  %s1579_s0 = inlined_call_operand.vmem [shape: bf16[512,128], index: 0, kind: input, shape index: {}]   ;;  %s1580_s1 = inlined_call_operand.vmem [shape: bf16[128,128], index: 1, kind: input, shape index: {}]   ;;  %s1581_s2 = inlined_call_operand.vmem [shape: f32[1,128], index: 2, kind: input, shape index: {}]   ;;  %s1582_s3 = inlined_call_operand.vmem [shape: bf16[512,128], index: 3, kind: input, shape index: {}]   ;;  %s1583_s4 = inlined_call_operand.vmem [shape: f32[512,128], index: 4, kind: output, shape index: {}]  }
   0x1   :  { %s1405_s17 = smov 0  }
   0x2 LB: > { %s33_s18 = sadd.s32 1, %s1370_s16  ;;  %p1095_p0 = scmp.ge.s32.totalorder %s1374_s17, 1  ;;  %s1374_s17 = sphi %s1405_s17, %s14_s17   ;;  %s1370_s16 = sphi %s1403_s16, %s1585_s16   ;;  %s1366_s15 = sphi %s1401_s15, %s1584_s15  }
   0x3   : > { %p35_p1 = scmp.ge.s32.totalorder %s33_s18, 2  ;;  %p229_p2 = scmp.lt.s32.totalorder %s1374_s17, 3 }
   0x5   : > { %s1587_s18 = smov (%p35_p1, %s33_s18), 0  ;;  %p230_p3 = pnand %p1095_p0, %p229_p2 }
   0x6   : > { %s1096_s27 = sshll.u32 (!%p230_p3), %s1366_s15, 5 }
   0x7   : > { %233 = sbr.rel (%p230_p3) target bundleno = 241 (0xf1), region = 36  ;;  %p281_p4 = scmp.lt.s32.totalorder (!%p230_p3), %s1096_s27, 63 }
   0xc   : > { %v1223_v0 = vld [vmem:[%s1580_s1 + $0x38] sm:$0xff]  ;;  %v1222_v1 = vld [vmem:[%s1580_s1 + $0x30] sm:$0xff]  ;;  %v1221_v2 = vld [vmem:[%s1580_s1 + $0x28] sm:$0xff]  ;;  %s1589_s27 = smov (!%p281_p4, %s1096_s27), 63 }
   0xd   : > { %579 = vmatpush.bf16.msra.mxu0 %v1223_v0  ;;  %1303 = vmatpush.bf16.msra.mxu1 %v1223_v0  ;;  %v1220_v3 = vld [vmem:[%s1580_s1 + $0x20] sm:$0xff]  ;;  %v1219_v4 = vld [vmem:[%s1580_s1 + $0x18] sm:$0xff]  ;;  %v1218_v5 = vld [vmem:[%s1580_s1 + $0x10] sm:$0xff]  ;;  %s1097_s8 = sshll.u32 %s1589_s27, 2  ;;  %s1101_s22 = sshll.u32 %s1589_s27, 3 }
   0xe   : > { %1304 = vmatpush.bf16.msra.mxu2 %v1223_v0  ;;  %1305 = vmatpush.bf16.msra.mxu3 %v1223_v0  ;;  %v1217_v6 = vld [vmem:[%s1580_s1 + $0x8] sm:$0xff]  ;;  %v1216_v7 = vld [vmem:[%s1580_s1] sm:$0xff]  ;;  %s1454_s13 = scalar_lea.vmem %s1579_s0, %s1097_s8  ;;  %s1477_s19 = scalar_lea.vmem %s1582_s3, %s1097_s8 }
   0xf   : > { %v1200_v8 = vld [vmem:[%s1454_s13] sm:$0xff]  ;;  %v1201_v12 = vld [vmem:[%s1454_s13 + $0x8] sm:$0xff]  ;;  %v1202_v16 = vld [vmem:[%s1454_s13 + $0x10] sm:$0xff]  ;;  %s1494_s25 = scalar_lea.vmem %s1583_s4, %s1101_s22 }
  0x10   : > { %v1204_v9 = vld [vmem:[%s1454_s13 + $0x20] sm:$0xff]  ;;  %v1205_v13 = vld [vmem:[%s1454_s13 + $0x28] sm:$0xff]  ;;  %v1206_v17 = vld [vmem:[%s1454_s13 + $0x30] sm:$0xff] }
  0x11   : > { %580 = vmatpush.bf16.msra.mxu0 %v1222_v1  ;;  %1306 = vmatpush.bf16.msra.mxu1 %v1222_v1  ;;  %v1208_v10 = vld [vmem:[%s1454_s13 + $0x40] sm:$0xff]  ;;  %v1209_v14 = vld [vmem:[%s1454_s13 + $0x48] sm:$0xff]  ;;  %v1210_v18 = vld [vmem:[%s1454_s13 + $0x50] sm:$0xff] }
  0x12   : > { %1307 = vmatpush.bf16.msra.mxu2 %v1222_v1  ;;  %1308 = vmatpush.bf16.msra.mxu3 %v1222_v1  ;;  %v1212_v11 = vld [vmem:[%s1454_s13 + $0x60] sm:$0xff]  ;;  %v1213_v15 = vld [vmem:[%s1454_s13 + $0x68] sm:$0xff]  ;;  %v1214_v19 = vld [vmem:[%s1454_s13 + $0x70] sm:$0xff] }
  0x13   : > { %v1203_v20 = vld [vmem:[%s1454_s13 + $0x18] sm:$0xff]  ;;  %v1225_v24 = vld [vmem:[%s1477_s19] sm:$0xff]   ;;  %v1288_v57 = vld [vmem:[%s1477_s19 + $0x8] sm:$0xff]  }
  0x14   : > { %v1207_v21 = vld [vmem:[%s1454_s13 + $0x38] sm:$0xff]  ;;  %v1291_v25 = vld [vmem:[%s1477_s19 + $0x20] sm:$0xff]   ;;  %v1226_v27 = vunpack.c.l.bf16 %v1225_v24  ;;  %v1227_v43 = vunpack.c.h.bf16 %v1225_v24  ;;  %v1292_v58 = vld [vmem:[%s1477_s19 + $0x28] sm:$0xff]   ;;  %v1230_v1 = vunpack.c.l.bf16 %v1288_v57 }
  0x15   : > { %581 = vmatpush.bf16.msra.mxu0 %v1221_v2  ;;  %1309 = vmatpush.bf16.msra.mxu1 %v1221_v2  ;;  %v1211_v22 = vld [vmem:[%s1454_s13 + $0x58] sm:$0xff]  ;;  %v1484_v26 = vld [vmem:[%s1581_s2] ss:$0 sm:$0xff]  ;;  %v1242_v28 = vunpack.c.l.bf16 %v1291_v25  ;;  %v1243_v44 = vunpack.c.h.bf16 %v1291_v25  ;;  %v1247_v24 = vunpack.c.h.bf16 %v1292_v58 }
  0x16   : > { %1310 = vmatpush.bf16.msra.mxu2 %v1221_v2  ;;  %1311 = vmatpush.bf16.msra.mxu3 %v1221_v2  ;;  %v1215_v23 = vld [vmem:[%s1454_s13 + $0x78] sm:$0xff]  ;;  %v1295_v35 = vld [vmem:[%s1477_s19 + $0x40] sm:$0xff]   ;;  %v1246_v2 = vunpack.c.l.bf16 %v1292_v58  ;;  %v1297_v58 = vld [vmem:[%s1477_s19 + $0x50] sm:$0xff]  }
  0x17   : > { %v1299_v36 = vld [vmem:[%s1477_s19 + $0x60] sm:$0xff]   ;;  %v1258_v39 = vunpack.c.l.bf16 %v1295_v35  ;;  %v1259_v61 = vunpack.c.h.bf16 %v1295_v35 }
  0x18   : > { %v1274_v40 = vunpack.c.l.bf16 %v1299_v36  ;;  %v1275_v62 = vunpack.c.h.bf16 %v1299_v36 }
  0x19   : > { %582 = vmatpush.bf16.msra.mxu0 %v1220_v3  ;;  %1312 = vmatpush.bf16.msra.mxu1 %v1220_v3 }
  0x1a   : > { %1313 = vmatpush.bf16.msra.mxu2 %v1220_v3  ;;  %1314 = vmatpush.bf16.msra.mxu3 %v1220_v3 }
  0x1d   : > { %583 = vmatpush.bf16.msra.mxu0 %v1219_v4  ;;  %1315 = vmatpush.bf16.msra.mxu1 %v1219_v4 }
  0x1e   : > { %1316 = vmatpush.bf16.msra.mxu2 %v1219_v4  ;;  %1317 = vmatpush.bf16.msra.mxu3 %v1219_v4 }
  0x21   : > { %584 = vmatpush.bf16.msra.mxu0 %v1218_v5  ;;  %1318 = vmatpush.bf16.msra.mxu1 %v1218_v5 }
  0x22   : > { %1319 = vmatpush.bf16.msra.mxu2 %v1218_v5  ;;  %1320 = vmatpush.bf16.msra.mxu3 %v1218_v5 }
  0x25   : > { %585 = vmatpush.bf16.msra.mxu0 %v1217_v6  ;;  %1321 = vmatpush.bf16.msra.mxu1 %v1217_v6 }
  0x26   : > { %1322 = vmatpush.bf16.msra.mxu2 %v1217_v6  ;;  %1323 = vmatpush.bf16.msra.mxu3 %v1217_v6 }
  0x29   : > { %586 = vmatpush.bf16.msra.mxu0 %v1216_v7  ;;  %1324 = vmatpush.bf16.msra.mxu1 %v1216_v7 }
  0x2a   : > { %1325 = vmatpush.bf16.msra.mxu2 %v1216_v7  ;;  %1326 = vmatpush.bf16.msra.mxu3 %v1216_v7 }
  0x2c   : > { %587 = vmatmul.bf16.vlgmr.msra.gmra.mxu0 %v1200_v8  ;;  %607 = vmatmul.bf16.vlgmr.msra.gmra.mxu1 %v1204_v9 }
  0x2d   : > { %627 = vmatmul.bf16.vlgmr.msra.gmra.mxu2 %v1208_v10  ;;  %647 = vmatmul.bf16.vlgmr.msra.gmra.mxu3 %v1212_v11 }
  0x3c   : > { %592 = vmatmul.bf16.gmra.mxu0 %v1201_v12  ;;  %612 = vmatmul.bf16.gmra.mxu1 %v1205_v13  ;;  %v1296_v13 = vld [vmem:[%s1477_s19 + $0x48] sm:$0xff]  }
  0x3d   : > { %632 = vmatmul.bf16.gmra.mxu2 %v1209_v14  ;;  %652 = vmatmul.bf16.gmra.mxu3 %v1213_v15  ;;  %v1300_v14 = vld [vmem:[%s1477_s19 + $0x68] sm:$0xff]  }
  0x4c   : > { %597 = vmatmul.bf16.gmra.mxu0 %v1202_v16  ;;  %617 = vmatmul.bf16.gmra.mxu1 %v1206_v17 }
  0x4d   : > { %637 = vmatmul.bf16.gmra.mxu2 %v1210_v18  ;;  %657 = vmatmul.bf16.gmra.mxu3 %v1214_v19  ;;  %v1262_v19 = vunpack.c.l.bf16 %v1296_v13 }
  0x5c   : > { %602 = vmatmul.bf16.gmra.mxu0 %v1203_v20  ;;  %622 = vmatmul.bf16.gmra.mxu1 %v1207_v21  ;;  %v1278_v20 = vunpack.c.l.bf16 %v1300_v14 }
  0x5d   : > { %642 = vmatmul.bf16.gmra.mxu2 %v1211_v22  ;;  %662 = vmatmul.bf16.gmra.mxu3 %v1215_v23  ;;  %v1231_v23 = vunpack.c.h.bf16 %v1288_v57 }
  0xa9   : > { %v588_v29 = vpop.f32.mrf.mxu0  ;;  %v608_v30 = vpop.f32.mrf.mxu1 }
  0xaa   : > { %v771_v31 = vadd.f32 %v1484_v26, %v588_v29  ;;  %v779_v32 = vadd.f32 %v1484_v26, %v608_v30 }
  0xac   : > { %v867_v33 = vadd.f32 %v1226_v27, %v771_v31  ;;  %v875_v34 = vadd.f32 %v1242_v28, %v779_v32 }
  0xae   : > { %v899_v37 = vmax.f32 %v867_v33, 0.0  ;;  %v907_v38 = vmax.f32 %v875_v34, 0.0 }
  0xb0   : > { %931 = vst [vmem:[%s1494_s25] sm:$0xff] %v899_v37  ;;  %v628_v41 = vpop.f32.mrf.mxu2  ;;  %v648_v42 = vpop.f32.mrf.mxu3 }
  0xb1   : > { %939 = vst [vmem:[%s1494_s25 + $0x40] sm:$0xff] %v907_v38  ;;  %v787_v45 = vadd.f32 %v1484_v26, %v628_v41  ;;  %v795_v46 = vadd.f32 %v1484_v26, %v648_v42  ;;  %v590_v47 = vpop.f32.mrf.mxu0  ;;  %v610_v48 = vpop.f32.mrf.mxu1  ;;  %v1289_v38 = vld [vmem:[%s1477_s19 + $0x10] sm:$0xff]   ;;  %v1263_v42 = vunpack.c.h.bf16 %v1296_v13 }
  0xb2   : > { %v772_v49 = vadd.f32 %v1484_v26, %v590_v47  ;;  %v780_v50 = vadd.f32 %v1484_v26, %v610_v48 }
  0xb3   : > { %v883_v51 = vadd.f32 %v1258_v39, %v787_v45  ;;  %v891_v52 = vadd.f32 %v1274_v40, %v795_v46  ;;  %v1293_v39 = vld [vmem:[%s1477_s19 + $0x30] sm:$0xff]   ;;  %v1234_v46 = vunpack.c.l.bf16 %v1289_v38 }
  0xb4   : > { %v868_v53 = vadd.f32 %v1227_v43, %v772_v49  ;;  %v876_v54 = vadd.f32 %v1243_v44, %v780_v50  ;;  %v1279_v43 = vunpack.c.h.bf16 %v1300_v14  ;;  %v1250_v47 = vunpack.c.l.bf16 %v1293_v39 }
  0xb5   : > { %v915_v55 = vmax.f32 %v883_v51, 0.0  ;;  %v923_v56 = vmax.f32 %v891_v52, 0.0 }
  0xb6   : > { %v900_v59 = vmax.f32 %v868_v53, 0.0  ;;  %v908_v60 = vmax.f32 %v876_v54, 0.0 }
  0xb7   : > { %947 = vst [vmem:[%s1494_s25 + $0x80] sm:$0xff] %v915_v55 }
  0xb8   : > { %955 = vst [vmem:[%s1494_s25 + $0xc0] sm:$0xff] %v923_v56  ;;  %v630_v63 = vpop.f32.mrf.mxu2  ;;  %v650_v0 = vpop.f32.mrf.mxu3 }
  0xb9   : > { %932 = vst [vmem:[%s1494_s25 + $0x8] sm:$0xff] %v900_v59  ;;  %v788_v3 = vadd.f32 %v1484_v26, %v630_v63  ;;  %v796_v4 = vadd.f32 %v1484_v26, %v650_v0  ;;  %v593_v5 = vpop.f32.mrf.mxu0  ;;  %v613_v6 = vpop.f32.mrf.mxu1  ;;  %v1301_v59 = vld [vmem:[%s1477_s19 + $0x70] sm:$0xff]   ;;  %v1266_v0 = vunpack.c.l.bf16 %v1297_v58 }
  0xba   : > { %940 = vst [vmem:[%s1494_s25 + $0x48] sm:$0xff] %v908_v60  ;;  %v773_v7 = vadd.f32 %v1484_v26, %v593_v5  ;;  %v781_v8 = vadd.f32 %v1484_v26, %v613_v6  ;;  %v1251_v5 = vunpack.c.h.bf16 %v1293_v39  ;;  %v1298_v39 = vld [vmem:[%s1477_s19 + $0x58] sm:$0xff]  }
  0xbb   : > { %v884_v9 = vadd.f32 %v1259_v61, %v788_v3  ;;  %v892_v10 = vadd.f32 %v1275_v62, %v796_v4  ;;  %v1235_v4 = vunpack.c.h.bf16 %v1289_v38 }
  0xbc   : > { %v869_v11 = vadd.f32 %v1230_v1, %v773_v7  ;;  %v877_v12 = vadd.f32 %v1246_v2, %v781_v8  ;;  %v1282_v1 = vunpack.c.l.bf16 %v1301_v59 }
  0xbd   : > { %v916_v15 = vmax.f32 %v884_v9, 0.0  ;;  %v924_v16 = vmax.f32 %v892_v10, 0.0 }
  0xbe   : > { %v901_v17 = vmax.f32 %v869_v11, 0.0  ;;  %v909_v18 = vmax.f32 %v877_v12, 0.0 }
  0xbf   : > { %948 = vst [vmem:[%s1494_s25 + $0x88] sm:$0xff] %v916_v15 }
  0xc0   : > { %956 = vst [vmem:[%s1494_s25 + $0xc8] sm:$0xff] %v924_v16  ;;  %v633_v21 = vpop.f32.mrf.mxu2  ;;  %v653_v22 = vpop.f32.mrf.mxu3 }
  0xc1   : > { %933 = vst [vmem:[%s1494_s25 + $0x10] sm:$0xff] %v901_v17  ;;  %v789_v25 = vadd.f32 %v1484_v26, %v633_v21  ;;  %v797_v27 = vadd.f32 %v1484_v26, %v653_v22  ;;  %v595_v28 = vpop.f32.mrf.mxu0  ;;  %v615_v29 = vpop.f32.mrf.mxu1  ;;  %v1267_v22 = vunpack.c.h.bf16 %v1297_v58 }
  0xc2   : > { %941 = vst [vmem:[%s1494_s25 + $0x50] sm:$0xff] %v909_v18  ;;  %v774_v30 = vadd.f32 %v1484_v26, %v595_v28  ;;  %v782_v31 = vadd.f32 %v1484_v26, %v615_v29  ;;  %v1290_v18 = vld [vmem:[%s1477_s19 + $0x18] sm:$0xff]  }
  0xc3   : > { %v885_v32 = vadd.f32 %v1262_v19, %v789_v25  ;;  %v893_v33 = vadd.f32 %v1278_v20, %v797_v27  ;;  %v1294_v19 = vld [vmem:[%s1477_s19 + $0x38] sm:$0xff]   ;;  %v1238_v27 = vunpack.c.l.bf16 %v1290_v18 }
  0xc4   : > { %v870_v34 = vadd.f32 %v1231_v23, %v774_v30  ;;  %v878_v35 = vadd.f32 %v1247_v24, %v782_v31  ;;  %v1283_v23 = vunpack.c.h.bf16 %v1301_v59  ;;  %v1254_v28 = vunpack.c.l.bf16 %v1294_v19 }
  0xc5   : > { %v917_v36 = vmax.f32 %v885_v32, 0.0  ;;  %v925_v37 = vmax.f32 %v893_v33, 0.0 }
  0xc6   : > { %v902_v40 = vmax.f32 %v870_v34, 0.0  ;;  %v910_v41 = vmax.f32 %v878_v35, 0.0 }
  0xc7   : > { %949 = vst [vmem:[%s1494_s25 + $0x90] sm:$0xff] %v917_v36 }
  0xc8   : > { %957 = vst [vmem:[%s1494_s25 + $0xd0] sm:$0xff] %v925_v37  ;;  %v635_v44 = vpop.f32.mrf.mxu2  ;;  %v655_v45 = vpop.f32.mrf.mxu3 }
  0xc9   : > { %934 = vst [vmem:[%s1494_s25 + $0x18] sm:$0xff] %v902_v40  ;;  %v790_v48 = vadd.f32 %v1484_v26, %v635_v44  ;;  %v798_v49 = vadd.f32 %v1484_v26, %v655_v45  ;;  %v598_v50 = vpop.f32.mrf.mxu0  ;;  %v618_v51 = vpop.f32.mrf.mxu1  ;;  %v1302_v40 = vld [vmem:[%s1477_s19 + $0x78] sm:$0xff]   ;;  %v1270_v45 = vunpack.c.l.bf16 %v1298_v39 }
  0xca   : > { %942 = vst [vmem:[%s1494_s25 + $0x58] sm:$0xff] %v910_v41  ;;  %v775_v52 = vadd.f32 %v1484_v26, %v598_v50  ;;  %v783_v53 = vadd.f32 %v1484_v26, %v618_v51  ;;  %v1255_v50 = vunpack.c.h.bf16 %v1294_v19 }
  0xcb   : > { %v886_v54 = vadd.f32 %v1263_v42, %v790_v48  ;;  %v894_v55 = vadd.f32 %v1279_v43, %v798_v49  ;;  %v1239_v49 = vunpack.c.h.bf16 %v1290_v18 }
  0xcc   : > { %v871_v56 = vadd.f32 %v1234_v46, %v775_v52  ;;  %v879_v57 = vadd.f32 %v1250_v47, %v783_v53  ;;  %v1286_v46 = vunpack.c.l.bf16 %v1302_v40 }
  0xcd   : > { %v918_v60 = vmax.f32 %v886_v54, 0.0  ;;  %v926_v61 = vmax.f32 %v894_v55, 0.0 }
  0xce   : > { %v903_v62 = vmax.f32 %v871_v56, 0.0  ;;  %v911_v63 = vmax.f32 %v879_v57, 0.0 }
  0xcf   : > { %950 = vst [vmem:[%s1494_s25 + $0x98] sm:$0xff] %v918_v60 }
  0xd0   : > { %958 = vst [vmem:[%s1494_s25 + $0xd8] sm:$0xff] %v926_v61  ;;  %v638_v2 = vpop.f32.mrf.mxu2  ;;  %v658_v3 = vpop.f32.mrf.mxu3 }
  0xd1   : > { %935 = vst [vmem:[%s1494_s25 + $0x20] sm:$0xff] %v903_v62  ;;  %v791_v6 = vadd.f32 %v1484_v26, %v638_v2  ;;  %v799_v7 = vadd.f32 %v1484_v26, %v658_v3  ;;  %v600_v8 = vpop.f32.mrf.mxu0  ;;  %v620_v9 = vpop.f32.mrf.mxu1  ;;  %v1287_v2 = vunpack.c.h.bf16 %v1302_v40 }
  0xd2   : > { %943 = vst [vmem:[%s1494_s25 + $0x60] sm:$0xff] %v911_v63  ;;  %v776_v10 = vadd.f32 %v1484_v26, %v600_v8  ;;  %v784_v11 = vadd.f32 %v1484_v26, %v620_v9 }
  0xd3   : > { %v887_v12 = vadd.f32 %v1266_v0, %v791_v6  ;;  %v895_v13 = vadd.f32 %v1282_v1, %v799_v7  ;;  %v1271_v1 = vunpack.c.h.bf16 %v1298_v39 }
  0xd4   : > { %v872_v14 = vadd.f32 %v1235_v4, %v776_v10  ;;  %v880_v15 = vadd.f32 %v1251_v5, %v784_v11 }
  0xd5   : > { %v919_v16 = vmax.f32 %v887_v12, 0.0  ;;  %v927_v17 = vmax.f32 %v895_v13, 0.0 }
  0xd6   : > { %v904_v20 = vmax.f32 %v872_v14, 0.0  ;;  %v912_v21 = vmax.f32 %v880_v15, 0.0 }
  0xd7   : > { %951 = vst [vmem:[%s1494_s25 + $0xa0] sm:$0xff] %v919_v16 }
  0xd8   : > { %959 = vst [vmem:[%s1494_s25 + $0xe0] sm:$0xff] %v927_v17  ;;  %v640_v24 = vpop.f32.mrf.mxu2  ;;  %v660_v25 = vpop.f32.mrf.mxu3 }
  0xd9   : > { %936 = vst [vmem:[%s1494_s25 + $0x28] sm:$0xff] %v904_v20  ;;  %v792_v29 = vadd.f32 %v1484_v26, %v640_v24  ;;  %v800_v30 = vadd.f32 %v1484_v26, %v660_v25  ;;  %v603_v31 = vpop.f32.mrf.mxu0  ;;  %v623_v32 = vpop.f32.mrf.mxu1 }
  0xda   : > { %944 = vst [vmem:[%s1494_s25 + $0x68] sm:$0xff] %v912_v21  ;;  %v777_v33 = vadd.f32 %v1484_v26, %v603_v31  ;;  %v785_v34 = vadd.f32 %v1484_v26, %v623_v32 }
  0xdb   : > { %v888_v35 = vadd.f32 %v1267_v22, %v792_v29  ;;  %v896_v36 = vadd.f32 %v1283_v23, %v800_v30 }
  0xdc   : > { %v873_v37 = vadd.f32 %v1238_v27, %v777_v33  ;;  %v881_v38 = vadd.f32 %v1254_v28, %v785_v34 }
  0xdd   : > { %v920_v41 = vmax.f32 %v888_v35, 0.0  ;;  %v928_v42 = vmax.f32 %v896_v36, 0.0 }
  0xde   : > { %v905_v43 = vmax.f32 %v873_v37, 0.0  ;;  %v913_v44 = vmax.f32 %v881_v38, 0.0 }
  0xdf   : > { %952 = vst [vmem:[%s1494_s25 + $0xa8] sm:$0xff] %v920_v41 }
  0xe0   : > { %960 = vst [vmem:[%s1494_s25 + $0xe8] sm:$0xff] %v928_v42  ;;  %v643_v47 = vpop.f32.mrf.mxu2  ;;  %v663_v48 = vpop.f32.mrf.mxu3 }
  0xe1   : > { %937 = vst [vmem:[%s1494_s25 + $0x30] sm:$0xff] %v905_v43  ;;  %v793_v51 = vadd.f32 %v1484_v26, %v643_v47  ;;  %v801_v52 = vadd.f32 %v1484_v26, %v663_v48  ;;  %v605_v53 = vpop.f32.mrf.mxu0  ;;  %v625_v54 = vpop.f32.mrf.mxu1 }
  0xe2   : > { %945 = vst [vmem:[%s1494_s25 + $0x70] sm:$0xff] %v913_v44  ;;  %v778_v55 = vadd.f32 %v1484_v26, %v605_v53  ;;  %v786_v56 = vadd.f32 %v1484_v26, %v625_v54 }
  0xe3   : > { %v889_v57 = vadd.f32 %v1270_v45, %v793_v51  ;;  %v897_v58 = vadd.f32 %v1286_v46, %v801_v52 }
  0xe4   : > { %v874_v59 = vadd.f32 %v1239_v49, %v778_v55  ;;  %v882_v60 = vadd.f32 %v1255_v50, %v786_v56 }
  0xe5   : > { %v921_v61 = vmax.f32 %v889_v57, 0.0  ;;  %v929_v62 = vmax.f32 %v897_v58, 0.0 }
  0xe6   : > { %v906_v63 = vmax.f32 %v874_v59, 0.0  ;;  %v914_v0 = vmax.f32 %v882_v60, 0.0 }
  0xe7   : > { %953 = vst [vmem:[%s1494_s25 + $0xb0] sm:$0xff] %v921_v61 }
  0xe8   : > { %961 = vst [vmem:[%s1494_s25 + $0xf0] sm:$0xff] %v929_v62  ;;  %v645_v3 = vpop.f32.mrf.mxu2  ;;  %v665_v4 = vpop.f32.mrf.mxu3 }
  0xe9   : > { %938 = vst [vmem:[%s1494_s25 + $0x38] sm:$0xff] %v906_v63  ;;  %v794_v5 = vadd.f32 %v1484_v26, %v645_v3  ;;  %v802_v6 = vadd.f32 %v1484_v26, %v665_v4 }
  0xea   : > { %946 = vst [vmem:[%s1494_s25 + $0x78] sm:$0xff] %v914_v0 }
  0xeb   : > { %v890_v7 = vadd.f32 %v1271_v1, %v794_v5  ;;  %v898_v8 = vadd.f32 %v1287_v2, %v802_v6 }
  0xed   : > { %v922_v9 = vmax.f32 %v890_v7, 0.0  ;;  %v930_v10 = vmax.f32 %v898_v8, 0.0 }
  0xef   : > { %954 = vst [vmem:[%s1494_s25 + $0xb8] sm:$0xff] %v922_v9 }
  0xf0   : > { %962 = vst [vmem:[%s1494_s25 + $0xf8] sm:$0xff] %v930_v10 }
  0xf1 PF: > { %s14_s17 = sadd.s32 1, %s1374_s17   ;;  %s1584_s15 = smov %s1370_s16 }
  0xf2   : > { %p11_p5 = scmp.ge.s32.totalorder %s14_s17, 4   ;;  %s1585_s16 = smov %s1587_s18 }
  0xf4   :  { %13 = sbr.rel (!%p11_p5) target bundleno = 2 (0x2), region = 83 }

// kernel: bottleneck_forward.4
= control target key start
LH: loop header
LB: loop body
LE: loop exit
PB: predicated region body
PF: predicated region fallthrough
CT: control target
= control target key end

     0   :  { %s1271_s12 = smov 0   ;;  %s1273_s13 = smov 0   ;;  %s1411_s0 = inlined_call_operand.vmem [shape: bf16[512,128], index: 0, kind: input, shape index: {}]   ;;  %s1412_s1 = inlined_call_operand.vmem [shape: bf16[128,128], index: 1, kind: input, shape index: {}]   ;;  %s1413_s2 = inlined_call_operand.vmem [shape: f32[1,128], index: 2, kind: input, shape index: {}]   ;;  %s1414_s3 = inlined_call_operand.vmem [shape: bf16[512,128], index: 3, kind: output, shape index: {}]  }
   0x1   :  { %s1275_s14 = smov 0  }
   0x2 LB: > { %s32_s15 = sadd.s32 1, %s1245_s13  ;;  %p956_p0 = scmp.ge.s32.totalorder %s1249_s14, 1  ;;  %s1249_s14 = sphi %s1275_s14, %s13_s14   ;;  %s1245_s13 = sphi %s1273_s13, %s1416_s13   ;;  %s1241_s12 = sphi %s1271_s12, %s1415_s12  }
   0x3   : > { %p34_p1 = scmp.ge.s32.totalorder %s32_s15, 2  ;;  %p188_p2 = scmp.lt.s32.totalorder %s1249_s14, 3 }
   0x5   : > { %s1418_s15 = smov (%p34_p1, %s32_s15), 0  ;;  %p189_p3 = pnand %p956_p0, %p188_p2 }
   0x6   : > { %s957_s24 = sshll.u32 (!%p189_p3), %s1241_s12, 5 }
   0x7   : > { %192 = sbr.rel (%p189_p3) target bundleno = 241 (0xf1), region = 32  ;;  %p230_p4 = scmp.lt.s32.totalorder (!%p189_p3), %s957_s24, 63 }
   0xc   : > { %v1082_v0 = vld [vmem:[%s1412_s1 + $0x38] sm:$0xff]  ;;  %v1081_v1 = vld [vmem:[%s1412_s1 + $0x30] sm:$0xff]  ;;  %v1080_v2 = vld [vmem:[%s1412_s1 + $0x28] sm:$0xff]  ;;  %s1420_s24 = smov (!%p230_p4, %s957_s24), 63 }
   0xd   : > { %519 = vmatpush.bf16.msra.mxu0 %v1082_v0  ;;  %1178 = vmatpush.bf16.msra.mxu1 %v1082_v0  ;;  %v1079_v3 = vld [vmem:[%s1412_s1 + $0x20] sm:$0xff]  ;;  %v1078_v4 = vld [vmem:[%s1412_s1 + $0x18] sm:$0xff]  ;;  %v1077_v5 = vld [vmem:[%s1412_s1 + $0x10] sm:$0xff]  ;;  %s958_s4 = sshll.u32 %s1420_s24, 2 }
   0xe   : > { %1179 = vmatpush.bf16.msra.mxu2 %v1082_v0  ;;  %1180 = vmatpush.bf16.msra.mxu3 %v1082_v0  ;;  %v1076_v6 = vld [vmem:[%s1412_s1 + $0x8] sm:$0xff]  ;;  %v1075_v7 = vld [vmem:[%s1412_s1] sm:$0xff]  ;;  %s1324_s9 = scalar_lea.vmem %s1411_s0, %s958_s4  ;;  %s1356_s17 = scalar_lea.vmem %s1414_s3, %s958_s4 }
   0xf   : > { %v1059_v8 = vld [vmem:[%s1324_s9] sm:$0xff]  ;;  %v1060_v12 = vld [vmem:[%s1324_s9 + $0x8] sm:$0xff]  ;;  %v1061_v16 = vld [vmem:[%s1324_s9 + $0x10] sm:$0xff] }
  0x10   : > { %v1063_v9 = vld [vmem:[%s1324_s9 + $0x20] sm:$0xff]  ;;  %v1064_v13 = vld [vmem:[%s1324_s9 + $0x28] sm:$0xff]  ;;  %v1065_v17 = vld [vmem:[%s1324_s9 + $0x30] sm:$0xff] }
  0x11   : > { %520 = vmatpush.bf16.msra.mxu0 %v1081_v1  ;;  %1181 = vmatpush.bf16.msra.mxu1 %v1081_v1  ;;  %v1067_v10 = vld [vmem:[%s1324_s9 + $0x40] sm:$0xff]  ;;  %v1068_v14 = vld [vmem:[%s1324_s9 + $0x48] sm:$0xff]  ;;  %v1069_v18 = vld [vmem:[%s1324_s9 + $0x50] sm:$0xff] }
  0x12   : > { %1182 = vmatpush.bf16.msra.mxu2 %v1081_v1  ;;  %1183 = vmatpush.bf16.msra.mxu3 %v1081_v1  ;;  %v1071_v11 = vld [vmem:[%s1324_s9 + $0x60] sm:$0xff]  ;;  %v1072_v15 = vld [vmem:[%s1324_s9 + $0x68] sm:$0xff]  ;;  %v1073_v19 = vld [vmem:[%s1324_s9 + $0x70] sm:$0xff] }
  0x13   : > { %v1062_v20 = vld [vmem:[%s1324_s9 + $0x18] sm:$0xff]  ;;  %v1345_v26 = vld [vmem:[%s1413_s2] ss:$0 sm:$0xff] }
  0x14   : > { %v1066_v21 = vld [vmem:[%s1324_s9 + $0x38] sm:$0xff] }
  0x15   : > { %521 = vmatpush.bf16.msra.mxu0 %v1080_v2  ;;  %1184 = vmatpush.bf16.msra.mxu1 %v1080_v2  ;;  %v1070_v22 = vld [vmem:[%s1324_s9 + $0x58] sm:$0xff] }
  0x16   : > { %1185 = vmatpush.bf16.msra.mxu2 %v1080_v2  ;;  %1186 = vmatpush.bf16.msra.mxu3 %v1080_v2  ;;  %v1074_v23 = vld [vmem:[%s1324_s9 + $0x78] sm:$0xff] }
  0x19   : > { %522 = vmatpush.bf16.msra.mxu0 %v1079_v3  ;;  %1187 = vmatpush.bf16.msra.mxu1 %v1079_v3 }
  0x1a   : > { %1188 = vmatpush.bf16.msra.mxu2 %v1079_v3  ;;  %1189 = vmatpush.bf16.msra.mxu3 %v1079_v3 }
  0x1d   : > { %523 = vmatpush.bf16.msra.mxu0 %v1078_v4  ;;  %1190 = vmatpush.bf16.msra.mxu1 %v1078_v4 }
  0x1e   : > { %1191 = vmatpush.bf16.msra.mxu2 %v1078_v4  ;;  %1192 = vmatpush.bf16.msra.mxu3 %v1078_v4 }
  0x21   : > { %524 = vmatpush.bf16.msra.mxu0 %v1077_v5  ;;  %1193 = vmatpush.bf16.msra.mxu1 %v1077_v5 }
  0x22   : > { %1194 = vmatpush.bf16.msra.mxu2 %v1077_v5  ;;  %1195 = vmatpush.bf16.msra.mxu3 %v1077_v5 }
  0x25   : > { %525 = vmatpush.bf16.msra.mxu0 %v1076_v6  ;;  %1196 = vmatpush.bf16.msra.mxu1 %v1076_v6 }
  0x26   : > { %1197 = vmatpush.bf16.msra.mxu2 %v1076_v6  ;;  %1198 = vmatpush.bf16.msra.mxu3 %v1076_v6 }
  0x29   : > { %526 = vmatpush.bf16.msra.mxu0 %v1075_v7  ;;  %1199 = vmatpush.bf16.msra.mxu1 %v1075_v7 }
  0x2a   : > { %1200 = vmatpush.bf16.msra.mxu2 %v1075_v7  ;;  %1201 = vmatpush.bf16.msra.mxu3 %v1075_v7 }
  0x2c   : > { %527 = vmatmul.bf16.vlgmr.msra.gmra.mxu0 %v1059_v8  ;;  %547 = vmatmul.bf16.vlgmr.msra.gmra.mxu1 %v1063_v9 }
  0x2d   : > { %567 = vmatmul.bf16.vlgmr.msra.gmra.mxu2 %v1067_v10  ;;  %587 = vmatmul.bf16.vlgmr.msra.gmra.mxu3 %v1071_v11 }
  0x3c   : > { %532 = vmatmul.bf16.gmra.mxu0 %v1060_v12  ;;  %552 = vmatmul.bf16.gmra.mxu1 %v1064_v13 }
  0x3d   : > { %572 = vmatmul.bf16.gmra.mxu2 %v1068_v14  ;;  %592 = vmatmul.bf16.gmra.mxu3 %v1072_v15 }
  0x4c   : > { %537 = vmatmul.bf16.gmra.mxu0 %v1061_v16  ;;  %557 = vmatmul.bf16.gmra.mxu1 %v1065_v17 }
  0x4d   : > { %577 = vmatmul.bf16.gmra.mxu2 %v1069_v18  ;;  %597 = vmatmul.bf16.gmra.mxu3 %v1073_v19 }
  0x5c   : > { %542 = vmatmul.bf16.gmra.mxu0 %v1062_v20  ;;  %562 = vmatmul.bf16.gmra.mxu1 %v1066_v21 }
  0x5d   : > { %582 = vmatmul.bf16.gmra.mxu2 %v1070_v22  ;;  %602 = vmatmul.bf16.gmra.mxu3 %v1074_v23 }
  0xa9   : > { %v528_v24 = vpop.f32.mrf.mxu0  ;;  %v548_v25 = vpop.f32.mrf.mxu1 }
  0xaa   : > { %v711_v27 = vadd.f32 %v1345_v26, %v528_v24  ;;  %v719_v28 = vadd.f32 %v1345_v26, %v548_v25 }
  0xac   : > { %v743_v35 = vmax.f32 %v711_v27, 0.0  ;;  %v751_v36 = vmax.f32 %v719_v28, 0.0 }
  0xb0   : > { %v568_v29 = vpop.f32.mrf.mxu2  ;;  %v588_v30 = vpop.f32.mrf.mxu3 }
  0xb1   : > { %v530_v31 = vpop.f32.mrf.mxu0  ;;  %v550_v32 = vpop.f32.mrf.mxu1  ;;  %v727_v41 = vadd.f32 %v1345_v26, %v568_v29  ;;  %v735_v42 = vadd.f32 %v1345_v26, %v588_v30 }
  0xb2   : > { %v712_v33 = vadd.f32 %v1345_v26, %v530_v31  ;;  %v720_v34 = vadd.f32 %v1345_v26, %v550_v32 }
  0xb3   : > { %v759_v49 = vmax.f32 %v727_v41, 0.0  ;;  %v767_v50 = vmax.f32 %v735_v42, 0.0 }
  0xb4   : > { %v744_v37 = vmax.f32 %v712_v33, 0.0  ;;  %v752_v38 = vmax.f32 %v720_v34, 0.0 }
  0xb6   : > { %v1086_v39 = vpack.c.bf16 %v744_v37, %v743_v35  ;;  %v1106_v40 = vpack.c.bf16 %v752_v38, %v751_v36 }
  0xb8   : > { %1087 = vst [vmem:[%s1356_s17] sm:$0xff] %v1086_v39   ;;  %v570_v43 = vpop.f32.mrf.mxu2  ;;  %v590_v44 = vpop.f32.mrf.mxu3 }
  0xb9   : > { %1166 = vst [vmem:[%s1356_s17 + $0x20] sm:$0xff] %v1106_v40   ;;  %v728_v45 = vadd.f32 %v1345_v26, %v570_v43  ;;  %v736_v46 = vadd.f32 %v1345_v26, %v590_v44  ;;  %v533_v47 = vpop.f32.mrf.mxu0  ;;  %v553_v48 = vpop.f32.mrf.mxu1 }
  0xba   : > { %v713_v55 = vadd.f32 %v1345_v26, %v533_v47  ;;  %v721_v56 = vadd.f32 %v1345_v26, %v553_v48 }
  0xbb   : > { %v760_v51 = vmax.f32 %v728_v45, 0.0  ;;  %v768_v52 = vmax.f32 %v736_v46, 0.0 }
  0xbc   : > { %v745_v63 = vmax.f32 %v713_v55, 0.0  ;;  %v753_v0 = vmax.f32 %v721_v56, 0.0 }
  0xbd   : > { %v1126_v53 = vpack.c.bf16 %v760_v51, %v759_v49  ;;  %v1146_v54 = vpack.c.bf16 %v768_v52, %v767_v50 }
  0xbf   : > { %1170 = vst [vmem:[%s1356_s17 + $0x40] sm:$0xff] %v1126_v53  }
  0xc0   : > { %1174 = vst [vmem:[%s1356_s17 + $0x60] sm:$0xff] %v1146_v54   ;;  %v573_v57 = vpop.f32.mrf.mxu2  ;;  %v593_v58 = vpop.f32.mrf.mxu3 }
  0xc1   : > { %v535_v59 = vpop.f32.mrf.mxu0  ;;  %v555_v60 = vpop.f32.mrf.mxu1  ;;  %v729_v5 = vadd.f32 %v1345_v26, %v573_v57  ;;  %v737_v6 = vadd.f32 %v1345_v26, %v593_v58 }
  0xc2   : > { %v714_v61 = vadd.f32 %v1345_v26, %v535_v59  ;;  %v722_v62 = vadd.f32 %v1345_v26, %v555_v60 }
  0xc3   : > { %v761_v13 = vmax.f32 %v729_v5, 0.0  ;;  %v769_v14 = vmax.f32 %v737_v6, 0.0 }
  0xc4   : > { %v746_v1 = vmax.f32 %v714_v61, 0.0  ;;  %v754_v2 = vmax.f32 %v722_v62, 0.0 }
  0xc6   : > { %v1091_v3 = vpack.c.bf16 %v746_v1, %v745_v63  ;;  %v1111_v4 = vpack.c.bf16 %v754_v2, %v753_v0 }
  0xc8   : > { %1163 = vst [vmem:[%s1356_s17 + $0x8] sm:$0xff] %v1091_v3   ;;  %v575_v7 = vpop.f32.mrf.mxu2  ;;  %v595_v8 = vpop.f32.mrf.mxu3 }
  0xc9   : > { %1167 = vst [vmem:[%s1356_s17 + $0x28] sm:$0xff] %v1111_v4   ;;  %v730_v9 = vadd.f32 %v1345_v26, %v575_v7  ;;  %v738_v10 = vadd.f32 %v1345_v26, %v595_v8  ;;  %v538_v11 = vpop.f32.mrf.mxu0  ;;  %v558_v12 = vpop.f32.mrf.mxu1 }
  0xca   : > { %v715_v19 = vadd.f32 %v1345_v26, %v538_v11  ;;  %v723_v20 = vadd.f32 %v1345_v26, %v558_v12 }
  0xcb   : > { %v762_v15 = vmax.f32 %v730_v9, 0.0  ;;  %v770_v16 = vmax.f32 %v738_v10, 0.0 }
  0xcc   : > { %v747_v28 = vmax.f32 %v715_v19, 0.0  ;;  %v755_v29 = vmax.f32 %v723_v20, 0.0 }
  0xcd   : > { %v1131_v17 = vpack.c.bf16 %v762_v15, %v761_v13  ;;  %v1151_v18 = vpack.c.bf16 %v770_v16, %v769_v14 }
  0xcf   : > { %1171 = vst [vmem:[%s1356_s17 + $0x48] sm:$0xff] %v1131_v17  }
  0xd0   : > { %1175 = vst [vmem:[%s1356_s17 + $0x68] sm:$0xff] %v1151_v18   ;;  %v578_v21 = vpop.f32.mrf.mxu2  ;;  %v598_v22 = vpop.f32.mrf.mxu3 }
  0xd1   : > { %v540_v23 = vpop.f32.mrf.mxu0  ;;  %v560_v24 = vpop.f32.mrf.mxu1  ;;  %v731_v34 = vadd.f32 %v1345_v26, %v578_v21  ;;  %v739_v35 = vadd.f32 %v1345_v26, %v598_v22 }
  0xd2   : > { %v716_v25 = vadd.f32 %v1345_v26, %v540_v23  ;;  %v724_v27 = vadd.f32 %v1345_v26, %v560_v24 }
  0xd3   : > { %v763_v42 = vmax.f32 %v731_v34, 0.0  ;;  %v771_v43 = vmax.f32 %v739_v35, 0.0 }
  0xd4   : > { %v748_v30 = vmax.f32 %v716_v25, 0.0  ;;  %v756_v31 = vmax.f32 %v724_v27, 0.0 }
  0xd6   : > { %v1096_v32 = vpack.c.bf16 %v748_v30, %v747_v28  ;;  %v1116_v33 = vpack.c.bf16 %v756_v31, %v755_v29 }
  0xd8   : > { %1164 = vst [vmem:[%s1356_s17 + $0x10] sm:$0xff] %v1096_v32   ;;  %v580_v36 = vpop.f32.mrf.mxu2  ;;  %v600_v37 = vpop.f32.mrf.mxu3 }
  0xd9   : > { %1168 = vst [vmem:[%s1356_s17 + $0x30] sm:$0xff] %v1116_v33   ;;  %v732_v38 = vadd.f32 %v1345_v26, %v580_v36  ;;  %v740_v39 = vadd.f32 %v1345_v26, %v600_v37  ;;  %v543_v40 = vpop.f32.mrf.mxu0  ;;  %v563_v41 = vpop.f32.mrf.mxu1 }
  0xda   : > { %v717_v48 = vadd.f32 %v1345_v26, %v543_v40  ;;  %v725_v49 = vadd.f32 %v1345_v26, %v563_v41 }
  0xdb   : > { %v764_v44 = vmax.f32 %v732_v38, 0.0  ;;  %v772_v45 = vmax.f32 %v740_v39, 0.0 }
  0xdc   : > { %v749_v56 = vmax.f32 %v717_v48, 0.0  ;;  %v757_v57 = vmax.f32 %v725_v49, 0.0 }
  0xdd   : > { %v1136_v46 = vpack.c.bf16 %v764_v44, %v763_v42  ;;  %v1156_v47 = vpack.c.bf16 %v772_v45, %v771_v43 }
  0xdf   : > { %1172 = vst [vmem:[%s1356_s17 + $0x50] sm:$0xff] %v1136_v46  }
  0xe0   : > { %1176 = vst [vmem:[%s1356_s17 + $0x70] sm:$0xff] %v1156_v47   ;;  %v583_v50 = vpop.f32.mrf.mxu2  ;;  %v603_v51 = vpop.f32.mrf.mxu3 }
  0xe1   : > { %v545_v52 = vpop.f32.mrf.mxu0  ;;  %v565_v53 = vpop.f32.mrf.mxu1  ;;  %v733_v62 = vadd.f32 %v1345_v26, %v583_v50  ;;  %v741_v63 = vadd.f32 %v1345_v26, %v603_v51 }
  0xe2   : > { %v718_v54 = vadd.f32 %v1345_v26, %v545_v52  ;;  %v726_v55 = vadd.f32 %v1345_v26, %v565_v53 }
  0xe3   : > { %v765_v4 = vmax.f32 %v733_v62, 0.0  ;;  %v773_v5 = vmax.f32 %v741_v63, 0.0 }
  0xe4   : > { %v750_v58 = vmax.f32 %v718_v54, 0.0  ;;  %v758_v59 = vmax.f32 %v726_v55, 0.0 }
  0xe6   : > { %v1101_v60 = vpack.c.bf16 %v750_v58, %v749_v56  ;;  %v1121_v61 = vpack.c.bf16 %v758_v59, %v757_v57 }
  0xe8   : > { %1165 = vst [vmem:[%s1356_s17 + $0x18] sm:$0xff] %v1101_v60   ;;  %v585_v0 = vpop.f32.mrf.mxu2  ;;  %v605_v1 = vpop.f32.mrf.mxu3 }
  0xe9   : > { %1169 = vst [vmem:[%s1356_s17 + $0x38] sm:$0xff] %v1121_v61   ;;  %v734_v2 = vadd.f32 %v1345_v26, %v585_v0  ;;  %v742_v3 = vadd.f32 %v1345_v26, %v605_v1 }
  0xeb   : > { %v766_v6 = vmax.f32 %v734_v2, 0.0  ;;  %v774_v7 = vmax.f32 %v742_v3, 0.0 }
  0xed   : > { %v1141_v8 = vpack.c.bf16 %v766_v6, %v765_v4  ;;  %v1161_v9 = vpack.c.bf16 %v774_v7, %v773_v5 }
  0xef   : > { %1173 = vst [vmem:[%s1356_s17 + $0x58] sm:$0xff] %v1141_v8  }
  0xf0   : > { %1177 = vst [vmem:[%s1356_s17 + $0x78] sm:$0xff] %v1161_v9  }
  0xf1 PF: > { %s13_s14 = sadd.s32 1, %s1249_s14   ;;  %s1415_s12 = smov %s1245_s13 }
  0xf2   : > { %p10_p5 = scmp.ge.s32.totalorder %s13_s14, 4   ;;  %s1416_s13 = smov %s1418_s15 }
  0xf4   :  { %12 = sbr.rel (!%p10_p5) target bundleno = 2 (0x2), region = 76 }

// kernel: bottleneck_forward.5
= control target key start
LH: loop header
LB: loop body
LE: loop exit
PB: predicated region body
PF: predicated region fallthrough
CT: control target
= control target key end

     0   :  { %s4315_s12 = smov 0   ;;  %s4317_s13 = smov 0   ;;  %s5172_s0 = inlined_call_operand.vmem [shape: bf16[2,18,18,128], index: 0, kind: input, shape index: {}]   ;;  %s5173_s1 = inlined_call_operand.vmem [shape: bf16[3,384,128], index: 1, kind: input, shape index: {}]   ;;  %s5174_s2 = inlined_call_operand.vmem [shape: f32[1,128], index: 2, kind: input, shape index: {}]   ;;  %s5175_s3 = inlined_call_operand.vmem [shape: bf16[512,128], index: 3, kind: output, shape index: {}]  }
   0x1   :  { %s4319_s14 = smov 0  }
   0x2 LB: > { %s32_s15 = sadd.s32 1, %s4289_s13  ;;  %p3308_p0 = scmp.ge.s32.totalorder %s4293_s14, 1  ;;  %s4293_s14 = sphi %s4319_s14, %s13_s14   ;;  %s4289_s13 = sphi %s4317_s13, %s5211_s13   ;;  %s4285_s12 = sphi %s4315_s12, %s5210_s12  }
   0x3   : > { %p34_p1 = scmp.ge.s32.totalorder %s32_s15, 2  ;;  %p177_p2 = scmp.lt.s32.totalorder %s4293_s14, 3 }
   0x5   : > { %s5213_s15 = smov (%p34_p1, %s32_s15), 0  ;;  %p178_p3 = pnand %p3308_p0, %p177_p2 }
   0x7   : > { %181 = sbr.rel (%p178_p3) target bundleno = 758 (0x2f6), region = 32 }
   0xc   : > { %v4049_v0 = vld [vmem:[%s5173_s1 + $0xf8] sm:$0xff]  ;;  %v4048_v1 = vld [vmem:[%s5173_s1 + $0xf0] sm:$0xff]  ;;  %v4047_v2 = vld [vmem:[%s5173_s1 + $0xe8] sm:$0xff]  ;;  %p212_p4 = scmp.lt.s32.totalorder %s4285_s12, 1  ;;  %vm431_vm0 = vsmask.f32 7424 }
   0xd   : > { %1414 = vmatpush.bf16.msra.mxu0 %v4049_v0  ;;  %4201 = vmatpush.bf16.msra.mxu1 %v4049_v0  ;;  %v4046_v3 = vld [vmem:[%s5173_s1 + $0xe0] sm:$0xff]  ;;  %v4045_v4 = vld [vmem:[%s5173_s1 + $0xd8] sm:$0xff]  ;;  %v4044_v5 = vld [vmem:[%s5173_s1 + $0xd0] sm:$0xff]  ;;  %vm640_vm1 = vcmask 1046528   ;;  %s3310_s5 = sshll.u32 %s4285_s12, 5 }
   0xe   : > { %4202 = vmatpush.bf16.msra.mxu2 %v4049_v0  ;;  %4203 = vmatpush.bf16.msra.mxu3 %v4049_v0  ;;  %s213_s28 = scalar_select %p212_p4, %s4285_s12, 1  ;;  %v4043_v6 = vld [vmem:[%s5173_s1 + $0xc8] sm:$0xff]  ;;  %v4042_v7 = vld [vmem:[%s5173_s1 + $0xc0] sm:$0xff]  ;;  %v4065_v8 = vld [vmem:[%s5173_s1 + $0x178] sm:$0xff] }
   0xf   : > { %v4009_v9 = vld [vmem:[%s5173_s1 + $0x38] sm:$0xff]  ;;  %v4064_v16 = vld [vmem:[%s5173_s1 + $0x170] sm:$0xff]  ;;  %v4063_v20 = vld [vmem:[%s5173_s1 + $0x168] sm:$0xff]  ;;  %p5023_p5 = scmp.lt.s32.totalorder %s3310_s5, 63 }
  0x10   : > { %s4225_s4 = smul.u32 216, %s213_s28  ;;  %v4057_v14 = vld [vmem:[%s5173_s1 + $0x138] sm:$0xff]  ;;  %v4008_v17 = vld [vmem:[%s5173_s1 + $0x30] sm:$0xff]  ;;  %v4007_v21 = vld [vmem:[%s5173_s1 + $0x28] sm:$0xff] }
  0x11   : > { %1415 = vmatpush.bf16.msra.mxu0 %v4048_v1  ;;  %4204 = vmatpush.bf16.msra.mxu1 %v4048_v1  ;;  %v4017_v15 = vld [vmem:[%s5173_s1 + $0x78] sm:$0xff]  ;;  %v4056_v18 = vld [vmem:[%s5173_s1 + $0x130] sm:$0xff]  ;;  %v4055_v22 = vld [vmem:[%s5173_s1 + $0x128] sm:$0xff]  ;;  %s5215_s5 = smov (!%p5023_p5, %s3310_s5), 63 }
  0x12   : > { %4205 = vmatpush.bf16.msra.mxu2 %v4048_v1  ;;  %4206 = vmatpush.bf16.msra.mxu3 %v4048_v1  ;;  %s4364_s9 = scalar_lea.vmem %s5172_s0, %s4225_s4  ;;  %v4016_v19 = vld [vmem:[%s5173_s1 + $0x70] sm:$0xff]  ;;  %v4015_v23 = vld [vmem:[%s5173_s1 + $0x68] sm:$0xff]  ;;  %v4062_v24 = vld [vmem:[%s5173_s1 + $0x160] sm:$0xff]  ;;  %s3311_s8 = sshll.u32 %s5215_s5, 2 }
  0x13   : > { %v4373_v10 = vld [vmem:[%s4364_s9 + $0xc] sm:$0xff]  ;;  %v4376_v11 = vld [vmem:[%s4364_s9 + $0x3c] sm:$0xff]  ;;  %v4489_v48 = vld [vmem:[%s4364_s9 + $0x24] sm:$0xff]  ;;  %s5045_s16 = scalar_lea.vmem %s5175_s3, %s3311_s8 }
  0x14   : > { %v4379_v12 = vld [vmem:[%s4364_s9 + $0x6c] sm:$0xff]  ;;  %v4038_v13 = vld [vmem:[%s4364_s9 + $0x9c] sm:$0xff]  ;;  %v4492_v49 = vld [vmem:[%s4364_s9 + $0x54] sm:$0xff]  ;;  %v952_v1 = vshll.u32 %v4373_v10, 16 }
  0x15   : > { %1416 = vmatpush.bf16.msra.mxu0 %v4047_v2  ;;  %4207 = vmatpush.bf16.msra.mxu1 %v4047_v2  ;;  %v4006_v25 = vld [vmem:[%s5173_s1 + $0x20] sm:$0xff]  ;;  %v4061_v28 = vld [vmem:[%s5173_s1 + $0x158] sm:$0xff]  ;;  %v4437_v31 = vld [vmem:[%s4364_s9 + $0x48] sm:$0xff] }
  0x16   : > { %4208 = vmatpush.bf16.msra.mxu2 %v4047_v2  ;;  %4209 = vmatpush.bf16.msra.mxu3 %v4047_v2  ;;  %v4054_v26 = vld [vmem:[%s5173_s1 + $0x120] sm:$0xff]  ;;  %v4005_v29 = vld [vmem:[%s5173_s1 + $0x18] sm:$0xff]  ;;  %v4039_v33 = vld [vmem:[%s4364_s9 + $0xa8] sm:$0xff] }
  0x17   : > { %v4014_v27 = vld [vmem:[%s5173_s1 + $0x60] sm:$0xff]  ;;  %v4434_v30 = vld [vmem:[%s4364_s9 + $0x18] sm:$0xff]  ;;  %v4060_v36 = vld [vmem:[%s5173_s1 + $0x150] sm:$0xff] }
  0x18   : > { %v4440_v32 = vld [vmem:[%s4364_s9 + $0x78] sm:$0xff]  ;;  %v4004_v37 = vld [vmem:[%s5173_s1 + $0x10] sm:$0xff]  ;;  %v4059_v40 = vld [vmem:[%s5173_s1 + $0x148] sm:$0xff] }
  0x19   : > { %1417 = vmatpush.bf16.msra.mxu0 %v4046_v3  ;;  %4210 = vmatpush.bf16.msra.mxu1 %v4046_v3  ;;  %v4053_v34 = vld [vmem:[%s5173_s1 + $0x118] sm:$0xff]  ;;  %v4052_v38 = vld [vmem:[%s5173_s1 + $0x110] sm:$0xff]  ;;  %v4003_v41 = vld [vmem:[%s5173_s1 + $0x8] sm:$0xff] }
  0x1a   : > { %4211 = vmatpush.bf16.msra.mxu2 %v4046_v3  ;;  %4212 = vmatpush.bf16.msra.mxu3 %v4046_v3  ;;  %v4013_v35 = vld [vmem:[%s5173_s1 + $0x58] sm:$0xff]  ;;  %v4012_v39 = vld [vmem:[%s5173_s1 + $0x50] sm:$0xff]  ;;  %v4051_v42 = vld [vmem:[%s5173_s1 + $0x108] sm:$0xff] }
  0x1b   : > { %v4011_v43 = vld [vmem:[%s5173_s1 + $0x48] sm:$0xff]  ;;  %v4058_v44 = vld [vmem:[%s5173_s1 + $0x140] sm:$0xff]  ;;  %v4040_v51 = vld [vmem:[%s4364_s9 + $0xb4] sm:$0xff] }
  0x1c   : > { %v4002_v45 = vld [vmem:[%s5173_s1] sm:$0xff]  ;;  %v4089_v52 = vld [vmem:[%s5173_s1 + $0x1b8] sm:$0xff]  ;;  %v3378_v56 = vld [vmem:[%s4364_s9 + $0x14] sm:$0x1] }
  0x1d   : > { %1418 = vmatpush.bf16.msra.mxu0 %v4045_v4  ;;  %4213 = vmatpush.bf16.msra.mxu1 %v4045_v4  ;;  %v4050_v46 = vld [vmem:[%s5173_s1 + $0x100] sm:$0xff]  ;;  %v4097_v53 = vld [vmem:[%s5173_s1 + $0x1f8] sm:$0xff]  ;;  %v241_v57 = vld [vmem:[%s4364_s9 + $0x8] sm:$0x1]  ;;  %v917_v62 = vunpack.c.l.b16 %v3378_v56 }
  0x1e   : > { %4214 = vmatpush.bf16.msra.mxu2 %v4045_v4  ;;  %4215 = vmatpush.bf16.msra.mxu3 %v4045_v4  ;;  %v4010_v47 = vld [vmem:[%s5173_s1 + $0x40] sm:$0xff]  ;;  %v4025_v54 = vld [vmem:[%s5173_s1 + $0xb8] sm:$0xff]  ;;  %v4516_v58 = vld [vmem:[%s4364_s9 + $0x30] sm:$0xff]  ;;  %v399_v0 = vunpack.c.l.b16 %v241_v57 }
  0x1f   : > { %v4495_v50 = vld [vmem:[%s4364_s9 + $0x84] sm:$0xff]  ;;  %v4105_v55 = vld [vmem:[%s5173_s1 + $0x238] sm:$0xff]  ;;  %v4522_v60 = vld [vmem:[%s4364_s9 + $0x90] sm:$0xff]  ;;  %v933_v2 = vpack.c.b16 %v917_v62, %v917_v62 }
  0x20   : > { %v4519_v59 = vld [vmem:[%s4364_s9 + $0x60] sm:$0xff]  ;;  %v4530_v3 = vpack.c.b16 %v399_v0, %v399_v0  ;;  %v976_v0 = vshll.u32 %v4489_v48, 16 }
  0x21   : > { %1419 = vmatpush.bf16.msra.mxu0 %v4044_v5  ;;  %4216 = vmatpush.bf16.msra.mxu1 %v4044_v5  ;;  %v4041_v61 = vld [vmem:[%s4364_s9 + $0xc0] sm:$0xff] }
  0x22   : > { %4217 = vmatpush.bf16.msra.mxu2 %v4044_v5  ;;  %4218 = vmatpush.bf16.msra.mxu3 %v4044_v5  ;;  %v3986_v63 = vld [vmem:[%s4364_s9] sm:$0xff]  ;;  %v950_v5 = vshrl.u32 %v4373_v10, 16 }
  0x23   : > { %v435_v4 = vshll.u32 %v3986_v63, 16 }
  0x25   : > { %1420 = vmatpush.bf16.msra.mxu0 %v4043_v6  ;;  %4219 = vmatpush.bf16.msra.mxu1 %v4043_v6 }
  0x26   : > { %4220 = vmatpush.bf16.msra.mxu2 %v4043_v6  ;;  %4221 = vmatpush.bf16.msra.mxu3 %v4043_v6  ;;  %v954_v6 = vrot.slane %v952_v1, 1 }
  0x29   : > { %1421 = vmatpush.bf16.msra.mxu0 %v4042_v7  ;;  %4222 = vmatpush.bf16.msra.mxu1 %v4042_v7 }
  0x2a   : > { %4223 = vmatpush.bf16.msra.mxu2 %v4042_v7  ;;  %4224 = vmatpush.bf16.msra.mxu3 %v4042_v7  ;;  %v957_v7 = vshll.u32 %v933_v2, 16 }
  0x2c   : > { %1422 = vmatmul.bf16.vlgmr.msra.gmra.mxu0 %v4373_v10  ;;  %1442 = vmatmul.bf16.vlgmr.msra.gmra.mxu1 %v4376_v11 }
  0x2d   : > { %1462 = vmatmul.bf16.vlgmr.msra.gmra.mxu2 %v4379_v12  ;;  %1482 = vmatmul.bf16.vlgmr.msra.gmra.mxu3 %v4038_v13  ;;  %v440_v13 = vshll.u32 %v4530_v3, 16 }
  0x2e   : > { %1592 = vmatpush.bf16.msrb.mxu2 %v4065_v8  ;;  %1825 = vmatpush.bf16.msrb.mxu3 %v4009_v9  ;;  %v433_v8 = vshrl.u32 %v3986_v63, 16  ;;  %v437_v9 = vrot.slane %v435_v4, 1  ;;  %v974_v4 = vshrl.u32 %v4489_v48, 16 }
  0x2f   : > { %1503 = vmatpush.bf16.msrb.mxu1 %v4057_v14  ;;  %1914 = vmatpush.bf16.msrb.mxu0 %v4017_v15  ;;  %v955_v14 = vor.u32 %v954_v6, %v950_v5  ;;  %v959_v15 = vrot.slane %v957_v7, 1  ;;  %v978_v5 = vrot.slane %v976_v0, 1 }
  0x32   : > { %1593 = vmatpush.bf16.msrb.mxu2 %v4064_v16  ;;  %1826 = vmatpush.bf16.msrb.mxu3 %v4008_v17  ;;  %v438_v16 = vor.u32 %v437_v9, %v433_v8  ;;  %v442_v17 = vrot.slane %v440_v13, 1  ;;  %v979_v13 = vor.u32 %v978_v5, %v974_v4 }
  0x33   : > { %1504 = vmatpush.bf16.msrb.mxu1 %v4056_v18  ;;  %1915 = vmatpush.bf16.msrb.mxu0 %v4016_v19  ;;  %v1157_v18 = vrot.slane %v4373_v10, 1  ;;  %v1158_v19 = vrot.slane %v933_v2, 1 }
  0x36   : > { %1594 = vmatpush.bf16.msrb.mxu2 %v4063_v20  ;;  %1827 = vmatpush.bf16.msrb.mxu3 %v4007_v21  ;;  %v3381_v20 = vld [vmem:[%s4364_s9 + $0x20] sm:$0x1]  ;;  %v244_v21 = vld [vmem:[%s4364_s9 + $0x14] sm:$0x1] }
  0x37   : > { %1505 = vmatpush.bf16.msrb.mxu1 %v4055_v22  ;;  %1916 = vmatpush.bf16.msrb.mxu0 %v4015_v23  ;;  %v960_v22 = vsel %vm431_vm0, %v955_v14, %v959_v15  ;;  %v443_v23 = vsel %vm431_vm0, %v438_v16, %v442_v17  ;;  %v1163_v17 = vrot.slane %v4489_v48, 1 }
  0x3a   : > { %1595 = vmatpush.bf16.msrb.mxu2 %v4062_v24  ;;  %1828 = vmatpush.bf16.msrb.mxu3 %v4006_v25  ;;  %v918_v24 = vunpack.c.l.b16 %v3381_v20  ;;  %v3987_v25 = vld [vmem:[%s4364_s9 + $0xc] sm:$0xff] }
  0x3b   : > { %1506 = vmatpush.bf16.msrb.mxu1 %v4054_v26  ;;  %1917 = vmatpush.bf16.msrb.mxu0 %v4014_v27  ;;  %v400_v26 = vunpack.c.l.b16 %v244_v21  ;;  %v1159_v27 = vsel %vm640_vm1, %v1157_v18, %v1158_v19  ;;  %v3387_v19 = vld [vmem:[%s4364_s9 + $0x38] sm:$0x1]  ;;  %v250_v20 = vld [vmem:[%s4364_s9 + $0x2c] sm:$0x1] }
  0x3c   : > { %1427 = vmatmul.bf16.gmra.mxu0 %v4434_v30  ;;  %1447 = vmatmul.bf16.gmra.mxu1 %v4437_v31  ;;  %v934_v10 = vpack.c.b16 %v918_v24, %v918_v24  ;;  %v3989_v24 = vld [vmem:[%s4364_s9 + $0x24] sm:$0xff] }
  0x3d   : > { %1467 = vmatmul.bf16.gmra.mxu2 %v4440_v32  ;;  %1487 = vmatmul.bf16.gmra.mxu3 %v4039_v33  ;;  %v447_v33 = vshll.u32 %v3987_v25, 16 }
  0x3e   : > { %1596 = vmatpush.bf16.msrb.mxu2 %v4061_v28  ;;  %1829 = vmatpush.bf16.msrb.mxu3 %v4005_v29  ;;  %v964_v28 = vshll.u32 %v4434_v30, 16  ;;  %v4542_v29 = vpack.c.b16 %v400_v26, %v400_v26 }
  0x3f   : > { %1507 = vmatpush.bf16.msrb.mxu1 %v4053_v34  ;;  %1918 = vmatpush.bf16.msrb.mxu0 %v4013_v35  ;;  %v4088_v34 = vld [vmem:[%s5173_s1 + $0x1b0] sm:$0xff] }
  0x40   : > { %v4096_v35 = vld [vmem:[%s5173_s1 + $0x1f0] sm:$0xff] }
  0x42   : > { %1597 = vmatpush.bf16.msrb.mxu2 %v4060_v36  ;;  %1830 = vmatpush.bf16.msrb.mxu3 %v4004_v37  ;;  %v4024_v36 = vld [vmem:[%s5173_s1 + $0xb0] sm:$0xff] }
  0x43   : > { %1508 = vmatpush.bf16.msrb.mxu1 %v4052_v38  ;;  %1919 = vmatpush.bf16.msrb.mxu0 %v4012_v39  ;;  %v4104_v37 = vld [vmem:[%s5173_s1 + $0x230] sm:$0xff]  ;;  %v962_v38 = vshrl.u32 %v4434_v30, 16  ;;  %v966_v39 = vrot.slane %v964_v28, 1 }
  0x46   : > { %1598 = vmatpush.bf16.msrb.mxu2 %v4059_v40  ;;  %1831 = vmatpush.bf16.msrb.mxu3 %v4003_v41  ;;  %v969_v40 = vshll.u32 %v934_v10, 16  ;;  %v445_v41 = vshrl.u32 %v3987_v25, 16 }
  0x47   : > { %1509 = vmatpush.bf16.msrb.mxu1 %v4051_v42  ;;  %1920 = vmatpush.bf16.msrb.mxu0 %v4011_v43  ;;  %v449_v42 = vrot.slane %v447_v33, 1  ;;  %v452_v43 = vshll.u32 %v4542_v29, 16  ;;  %v4087_v33 = vld [vmem:[%s5173_s1 + $0x1a8] sm:$0xff] }
  0x4a   : > { %1599 = vmatpush.bf16.msrb.mxu2 %v4058_v44  ;;  %1832 = vmatpush.bf16.msrb.mxu3 %v4002_v45  ;;  %v967_v44 = vor.u32 %v966_v39, %v962_v38  ;;  %v971_v45 = vrot.slane %v969_v40, 1  ;;  %v469_v38 = vshrl.u32 %v3989_v24, 16 }
  0x4b   : > { %1510 = vmatpush.bf16.msrb.mxu1 %v4050_v46  ;;  %1921 = vmatpush.bf16.msrb.mxu0 %v4010_v47  ;;  %v450_v46 = vor.u32 %v449_v42, %v445_v41  ;;  %v454_v47 = vrot.slane %v452_v43, 1  ;;  %v4023_v41 = vld [vmem:[%s5173_s1 + $0xa8] sm:$0xff] }
  0x4c   : > { %1432 = vmatmul.bf16.gmra.mxu0 %v4489_v48  ;;  %1452 = vmatmul.bf16.gmra.mxu1 %v4492_v49  ;;  %v4103_v42 = vld [vmem:[%s5173_s1 + $0x228] sm:$0xff] }
  0x4d   : > { %1472 = vmatmul.bf16.gmra.mxu2 %v4495_v50  ;;  %1492 = vmatmul.bf16.gmra.mxu3 %v4040_v51  ;;  %v1160_v51 = vrot.slane %v4434_v30, 1  ;;  %v455_v56 = vsel %vm431_vm0, %v450_v46, %v454_v47  ;;  %v1166_v47 = vrot.slane %v4516_v58, 1 }
  0x4e   : > { %2753 = vmatpush.bf16.msra.mxu2 %v4089_v52  ;;  %2842 = vmatpush.bf16.msra.mxu3 %v4097_v53  ;;  %v1161_v52 = vrot.slane %v934_v10, 1  ;;  %v3384_v53 = vld [vmem:[%s4364_s9 + $0x2c] sm:$0x1]  ;;  %v471_v10 = vshll.u32 %v3989_v24, 16 }
  0x4f   : > { %2003 = vmatpush.bf16.msra.mxu1 %v4025_v54  ;;  %2931 = vmatpush.bf16.msra.mxu0 %v4105_v55  ;;  %v247_v54 = vld [vmem:[%s4364_s9 + $0x20] sm:$0x1]  ;;  %v972_v55 = vsel %vm431_vm0, %v967_v44, %v971_v45  ;;  %v919_v57 = vunpack.c.l.b16 %v3384_v53  ;;  %v253_v53 = vld [vmem:[%s4364_s9 + $0x38] sm:$0x1] }
  0x50   : > { %v401_v62 = vunpack.c.l.b16 %v247_v54  ;;  %v473_v39 = vrot.slane %v471_v10, 1 }
  0x51   : > { %v935_v30 = vpack.c.b16 %v919_v57, %v919_v57  ;;  %v3990_v57 = vld [vmem:[%s4364_s9 + $0x30] sm:$0xff] }
  0x52   : > { %2754 = vmatpush.bf16.msra.mxu2 %v4088_v34  ;;  %2843 = vmatpush.bf16.msra.mxu3 %v4096_v35  ;;  %v4566_v1 = vpack.c.b16 %v401_v62, %v401_v62  ;;  %v4095_v34 = vld [vmem:[%s5173_s1 + $0x1e8] sm:$0xff]  ;;  %v986_v35 = vshrl.u32 %v4516_v58, 16  ;;  %v474_v45 = vor.u32 %v473_v39, %v469_v38  ;;  %v1010_v38 = vshrl.u32 %v4437_v31, 16 }
  0x53   : > { %2004 = vmatpush.bf16.msra.mxu1 %v4024_v36  ;;  %2932 = vmatpush.bf16.msra.mxu0 %v4104_v37  ;;  %v981_v6 = vshll.u32 %v935_v30, 16  ;;  %v1164_v18 = vrot.slane %v935_v30, 1  ;;  %v483_v30 = vshll.u32 %v3990_v57, 16 }
  0x54   : > { %v464_v9 = vshll.u32 %v4566_v1, 16 }
  0x55   : > { %v983_v14 = vrot.slane %v981_v6, 1  ;;  %v1165_v26 = vsel %vm640_vm1, %v1163_v17, %v1164_v18  ;;  %v481_v6 = vshrl.u32 %v3990_v57, 16  ;;  %v3393_v18 = vld [vmem:[%s4364_s9 + $0x50] sm:$0x1] }
  0x56   : > { %v466_v16 = vrot.slane %v464_v9, 1  ;;  %2755 = vmatpush.bf16.msra.mxu2 %v4087_v33  ;;  %2844 = vmatpush.bf16.msra.mxu3 %v4095_v34  ;;  %v4086_v34 = vld [vmem:[%s5173_s1 + $0x1a0] sm:$0xff] }
  0x57   : > { %v984_v21 = vsel %vm431_vm0, %v979_v13, %v983_v14  ;;  %2005 = vmatpush.bf16.msra.mxu1 %v4023_v41  ;;  %2933 = vmatpush.bf16.msra.mxu0 %v4103_v42 }
  0x5a   : > { %2756 = vmatpush.bf16.msra.mxu2 %v4086_v34  ;;  %v1175_v34 = vrot.slane %v4492_v49, 1 }
  0x5c   : > { %1437 = vmatmul.bf16.gmra.mxu0 %v4516_v58  ;;  %1457 = vmatmul.bf16.gmra.mxu1 %v4519_v59 }
  0x5d   : > { %1477 = vmatmul.bf16.gmra.mxu2 %v4522_v60  ;;  %1497 = vmatmul.bf16.gmra.mxu3 %v4041_v61  ;;  %v3988_v61 = vld [vmem:[%s4364_s9 + $0x18] sm:$0xff] }
  0x5e   : > { %v459_v2 = vshll.u32 %v3988_v61, 16  ;;  %v457_v7 = vshrl.u32 %v3988_v61, 16 }
  0x60   : > { %v461_v8 = vrot.slane %v459_v2, 1  ;;  %v998_v2 = vshrl.u32 %v4376_v11, 16 }
  0x62   : > { %v462_v15 = vor.u32 %v461_v8, %v457_v7  ;;  %v485_v7 = vrot.slane %v483_v30, 1 }
  0x64   : > { %v486_v14 = vor.u32 %v485_v7, %v481_v6  ;;  %v3992_v6 = vld [vmem:[%s4364_s9 + $0x48] sm:$0xff] }
  0x6c   : > { %1511 = vmatmul.bf16.vlgmr.msrb.gmra.mxu1 %v960_v22  ;;  %1922 = vmatmul.bf16.vlgmr.msrb.gmra.mxu0 %v443_v23  ;;  %v467_v22 = vsel %vm431_vm0, %v462_v15, %v466_v16  ;;  %v920_v23 = vunpack.c.l.b16 %v3387_v19  ;;  %v1169_v16 = vrot.slane %v4376_v11, 1  ;;  %v256_v19 = vld [vmem:[%s4364_s9 + $0x44] sm:$0x1] }
  0x6d   : > { %1600 = vmatmul.bf16.vlgmr.msrb.gmra.mxu2 %v1159_v27  ;;  %1833 = vmatmul.bf16.vlgmr.msrb.gmra.mxu3 %v3986_v63  ;;  %v1162_v63 = vsel %vm640_vm1, %v1160_v51, %v1161_v52  ;;  %v988_v27 = vshll.u32 %v4516_v58, 16  ;;  %v3390_v52 = vld [vmem:[%s4364_s9 + $0x44] sm:$0x1] }
  0x6e   : > { %v936_v28 = vpack.c.b16 %v920_v23, %v920_v23 }
  0x6f   : > { %v990_v36 = vrot.slane %v988_v27, 1 }
  0x70   : > { %v993_v37 = vshll.u32 %v936_v28, 16  ;;  %v1167_v51 = vrot.slane %v936_v28, 1 }
  0x71   : > { %v991_v43 = vor.u32 %v990_v36, %v986_v35  ;;  %v4094_v35 = vld [vmem:[%s5173_s1 + $0x1e0] sm:$0xff] }
  0x72   : > { %v995_v44 = vrot.slane %v993_v37, 1  ;;  %v1168_v62 = vsel %vm640_vm1, %v1166_v47, %v1167_v51  ;;  %2845 = vmatpush.bf16.msra.mxu3 %v4094_v35  ;;  %v4102_v47 = vld [vmem:[%s5173_s1 + $0x220] sm:$0xff] }
  0x73   : > { %2934 = vmatpush.bf16.msra.mxu0 %v4102_v47 }
  0x74   : > { %v996_v54 = vsel %vm431_vm0, %v991_v43, %v995_v44 }
  0x7c   : > { %1516 = vmatmul.bf16.gmra.mxu1 %v972_v55  ;;  %1927 = vmatmul.bf16.gmra.mxu0 %v455_v56  ;;  %v921_v56 = vunpack.c.l.b16 %v3390_v52 }
  0x7d   : > { %1605 = vmatmul.bf16.gmra.mxu2 %v1162_v63  ;;  %1838 = vmatmul.bf16.gmra.mxu3 %v3987_v25  ;;  %v402_v25 = vunpack.c.l.b16 %v250_v20  ;;  %v1000_v63 = vshll.u32 %v4376_v11, 16  ;;  %v1012_v11 = vshll.u32 %v4437_v31, 16 }
  0x7e   : > { %v937_v58 = vpack.c.b16 %v921_v56, %v921_v56 }
  0x7f   : > { %v4578_v48 = vpack.c.b16 %v402_v25, %v402_v25  ;;  %v1002_v4 = vrot.slane %v1000_v63, 1  ;;  %v3991_v25 = vld [vmem:[%s4364_s9 + $0x3c] sm:$0xff]  ;;  %v1014_v39 = vrot.slane %v1012_v11, 1 }
  0x80   : > { %v1005_v5 = vshll.u32 %v937_v58, 16  ;;  %v1170_v17 = vrot.slane %v937_v58, 1  ;;  %v495_v33 = vshll.u32 %v3991_v25, 16  ;;  %v493_v43 = vshrl.u32 %v3991_v25, 16 }
  0x81   : > { %v476_v40 = vshll.u32 %v4578_v48, 16  ;;  %v1003_v9 = vor.u32 %v1002_v4, %v998_v2  ;;  %v1015_v51 = vor.u32 %v1014_v39, %v1010_v38  ;;  %v3399_v38 = vld [vmem:[%s4364_s9 + $0x68] sm:$0x1]  ;;  %v262_v39 = vld [vmem:[%s4364_s9 + $0x5c] sm:$0x1] }
  0x82   : > { %v1007_v13 = vrot.slane %v1005_v5, 1  ;;  %v1171_v27 = vsel %vm640_vm1, %v1169_v16, %v1170_v17  ;;  %v497_v44 = vrot.slane %v495_v33, 1  ;;  %v1022_v17 = vshrl.u32 %v4492_v49, 16 }
  0x83   : > { %v478_v46 = vrot.slane %v476_v40, 1 }
  0x85   : > { %v479_v55 = vsel %vm431_vm0, %v474_v45, %v478_v46  ;;  %v4022_v46 = vld [vmem:[%s5173_s1 + $0xa0] sm:$0xff] }
  0x86   : > { %2006 = vmatpush.bf16.msra.mxu1 %v4022_v46 }
  0x8c   : > { %1521 = vmatmul.bf16.gmra.mxu1 %v984_v21  ;;  %1932 = vmatmul.bf16.gmra.mxu0 %v467_v22  ;;  %v1008_v22 = vsel %vm431_vm0, %v1003_v9, %v1007_v13 }
  0x8d   : > { %1610 = vmatmul.bf16.gmra.mxu2 %v1165_v26  ;;  %1843 = vmatmul.bf16.gmra.mxu3 %v3988_v61  ;;  %v403_v61 = vunpack.c.l.b16 %v253_v53  ;;  %v404_v26 = vunpack.c.l.b16 %v256_v19  ;;  %v498_v53 = vor.u32 %v497_v44, %v493_v43 }
  0x8f   : > { %v4602_v0 = vpack.c.b16 %v403_v61, %v403_v61  ;;  %v4618_v10 = vpack.c.b16 %v404_v26, %v404_v26  ;;  %v259_v61 = vld [vmem:[%s4364_s9 + $0x50] sm:$0x1] }
  0x90   : > { %v405_v7 = vunpack.c.l.b16 %v259_v61  ;;  %v4085_v61 = vld [vmem:[%s5173_s1 + $0x198] sm:$0xff] }
  0x91   : > { %v488_v8 = vshll.u32 %v4602_v0, 16  ;;  %v500_v45 = vshll.u32 %v4618_v10, 16  ;;  %2757 = vmatpush.bf16.msra.mxu2 %v4085_v61 }
  0x92   : > { %v4658_v13 = vpack.c.b16 %v405_v7, %v405_v7 }
  0x93   : > { %v490_v15 = vrot.slane %v488_v8, 1  ;;  %v1024_v8 = vshll.u32 %v4492_v49, 16 }
  0x94   : > { %v512_v26 = vshll.u32 %v4658_v13, 16 }
  0x95   : > { %v491_v23 = vsel %vm431_vm0, %v486_v14, %v490_v15  ;;  %v507_v14 = vshll.u32 %v3992_v6, 16 }
  0x96   : > { %v514_v33 = vrot.slane %v512_v26, 1 }
  0x9c   : > { %1526 = vmatmul.bf16.gmra.mxu1 %v996_v54  ;;  %1937 = vmatmul.bf16.gmra.mxu0 %v479_v55  ;;  %v502_v54 = vrot.slane %v500_v45, 1  ;;  %v1172_v55 = vrot.slane %v4437_v31, 1 }
  0x9d   : > { %1615 = vmatmul.bf16.gmra.mxu2 %v1168_v62  ;;  %1848 = vmatmul.bf16.gmra.mxu3 %v3989_v24  ;;  %v922_v24 = vunpack.c.l.b16 %v3393_v18  ;;  %v1026_v18 = vrot.slane %v1024_v8, 1 }
  0x9e   : > { %v503_v4 = vsel %vm431_vm0, %v498_v53, %v502_v54  ;;  %v406_v53 = vunpack.c.l.b16 %v262_v39  ;;  %v1036_v54 = vshll.u32 %v4519_v59, 16 }
  0x9f   : > { %v938_v28 = vpack.c.b16 %v922_v24, %v922_v24  ;;  %v505_v24 = vshrl.u32 %v3992_v6, 16 }
  0xa0   : > { %v1038_v7 = vrot.slane %v1036_v54, 1  ;;  %v3994_v54 = vld [vmem:[%s4364_s9 + $0x60] sm:$0xff] }
  0xa1   : > { %v1017_v42 = vshll.u32 %v938_v28, 16  ;;  %v1173_v56 = vrot.slane %v938_v28, 1 }
  0xa3   : > { %v1019_v52 = vrot.slane %v1017_v42, 1  ;;  %v1174_v31 = vsel %vm640_vm1, %v1172_v55, %v1173_v56  ;;  %v4686_v56 = vpack.c.b16 %v406_v53, %v406_v53 }
  0xa5   : > { %v1020_v2 = vsel %vm431_vm0, %v1015_v51, %v1019_v52  ;;  %v924_v51 = vunpack.c.l.b16 %v3399_v38  ;;  %v3993_v52 = vld [vmem:[%s4364_s9 + $0x54] sm:$0xff]  ;;  %5184 = vst [vmem:[#allocation3_spill] sm:$0xff] %v4686_v56 }
  0xa7   : > { %v940_v55 = vpack.c.b16 %v924_v51, %v924_v51 }
  0xa9   : > { %v4609_v20 = vpop.f32.mrf.mxu0  ;;  %v4611_v21 = vpop.f32.mrf.mxu1 }
  0xac   : > { %1531 = vmatmul.bf16.gmra.mxu1 %v1008_v22  ;;  %1942 = vmatmul.bf16.gmra.mxu0 %v491_v23 }
  0xad   : > { %1620 = vmatmul.bf16.gmra.mxu2 %v1171_v27  ;;  %1853 = vmatmul.bf16.gmra.mxu3 %v3990_v57  ;;  %v3396_v57 = vld [vmem:[%s4364_s9 + $0x5c] sm:$0x1]  ;;  %v1027_v27 = vor.u32 %v1026_v18, %v1022_v17  ;;  %v524_v18 = vshll.u32 %v4686_v56, 16 }
  0xae   : > { %v923_v5 = vunpack.c.l.b16 %v3396_v57  ;;  %v519_v57 = vshll.u32 %v3993_v52, 16 }
  0xb0   : > { %v4626_v36 = vpop.f32.mrf.mxu2  ;;  %v4628_v37 = vpop.f32.mrf.mxu3  ;;  %v939_v9 = vpack.c.b16 %v923_v5, %v923_v5  ;;  %v521_v17 = vrot.slane %v519_v57, 1 }
  0xb1   : > { %v4631_v40 = vpop.f32.mrf.mxu0  ;;  %v4633_v41 = vpop.f32.mrf.mxu1 }
  0xb2   : > { %v1029_v23 = vshll.u32 %v939_v9, 16  ;;  %v1176_v35 = vrot.slane %v939_v9, 1  ;;  %v1041_v9 = vshll.u32 %v940_v55, 16 }
  0xb4   : > { %v1031_v11 = vrot.slane %v1029_v23, 1  ;;  %v1177_v49 = vsel %vm640_vm1, %v1175_v34, %v1176_v35  ;;  %v4021_v23 = vld [vmem:[%s5173_s1 + $0x98] sm:$0xff]  ;;  %v1043_v26 = vrot.slane %v1041_v9, 1  ;;  %v3402_v34 = vld [vmem:[%s4364_s9 + $0x74] sm:$0x1] }
  0xb5   : > { %2007 = vmatpush.bf16.msra.mxu1 %v4021_v23  ;;  %v265_v35 = vld [vmem:[%s4364_s9 + $0x68] sm:$0x1] }
  0xb6   : > { %v1032_v46 = vsel %vm431_vm0, %v1027_v27, %v1031_v11  ;;  %v526_v11 = vrot.slane %v524_v18, 1  ;;  %v407_v57 = vunpack.c.l.b16 %v265_v35  ;;  %v1181_v35 = vrot.slane %v4379_v12, 1 }
  0xb8   : > { %v4645_v62 = vpop.f32.mrf.mxu2  ;;  %v4647_v63 = vpop.f32.mrf.mxu3 }
  0xb9   : > { %v4649_v58 = vpop.f32.mrf.mxu0  ;;  %v4651_v30 = vpop.f32.mrf.mxu1 }
  0xbc   : > { %1536 = vmatmul.bf16.gmra.mxu1 %v1020_v2  ;;  %1947 = vmatmul.bf16.gmra.mxu0 %v503_v4  ;;  %v4093_v2 = vld [vmem:[%s5173_s1 + $0x1d8] sm:$0xff] }
  0xbd   : > { %1625 = vmatmul.bf16.gmra.mxu2 %v1174_v31  ;;  %1858 = vmatmul.bf16.gmra.mxu3 %v3991_v25  ;;  %v509_v25 = vrot.slane %v507_v14, 1  ;;  %v517_v14 = vshrl.u32 %v3993_v52, 16 }
  0xbe   : > { %2846 = vmatpush.bf16.msra.mxu3 %v4093_v2  ;;  %v4726_v2 = vpack.c.b16 %v407_v57, %v407_v57 }
  0xbf   : > { %v510_v28 = vor.u32 %v509_v25, %v505_v24  ;;  %v4101_v24 = vld [vmem:[%s5173_s1 + $0x218] sm:$0xff]  ;;  %v522_v27 = vor.u32 %v521_v17, %v517_v14  ;;  %v1046_v14 = vshrl.u32 %v4379_v12, 16 }
  0xc0   : > { %v4660_v15 = vpop.f32.mrf.mxu2  ;;  %v4662_v16 = vpop.f32.mrf.mxu3  ;;  %2935 = vmatpush.bf16.msra.mxu0 %v4101_v24  ;;  %5187 = vst [vmem:[#allocation6_spill] sm:$0xff] %v4726_v2 }
  0xc1   : > { %v4665_v19 = vpop.f32.mrf.mxu0  ;;  %v4667_v22 = vpop.f32.mrf.mxu1  ;;  %v515_v47 = vsel %vm431_vm0, %v510_v28, %v514_v33  ;;  %v1178_v28 = vrot.slane %v4519_v59, 1  ;;  %v1179_v33 = vrot.slane %v940_v55, 1  ;;  %v527_v53 = vsel %vm431_vm0, %v522_v27, %v526_v11 }
  0xc2   : > { %v1048_v55 = vshll.u32 %v4379_v12, 16 }
  0xc4   : > { %v1050_v17 = vrot.slane %v1048_v55, 1 }
  0xc6   : > { %v1051_v27 = vor.u32 %v1050_v17, %v1046_v14  ;;  %v3995_v14 = vld [vmem:[%s4364_s9 + $0x6c] sm:$0xff] }
  0xc8   : > { %v4673_v42 = vpop.f32.mrf.mxu2  ;;  %v4675_v43 = vpop.f32.mrf.mxu3 }
  0xc9   : > { %5183 = vst [vmem:[#allocation2_spill] sm:$0xff] %v4675_v43  ;;  %v4677_v44 = vpop.f32.mrf.mxu0  ;;  %v4679_v45 = vpop.f32.mrf.mxu1 }
  0xcc   : > { %1541 = vmatmul.bf16.gmra.mxu1 %v1032_v46  ;;  %1952 = vmatmul.bf16.gmra.mxu0 %v515_v47 }
  0xcd   : > { %1630 = vmatmul.bf16.gmra.mxu2 %v1177_v49  ;;  %1863 = vmatmul.bf16.gmra.mxu3 %v3992_v6  ;;  %v1034_v6 = vshrl.u32 %v4519_v59, 16  ;;  %v925_v49 = vunpack.c.l.b16 %v3402_v34  ;;  %v1180_v59 = vsel %vm640_vm1, %v1178_v28, %v1179_v33  ;;  %v3405_v34 = vld [vmem:[%s4364_s9 + $0x80] sm:$0x1] }
  0xcf   : > { %v1039_v25 = vor.u32 %v1038_v7, %v1034_v6  ;;  %v941_v61 = vpack.c.b16 %v925_v49, %v925_v49  ;;  %v531_v6 = vshll.u32 %v3994_v54, 16 }
  0xd0   : > { %v4694_v4 = vpop.f32.mrf.mxu2  ;;  %v4696_v5 = vpop.f32.mrf.mxu3 }
  0xd1   : > { %5185 = vst [vmem:[#allocation4_spill] sm:$0xff] %v4696_v5  ;;  %v4699_v31 = vpop.f32.mrf.mxu0  ;;  %v4701_v8 = vpop.f32.mrf.mxu1  ;;  %v1044_v51 = vsel %vm431_vm0, %v1039_v25, %v1043_v26  ;;  %v1053_v24 = vshll.u32 %v941_v61, 16  ;;  %v529_v25 = vshrl.u32 %v3994_v54, 16  ;;  %v536_v26 = vshll.u32 %v4726_v2, 16 }
  0xd3   : > { %v1055_v11 = vrot.slane %v1053_v24, 1  ;;  %v538_v33 = vrot.slane %v536_v26, 1  ;;  %v543_v26 = vshll.u32 %v3995_v14, 16 }
  0xd8   : > { %v4713_v38 = vpop.f32.mrf.mxu2  ;;  %v4715_v39 = vpop.f32.mrf.mxu3 }
  0xd9   : > { %5186 = vst [vmem:[#allocation5_spill] sm:$0xff] %v4715_v39  ;;  %v4717_v46 = vpop.f32.mrf.mxu0  ;;  %v4719_v47 = vpop.f32.mrf.mxu1 }
  0xdc   : > { %1546 = vmatmul.bf16.gmra.mxu1 %v1044_v51  ;;  %1957 = vmatmul.bf16.gmra.mxu0 %v527_v53  ;;  %v1182_v51 = vrot.slane %v941_v61, 1  ;;  %v268_v53 = vld [vmem:[%s4364_s9 + $0x74] sm:$0x1]  ;;  %v1060_v61 = vshll.u32 %v4440_v32, 16 }
  0xdd   : > { %1635 = vmatmul.bf16.gmra.mxu2 %v1180_v59  ;;  %1868 = vmatmul.bf16.gmra.mxu3 %v3993_v52  ;;  %v533_v52 = vrot.slane %v531_v6, 1  ;;  %v926_v59 = vunpack.c.l.b16 %v3405_v34  ;;  %v1056_v6 = vsel %vm431_vm0, %v1051_v27, %v1055_v11  ;;  %v408_v17 = vunpack.c.l.b16 %v268_v53  ;;  %v4084_v27 = vld [vmem:[%s5173_s1 + $0x190] sm:$0xff] }
  0xde   : > { %2758 = vmatpush.bf16.msra.mxu2 %v4084_v27  ;;  %v541_v53 = vshrl.u32 %v3995_v14, 16 }
  0xdf   : > { %v534_v28 = vor.u32 %v533_v52, %v529_v25  ;;  %v1183_v25 = vsel %vm640_vm1, %v1181_v35, %v1182_v51  ;;  %v942_v12 = vpack.c.b16 %v926_v59, %v926_v59  ;;  %v4751_v52 = vpack.c.b16 %v408_v17, %v408_v17 }
  0xe0   : > { %v4728_v7 = vpop.f32.mrf.mxu2  ;;  %v4730_v9 = vpop.f32.mrf.mxu3  ;;  %v545_v59 = vrot.slane %v543_v26, 1  ;;  %v3408_v26 = vld [vmem:[%s4364_s9 + $0x8c] sm:$0x1] }
  0xe1   : > { %5188 = vst [vmem:[#allocation7_spill] sm:$0xff] %v4730_v9  ;;  %v4733_v18 = vpop.f32.mrf.mxu0  ;;  %v4735_v23 = vpop.f32.mrf.mxu1  ;;  %v539_v2 = vsel %vm431_vm0, %v534_v28, %v538_v33  ;;  %v1058_v28 = vshrl.u32 %v4440_v32, 16  ;;  %v1062_v33 = vrot.slane %v1060_v61, 1  ;;  %v4100_v61 = vld [vmem:[%s5173_s1 + $0x210] sm:$0xff]  ;;  %v927_v39 = vunpack.c.l.b16 %v3408_v26 }
  0xe2   : > { %5190 = vst [vmem:[#allocation9_spill] sm:$0xff] %v4751_v52  ;;  %2936 = vmatpush.bf16.msra.mxu0 %v4100_v61 }
  0xe3   : > { %v1063_v27 = vor.u32 %v1062_v33, %v1058_v28 }
  0xe8   : > { %v4741_v49 = vpop.f32.mrf.mxu2  ;;  %v4743_v57 = vpop.f32.mrf.mxu3 }
  0xe9   : > { %5189 = vst [vmem:[#allocation8_spill] sm:$0xff] %v4743_v57  ;;  %v1512_v55 = vpop.f32.mrf.mxu1  ;;  %v1923_v9 = vpop.f32.mrf.mxu0 }
  0xea   : > { %v1513_v24 = vadd.f32 %v1512_v55, %v4609_v20  ;;  %v4092_v20 = vld [vmem:[%s5173_s1 + $0x1d0] sm:$0xff]  ;;  %v548_v55 = vshll.u32 %v4751_v52, 16 }
  0xeb   : > { %2847 = vmatpush.bf16.msra.mxu3 %v4092_v20  ;;  %v546_v20 = vor.u32 %v545_v59, %v541_v53 }
  0xec   : > { %1551 = vmatmul.bf16.gmra.mxu1 %v1056_v6  ;;  %1962 = vmatmul.bf16.gmra.mxu0 %v539_v2 }
  0xed   : > { %1640 = vmatmul.bf16.gmra.mxu2 %v1183_v25  ;;  %1873 = vmatmul.bf16.gmra.mxu3 %v3994_v54  ;;  %v1065_v54 = vshll.u32 %v942_v12, 16  ;;  %v4020_v25 = vld [vmem:[%s5173_s1 + $0x90] sm:$0xff] }
  0xee   : > { %2008 = vmatpush.bf16.msra.mxu1 %v4020_v25 }
  0xf0   : > { %v1601_v11 = vpop.f32.mrf.mxu2  ;;  %v1834_v2 = vpop.f32.mrf.mxu3 }
  0xf1   : > { %v1602_v34 = vadd.f32 %v1601_v11, %v1513_v24  ;;  %v1514_v35 = vpop.f32.mrf.mxu1  ;;  %v1925_v51 = vpop.f32.mrf.mxu0  ;;  %v1067_v24 = vrot.slane %v1065_v54, 1  ;;  %v550_v11 = vrot.slane %v548_v55, 1  ;;  %v3996_v54 = vld [vmem:[%s4364_s9 + $0x78] sm:$0xff] }
  0xf2   : > { %v1515_v6 = vadd.f32 %v1514_v35, %v4631_v40  ;;  %v1184_v40 = vrot.slane %v4440_v32, 1  ;;  %v943_v32 = vpack.c.b16 %v927_v39, %v927_v39 }
  0xf3   : > { %v1835_v17 = vadd.f32 %v1834_v2, %v1602_v34  ;;  %v1185_v2 = vrot.slane %v942_v12, 1  ;;  %v271_v34 = vld [vmem:[%s4364_s9 + $0x80] sm:$0x1]  ;;  %v1068_v28 = vsel %vm431_vm0, %v1063_v27, %v1067_v24  ;;  %v551_v33 = vsel %vm431_vm0, %v546_v20, %v550_v11 }
  0xf4   : > { %v409_v53 = vunpack.c.l.b16 %v271_v34  ;;  %v1072_v12 = vshll.u32 %v4495_v50, 16  ;;  %v1077_v24 = vshll.u32 %v943_v32, 16  ;;  %v553_v20 = vshrl.u32 %v3996_v54, 16 }
  0xf5   : > { %v4769_v52 = vadd.f32 %v1923_v9, %v1835_v17  ;;  %v1186_v9 = vsel %vm640_vm1, %v1184_v40, %v1185_v2  ;;  %v555_v17 = vshll.u32 %v3996_v54, 16 }
  0xf6   : > { %v1079_v2 = vrot.slane %v1077_v24, 1 }
  0xf7   : > { %v557_v11 = vrot.slane %v555_v17, 1 }
  0xf8   : > { %v1603_v35 = vpop.f32.mrf.mxu2  ;;  %v1836_v57 = vpop.f32.mrf.mxu3 }
  0xf9   : > { %v1604_v56 = vadd.f32 %v1603_v35, %v1515_v6  ;;  %v1517_v5 = vpop.f32.mrf.mxu1  ;;  %v1928_v43 = vpop.f32.mrf.mxu0  ;;  %v4779_v6 = vpack.c.b16 %v409_v53, %v409_v53  ;;  %v558_v34 = vor.u32 %v557_v11, %v553_v20  ;;  %v1187_v53 = vrot.slane %v4495_v50, 1  ;;  %v4083_v11 = vld [vmem:[%s5173_s1 + $0x188] sm:$0xff] }
  0xfa   : > { %v1518_v59 = vadd.f32 %v1517_v5, %v4649_v58  ;;  %v1070_v58 = vshrl.u32 %v4495_v50, 16  ;;  %v1074_v5 = vrot.slane %v1072_v12, 1  ;;  %2759 = vmatpush.bf16.msra.mxu2 %v4083_v11 }
  0xfb   : > { %v1837_v55 = vadd.f32 %v1836_v57, %v1604_v56  ;;  %5191 = vst [vmem:[#allocation10_spill] sm:$0xff] %v4779_v6 }
  0xfc   : > { %1556 = vmatmul.bf16.gmra.mxu1 %v1068_v28  ;;  %1967 = vmatmul.bf16.gmra.mxu0 %v551_v33  ;;  %v3411_v28 = vld [vmem:[%s4364_s9 + $0x98] sm:$0x1] }
  0xfd   : > { %1645 = vmatmul.bf16.gmra.mxu2 %v1186_v9  ;;  %1878 = vmatmul.bf16.gmra.mxu3 %v3995_v14  ;;  %v4781_v25 = vadd.f32 %v1925_v51, %v1837_v55  ;;  %v560_v14 = vshll.u32 %v4779_v6, 16  ;;  %v1075_v51 = vor.u32 %v1074_v5, %v1070_v58  ;;  %v274_v9 = vld [vmem:[%s4364_s9 + $0x8c] sm:$0x1]  ;;  %v928_v17 = vunpack.c.l.b16 %v3411_v28  ;;  %v3997_v58 = vld [vmem:[%s4364_s9 + $0x84] sm:$0xff] }
  0xfe   : > { %v410_v5 = vunpack.c.l.b16 %v274_v9  ;;  %v567_v20 = vshll.u32 %v3997_v58, 16  ;;  %v565_v28 = vshrl.u32 %v3997_v58, 16 }
  0xff   : > { %5192 = vst [vmem:[#allocation11_spill] sm:$0xff] %v4781_v25  ;;  %v562_v35 = vrot.slane %v560_v14, 1  ;;  %v944_v50 = vpack.c.b16 %v928_v17, %v928_v17 }
 0x100   : > { %v1606_v61 = vpop.f32.mrf.mxu2  ;;  %v1839_v27 = vpop.f32.mrf.mxu3 }
 0x101   : > { %v1607_v56 = vadd.f32 %v1606_v61, %v1518_v59  ;;  %v1519_v57 = vpop.f32.mrf.mxu1  ;;  %v1930_v39 = vpop.f32.mrf.mxu0  ;;  %v1188_v59 = vrot.slane %v943_v32, 1  ;;  %v1084_v32 = vshll.u32 %v4522_v60, 16 }
 0x102   : > { %v1520_v26 = vadd.f32 %v1519_v57, %v4665_v19  ;;  %v1080_v19 = vsel %vm431_vm0, %v1075_v51, %v1079_v2  ;;  %v4797_v57 = vpack.c.b16 %v410_v5, %v410_v5  ;;  %v1089_v51 = vshll.u32 %v944_v50, 16  ;;  %v3414_v5 = vld [vmem:[%s4364_s9 + $0xa4] sm:$0x1] }
 0x103   : > { %v1840_v40 = vadd.f32 %v1839_v27, %v1607_v56  ;;  %v563_v27 = vsel %vm431_vm0, %v558_v34, %v562_v35  ;;  %v929_v11 = vunpack.c.l.b16 %v3414_v5 }
 0x105   : > { %v4787_v33 = vadd.f32 %v1928_v43, %v1840_v40  ;;  %v1189_v43 = vsel %vm640_vm1, %v1187_v53, %v1188_v59  ;;  %v1082_v40 = vshrl.u32 %v4522_v60, 16  ;;  %v569_v53 = vrot.slane %v567_v20, 1 }
 0x106   : > { %v572_v59 = vshll.u32 %v4797_v57, 16 }
 0x108   : > { %v1608_v55 = vpop.f32.mrf.mxu2  ;;  %v1841_v12 = vpop.f32.mrf.mxu3 }
 0x109   : > { %v1609_v61 = vadd.f32 %v1608_v55, %v1520_v26  ;;  %v1522_v6 = vpop.f32.mrf.mxu1  ;;  %v1933_v25 = vpop.f32.mrf.mxu0  ;;  %v4019_v55 = vld [vmem:[%s5173_s1 + $0x88] sm:$0xff] }
 0x10a   : > { %v1523_v24 = vadd.f32 %v1522_v6, %v4677_v44  ;;  %v4091_v44 = vld [vmem:[%s5173_s1 + $0x1c8] sm:$0xff]  ;;  %2009 = vmatpush.bf16.msra.mxu1 %v4019_v55 }
 0x10b   : > { %v1842_v56 = vadd.f32 %v1841_v12, %v1609_v61  ;;  %2848 = vmatpush.bf16.msra.mxu3 %v4091_v44  ;;  %v4099_v12 = vld [vmem:[%s5173_s1 + $0x208] sm:$0xff]  ;;  %v1091_v61 = vrot.slane %v1089_v51, 1  ;;  %v3998_v51 = vld [vmem:[%s4364_s9 + $0x90] sm:$0xff] }
 0x10c   : > { %1561 = vmatmul.bf16.gmra.mxu1 %v1080_v19  ;;  %1972 = vmatmul.bf16.gmra.mxu0 %v563_v27  ;;  %v570_v19 = vor.u32 %v569_v53, %v565_v28  ;;  %v574_v27 = vrot.slane %v572_v59, 1  ;;  %v4251_v28 = vld [vmem:[%s4364_s9 + $0x9c] sm:$0xff] }
 0x10d   : > { %1650 = vmatmul.bf16.gmra.mxu2 %v1189_v43  ;;  %1883 = vmatmul.bf16.gmra.mxu3 %v3996_v54  ;;  %v4805_v6 = vadd.f32 %v1930_v39, %v1842_v56  ;;  %v1086_v54 = vrot.slane %v1084_v32, 1  ;;  %v1191_v43 = vrot.slane %v944_v50, 1  ;;  %v277_v56 = vld [vmem:[%s4364_s9 + $0x98] sm:$0x1]  ;;  %v945_v50 = vpack.c.b16 %v929_v11, %v929_v11 }
 0x10e   : > { %2937 = vmatpush.bf16.msra.mxu0 %v4099_v12  ;;  %v1096_v53 = vshll.u32 %v4251_v28, 16 }
 0x10f   : > { %v1087_v17 = vor.u32 %v1086_v54, %v1082_v40  ;;  %v575_v54 = vsel %vm431_vm0, %v570_v19, %v574_v27 }
 0x110   : > { %v1611_v14 = vpop.f32.mrf.mxu2  ;;  %v1844_v26 = vpop.f32.mrf.mxu3 }
 0x111   : > { %v1612_v2 = vadd.f32 %v1611_v14, %v1523_v24  ;;  %v1524_v34 = vpop.f32.mrf.mxu1  ;;  %v1935_v35 = vpop.f32.mrf.mxu0  ;;  %v1092_v40 = vsel %vm431_vm0, %v1087_v17, %v1091_v61  ;;  %v1094_v17 = vshrl.u32 %v4251_v28, 16  ;;  %v1101_v61 = vshll.u32 %v945_v50, 16 }
 0x112   : > { %v1525_v39 = vadd.f32 %v1524_v34, %v4699_v31  ;;  %v1190_v31 = vrot.slane %v4522_v60, 1 }
 0x113   : > { %v1845_v9 = vadd.f32 %v1844_v26, %v1612_v2  ;;  %v411_v2 = vunpack.c.l.b16 %v277_v56 }
 0x114   : > { %v1192_v34 = vsel %vm640_vm1, %v1190_v31, %v1191_v43  ;;  %v577_v31 = vshrl.u32 %v3998_v51, 16 }
 0x115   : > { %v4817_v24 = vadd.f32 %v1933_v25, %v1845_v9  ;;  %v4827_v59 = vpack.c.b16 %v411_v2, %v411_v2  ;;  %v1194_v2 = vrot.slane %v945_v50, 1 }
 0x117   : > { %5193 = vst [vmem:[#allocation12_spill] sm:$0xff] %v4827_v59  ;;  %v584_v56 = vshll.u32 %v4827_v59, 16 }
 0x118   : > { %v1613_v32 = vpop.f32.mrf.mxu2  ;;  %v1846_v20 = vpop.f32.mrf.mxu3 }
 0x119   : > { %v1614_v44 = vadd.f32 %v1613_v32, %v1525_v39  ;;  %v1527_v14 = vpop.f32.mrf.mxu1  ;;  %v1938_v26 = vpop.f32.mrf.mxu0  ;;  %v579_v39 = vshll.u32 %v3998_v51, 16 }
 0x11a   : > { %v1528_v25 = vadd.f32 %v1527_v14, %v4717_v46  ;;  %v1098_v46 = vrot.slane %v1096_v53, 1  ;;  %v3417_v14 = vld [vmem:[%s4364_s9 + $0xb0] sm:$0x1] }
 0x11b   : > { %v1847_v60 = vadd.f32 %v1846_v20, %v1614_v44  ;;  %v581_v43 = vrot.slane %v579_v39, 1  ;;  %v586_v44 = vrot.slane %v584_v56, 1  ;;  %v930_v53 = vunpack.c.l.b16 %v3417_v14  ;;  %v4090_v56 = vld [vmem:[%s5173_s1 + $0x1c0] sm:$0xff] }
 0x11c   : > { %1566 = vmatmul.bf16.gmra.mxu1 %v1092_v40  ;;  %1977 = vmatmul.bf16.gmra.mxu0 %v575_v54  ;;  %v1099_v20 = vor.u32 %v1098_v46, %v1094_v17  ;;  %v1193_v54 = vrot.slane %v4251_v28, 1  ;;  %v3999_v17 = vld [vmem:[%s4364_s9 + $0x9c] sm:$0xff]  ;;  %v4252_v28 = vld [vmem:[%s4364_s9 + $0xa8] sm:$0xff] }
 0x11d   : > { %1655 = vmatmul.bf16.gmra.mxu2 %v1192_v34  ;;  %1888 = vmatmul.bf16.gmra.mxu3 %v3997_v58  ;;  %v4829_v9 = vadd.f32 %v1935_v35, %v1847_v60  ;;  %v1103_v35 = vrot.slane %v1101_v61, 1  ;;  %v582_v11 = vor.u32 %v581_v43, %v577_v31  ;;  %v946_v50 = vpack.c.b16 %v930_v53, %v930_v53  ;;  %v4082_v43 = vld [vmem:[%s5173_s1 + $0x180] sm:$0xff] }
 0x11e   : > { %v1195_v61 = vsel %vm640_vm1, %v1193_v54, %v1194_v2  ;;  %v591_v31 = vshll.u32 %v3999_v17, 16  ;;  %2760 = vmatpush.bf16.msra.mxu2 %v4082_v43  ;;  %2849 = vmatpush.bf16.msra.mxu3 %v4090_v56  ;;  %v4098_v53 = vld [vmem:[%s5173_s1 + $0x200] sm:$0xff] }
 0x11f   : > { %2938 = vmatpush.bf16.msra.mxu0 %v4098_v53 }
 0x120   : > { %v1616_v55 = vpop.f32.mrf.mxu2  ;;  %v1849_v12 = vpop.f32.mrf.mxu3 }
 0x121   : > { %v1617_v19 = vadd.f32 %v1616_v55, %v1528_v25  ;;  %v1529_v27 = vpop.f32.mrf.mxu1  ;;  %v1940_v5 = vpop.f32.mrf.mxu0  ;;  %v280_v25 = vld [vmem:[%s4364_s9 + $0xa4] sm:$0x1] }
 0x122   : > { %v1530_v58 = vadd.f32 %v1529_v27, %v4733_v18  ;;  %v1104_v18 = vsel %vm431_vm0, %v1099_v20, %v1103_v35  ;;  %v412_v46 = vunpack.c.l.b16 %v280_v25  ;;  %v589_v25 = vshrl.u32 %v3999_v17, 16 }
 0x123   : > { %v1850_v32 = vadd.f32 %v1849_v12, %v1617_v19  ;;  %v587_v12 = vsel %vm431_vm0, %v582_v11, %v586_v44  ;;  %v1108_v19 = vshll.u32 %v4252_v28, 16  ;;  %v1113_v44 = vshll.u32 %v946_v50, 16 }
 0x124   : > { %v4842_v27 = vpack.c.b16 %v412_v46, %v412_v46  ;;  %v3420_v46 = vld [vmem:[%s4364_s9 + $0xbc] sm:$0x1] }
 0x125   : > { %v4834_v40 = vadd.f32 %v1938_v26, %v1850_v32  ;;  %v1110_v11 = vrot.slane %v1108_v19, 1  ;;  %v1197_v19 = vrot.slane %v946_v50, 1 }
 0x128   : > { %v1618_v34 = vpop.f32.mrf.mxu2  ;;  %v1851_v60 = vpop.f32.mrf.mxu3 }
 0x129   : > { %v1619_v39 = vadd.f32 %v1618_v34, %v1530_v58  ;;  %v1532_v55 = vpop.f32.mrf.mxu1  ;;  %v1943_v59 = vpop.f32.mrf.mxu0  ;;  %v593_v34 = vrot.slane %v591_v31, 1  ;;  %v283_v31 = vld [vmem:[%s4364_s9 + $0xb0] sm:$0x1] }
 0x12a   : > { %v1533_v32 = vadd.f32 %v1532_v55, %v4611_v21  ;;  %v4018_v21 = vld [vmem:[%s5173_s1 + $0x80] sm:$0xff]  ;;  %v1115_v55 = vrot.slane %v1113_v44, 1 }
 0x12b   : > { %v1852_v26 = vadd.f32 %v1851_v60, %v1619_v39  ;;  %v596_v60 = vshll.u32 %v4842_v27, 16  ;;  %2010 = vmatpush.bf16.msra.mxu1 %v4018_v21 }
 0x12c   : > { %1571 = vmatmul.bf16.gmra.mxu1 %v1104_v18  ;;  %1982 = vmatmul.bf16.gmra.mxu0 %v587_v12  ;;  %v594_v18 = vor.u32 %v593_v34, %v589_v25  ;;  %v4000_v25 = vld [vmem:[%s4364_s9 + $0xa8] sm:$0xff]  ;;  %v413_v34 = vunpack.c.l.b16 %v283_v31 }
 0x12d   : > { %1660 = vmatmul.bf16.gmra.mxu2 %v1195_v61  ;;  %1893 = vmatmul.bf16.gmra.mxu3 %v3998_v51  ;;  %v4850_v58 = vadd.f32 %v1940_v5, %v1852_v26  ;;  %v1106_v51 = vshrl.u32 %v4252_v28, 16  ;;  %v598_v12 = vrot.slane %v596_v60, 1  ;;  %v1196_v26 = vrot.slane %v4252_v28, 1 }
 0x12e   : > { %v4870_v60 = vpack.c.b16 %v413_v34, %v413_v34 }
 0x12f   : > { %v1111_v39 = vor.u32 %v1110_v11, %v1106_v51 }
 0x130   : > { %v1621_v20 = vpop.f32.mrf.mxu2  ;;  %v1854_v35 = vpop.f32.mrf.mxu3  ;;  %5194 = vst [vmem:[#allocation13_spill] sm:$0xff] %v4870_v60 }
 0x131   : > { %v1622_v14 = vadd.f32 %v1621_v20, %v1533_v32  ;;  %v1534_v54 = vpop.f32.mrf.mxu1  ;;  %v1945_v2 = vpop.f32.mrf.mxu0  ;;  %v931_v20 = vunpack.c.l.b16 %v3420_v46  ;;  %v1116_v44 = vsel %vm431_vm0, %v1111_v39, %v1115_v55 }
 0x132   : > { %v1535_v43 = vadd.f32 %v1534_v54, %v4633_v41  ;;  %v4253_v41 = vld [vmem:[%s4364_s9 + $0xb4] sm:$0xff] }
 0x133   : > { %v1855_v5 = vadd.f32 %v1854_v35, %v1622_v14  ;;  %v599_v14 = vsel %vm431_vm0, %v594_v18, %v598_v12  ;;  %v947_v50 = vpack.c.b16 %v931_v20, %v931_v20  ;;  %v1120_v54 = vshll.u32 %v4253_v41, 16 }
 0x134   : > { %v1118_v18 = vshrl.u32 %v4253_v41, 16 }
 0x135   : > { %v4861_v61 = vadd.f32 %v1943_v59, %v1855_v5  ;;  %v1198_v59 = vsel %vm640_vm1, %v1196_v26, %v1197_v19  ;;  %v603_v5 = vshll.u32 %v4000_v25, 16  ;;  %v1122_v12 = vrot.slane %v1120_v54, 1 }
 0x136   : > { %v1125_v46 = vshll.u32 %v947_v50, 16  ;;  %v1200_v34 = vrot.slane %v947_v50, 1 }
 0x137   : > { %v1123_v20 = vor.u32 %v1122_v12, %v1118_v18 }
 0x138   : > { %v1623_v56 = vpop.f32.mrf.mxu2  ;;  %v1856_v32 = vpop.f32.mrf.mxu3 }
 0x139   : > { %v1624_v35 = vadd.f32 %v1623_v56, %v1535_v43  ;;  %v1537_v51 = vpop.f32.mrf.mxu1  ;;  %v1948_v11 = vpop.f32.mrf.mxu0  ;;  %v601_v43 = vshrl.u32 %v4000_v25, 16  ;;  %v605_v56 = vrot.slane %v603_v5, 1 }
 0x13a   : > { %v1538_v53 = vadd.f32 %v1537_v51, %v4651_v30  ;;  %v3423_v51 = vld [vmem:[%s4364_s9 + $0xc8] sm:$0x1] }
 0x13b   : > { %v1857_v28 = vadd.f32 %v1856_v32, %v1624_v35  ;;  %v606_v35 = vor.u32 %v605_v56, %v601_v43  ;;  %v932_v5 = vunpack.c.l.b16 %v3423_v51 }
 0x13c   : > { %1576 = vmatmul.bf16.gmra.mxu1 %v1116_v44  ;;  %1987 = vmatmul.bf16.gmra.mxu0 %v599_v14  ;;  %v1199_v14 = vrot.slane %v4253_v41, 1 }
 0x13d   : > { %1665 = vmatmul.bf16.gmra.mxu2 %v1198_v59  ;;  %1898 = vmatmul.bf16.gmra.mxu3 %v3999_v17  ;;  %v4872_v21 = vadd.f32 %v1945_v2, %v1857_v28  ;;  %v608_v17 = vshll.u32 %v4870_v60, 16  ;;  %v1127_v2 = vrot.slane %v1125_v46, 1  ;;  %v286_v59 = vld [vmem:[%s4364_s9 + $0xbc] sm:$0x1]  ;;  %v4001_v46 = vld [vmem:[%s4364_s9 + $0xb4] sm:$0xff]  ;;  %v948_v50 = vpack.c.b16 %v932_v5, %v932_v5 }
 0x13e   : > { %v615_v56 = vshll.u32 %v4001_v46, 16 }
 0x13f   : > { %v610_v30 = vrot.slane %v608_v17, 1  ;;  %v1128_v18 = vsel %vm431_vm0, %v1123_v20, %v1127_v2  ;;  %v1137_v51 = vshll.u32 %v948_v50, 16 }
 0x140   : > { %v1626_v39 = vpop.f32.mrf.mxu2  ;;  %v1859_v55 = vpop.f32.mrf.mxu3 }
 0x141   : > { %v1627_v26 = vadd.f32 %v1626_v39, %v1538_v53  ;;  %v1539_v19 = vpop.f32.mrf.mxu1  ;;  %v1950_v31 = vpop.f32.mrf.mxu0  ;;  %v611_v12 = vsel %vm431_vm0, %v606_v35, %v610_v30 }
 0x142   : > { %v1540_v28 = vadd.f32 %v1539_v19, %v4667_v22  ;;  %v4254_v22 = vld [vmem:[%s4364_s9 + $0xc0] sm:$0xff] }
 0x143   : > { %v1860_v32 = vadd.f32 %v1859_v55, %v1627_v26  ;;  %v414_v26 = vunpack.c.l.b16 %v286_v59  ;;  %v1132_v19 = vshll.u32 %v4254_v22, 16  ;;  %v1130_v35 = vshrl.u32 %v4254_v22, 16 }
 0x145   : > { %v4877_v44 = vadd.f32 %v1948_v11, %v1860_v32  ;;  %v1201_v11 = vsel %vm640_vm1, %v1199_v14, %v1200_v34  ;;  %v4886_v43 = vpack.c.b16 %v414_v26, %v414_v26  ;;  %v1134_v30 = vrot.slane %v1132_v19, 1 }
 0x147   : > { %5195 = vst [vmem:[#allocation14_spill] sm:$0xff] %v4886_v43  ;;  %v1135_v5 = vor.u32 %v1134_v30, %v1130_v35  ;;  %v4066_v30 = vld [vmem:[%s4364_s9 + $0x18] sm:$0xff] }
 0x148   : > { %v1628_v54 = vpop.f32.mrf.mxu2  ;;  %v1861_v53 = vpop.f32.mrf.mxu3 }
 0x149   : > { %v1629_v39 = vadd.f32 %v1628_v54, %v1540_v28  ;;  %v1542_v60 = vpop.f32.mrf.mxu1  ;;  %v1953_v55 = vpop.f32.mrf.mxu0  ;;  %v613_v28 = vshrl.u32 %v4001_v46, 16  ;;  %v617_v54 = vrot.slane %v615_v56, 1 }
 0x14a   : > { %v1543_v32 = vadd.f32 %v1542_v60, %v4679_v45  ;;  %v1202_v60 = vrot.slane %v4254_v22, 1  ;;  %v2291_v22 = vshll.u32 %v4066_v30, 16 }
 0x14b   : > { %v1862_v41 = vadd.f32 %v1861_v53, %v1629_v39  ;;  %v1139_v39 = vrot.slane %v1137_v51, 1 }
 0x14c   : > { %1581 = vmatmul.bf16.gmra.mxu1 %v1128_v18  ;;  %1992 = vmatmul.bf16.gmra.mxu0 %v611_v12  ;;  %v1203_v12 = vrot.slane %v948_v50, 1 }
 0x14d   : > { %1670 = vmatmul.bf16.gmra.mxu2 %v1201_v11  ;;  %1903 = vmatmul.bf16.gmra.mxu3 %v4000_v25  ;;  %v4888_v17 = vadd.f32 %v1950_v31, %v1862_v41  ;;  %v620_v25 = vshll.u32 %v4886_v43, 16  ;;  %v618_v31 = vor.u32 %v617_v54, %v613_v28  ;;  %v3730_v11 = vld [vmem:[%s4364_s9 + $0x20] sm:$0x1]  ;;  %v1140_v43 = vsel %vm431_vm0, %v1135_v5, %v1139_v39 }
 0x14e   : > { %v1204_v35 = vsel %vm640_vm1, %v1202_v60, %v1203_v12  ;;  %v2256_v51 = vunpack.c.l.b16 %v3730_v11  ;;  %v2289_v5 = vshrl.u32 %v4066_v30, 16  ;;  %v2293_v39 = vrot.slane %v2291_v22, 1 }
 0x14f   : > { %v622_v18 = vrot.slane %v620_v25, 1 }
 0x150   : > { %v1631_v20 = vpop.f32.mrf.mxu2  ;;  %v1864_v2 = vpop.f32.mrf.mxu3  ;;  %v2272_v50 = vpack.c.b16 %v2256_v51, %v2256_v51 }
 0x151   : > { %v1632_v14 = vadd.f32 %v1631_v20, %v1543_v32  ;;  %v1544_v34 = vpop.f32.mrf.mxu1  ;;  %v1955_v59 = vpop.f32.mrf.mxu0 }
 0x152   : > { %v1545_v26 = vadd.f32 %v1544_v34, %v4701_v8  ;;  %v2497_v12 = vrot.slane %v2272_v50, 1 }
 0x153   : > { %v1865_v53 = vadd.f32 %v1864_v2, %v1632_v14  ;;  %v623_v2 = vsel %vm431_vm0, %v618_v31, %v622_v18  ;;  %v2296_v31 = vshll.u32 %v2272_v50, 16  ;;  %v4255_v18 = vld [vmem:[%s4364_s9] sm:$0xff] }
 0x154   : > { %v641_v60 = vrot.slane %v4255_v18, 1 }
 0x155   : > { %v4892_v45 = vadd.f32 %v1953_v55, %v1865_v53  ;;  %v2298_v11 = vrot.slane %v2296_v31, 1 }
 0x158   : > { %v1633_v41 = vpop.f32.mrf.mxu2  ;;  %v1866_v19 = vpop.f32.mrf.mxu3 }
 0x159   : > { %v1634_v32 = vadd.f32 %v1633_v41, %v1545_v26  ;;  %v1547_v20 = vpop.f32.mrf.mxu1  ;;  %v1958_v56 = vpop.f32.mrf.mxu0 }
 0x15a   : > { %v1548_v14 = vadd.f32 %v1547_v20, %v4719_v47  ;;  %v2294_v47 = vor.u32 %v2293_v39, %v2289_v5 }
 0x15b   : > { %v1867_v55 = vadd.f32 %v1866_v19, %v1634_v32  ;;  %v3733_v19 = vld [vmem:[%s4364_s9 + $0x2c] sm:$0x1] }
 0x15c   : > { %1586 = vmatmul.bf16.gmra.mxu1 %v1140_v43  ;;  %1997 = vmatmul.bf16.gmra.mxu0 %v623_v2  ;;  %v2257_v50 = vunpack.c.l.b16 %v3733_v19 }
 0x15d   : > { %1675 = vmatmul.bf16.gmra.mxu2 %v1204_v35  ;;  %1908 = vmatmul.bf16.gmra.mxu3 %v4001_v46  ;;  %v4900_v8 = vadd.f32 %v1955_v59, %v1867_v55  ;;  %v642_v46 = vrot.slane %v4530_v3, 1  ;;  %v2496_v59 = vrot.slane %v4066_v30, 1  ;;  %v2299_v3 = vsel %vm431_vm0, %v2294_v47, %v2298_v11 }
 0x15f   : > { %v643_v55 = vsel %vm640_vm1, %v641_v60, %v642_v46  ;;  %v2498_v22 = vsel %vm640_vm1, %v2496_v59, %v2497_v12  ;;  %v4256_v12 = vld [vmem:[%s4364_s9 + $0xc] sm:$0xff] }
 0x160   : > { %v1636_v34 = vpop.f32.mrf.mxu2  ;;  %v1869_v28 = vpop.f32.mrf.mxu3  ;;  %v644_v47 = vrot.slane %v4256_v12, 1 }
 0x161   : > { %v1637_v54 = vadd.f32 %v1636_v34, %v1548_v14  ;;  %v1549_v25 = vpop.f32.mrf.mxu1  ;;  %v1960_v53 = vpop.f32.mrf.mxu0  ;;  %v4067_v14 = vld [vmem:[%s4364_s9 + $0x24] sm:$0xff]  ;;  %v2273_v34 = vpack.c.b16 %v2257_v50, %v2257_v50 }
 0x162   : > { %v1550_v41 = vadd.f32 %v1549_v25, %v4735_v23  ;;  %v2301_v18 = vshrl.u32 %v4067_v14, 16 }
 0x163   : > { %v1870_v43 = vadd.f32 %v1869_v28, %v1637_v54  ;;  %v2303_v28 = vshll.u32 %v4067_v14, 16  ;;  %v2308_v46 = vshll.u32 %v2273_v34, 16  ;;  %v2500_v11 = vrot.slane %v2273_v34, 1 }
 0x165   : > { %v4905_v26 = vadd.f32 %v1958_v56, %v1870_v43  ;;  %v2305_v60 = vrot.slane %v2303_v28, 1  ;;  %v2310_v19 = vrot.slane %v2308_v46, 1  ;;  %v4068_v28 = vld [vmem:[%s4364_s9 + $0x30] sm:$0xff] }
 0x168   : > { %v1638_v32 = vpop.f32.mrf.mxu2  ;;  %v1871_v20 = vpop.f32.mrf.mxu3 }
 0x169   : > { %v1639_v2 = vadd.f32 %v1638_v32, %v1550_v41  ;;  %v1552_v35 = vpop.f32.mrf.mxu1  ;;  %v1963_v51 = vpop.f32.mrf.mxu0 }
 0x16a   : > { %v1553_v54 = vadd.f32 %v1552_v35, %v4626_v36  ;;  %v2306_v36 = vor.u32 %v2305_v60, %v2301_v18 }
 0x16b   : > { %v1872_v56 = vadd.f32 %v1871_v20, %v1639_v2  ;;  %v3736_v20 = vld [vmem:[%s4364_s9 + $0x38] sm:$0x1] }
 0x16c   : > { %2011 = vmatmul.bf16.vlgmr.msra.gmra.mxu1 %v643_v55  ;;  %2939 = vmatmul.bf16.vlgmr.msra.gmra.mxu0 %v2498_v22  ;;  %v2258_v34 = vunpack.c.l.b16 %v3736_v20 }
 0x16d   : > { %2761 = vmatmul.bf16.vlgmr.msra.gmra.mxu2 %v4066_v30  ;;  %2850 = vmatmul.bf16.vlgmr.msra.gmra.mxu3 %v2299_v3  ;;  %v4913_v23 = vadd.f32 %v1960_v53, %v1872_v56  ;;  %v645_v30 = vrot.slane %v4542_v29, 1  ;;  %v2499_v53 = vrot.slane %v4067_v14, 1  ;;  %v2311_v29 = vsel %vm431_vm0, %v2306_v36, %v2310_v19 }
 0x16f   : > { %v646_v50 = vsel %vm640_vm1, %v644_v47, %v645_v30  ;;  %v2501_v56 = vsel %vm640_vm1, %v2499_v53, %v2500_v11  ;;  %v4257_v53 = vld [vmem:[%s4364_s9 + $0x18] sm:$0xff] }
 0x170   : > { %v1641_v25 = vpop.f32.mrf.mxu2  ;;  %v1874_v5 = vpop.f32.mrf.mxu3  ;;  %v647_v11 = vrot.slane %v4257_v53, 1 }
 0x171   : > { %v1642_v39 = vadd.f32 %v1641_v25, %v1553_v54  ;;  %v1554_v31 = vpop.f32.mrf.mxu1  ;;  %v1965_v43 = vpop.f32.mrf.mxu0  ;;  %v2274_v54 = vpack.c.b16 %v2258_v34, %v2258_v34  ;;  %v2315_v25 = vshll.u32 %v4068_v28, 16 }
 0x172   : > { %v1555_v32 = vadd.f32 %v1554_v31, %v4645_v62 }
 0x173   : > { %v1875_v59 = vadd.f32 %v1874_v5, %v1642_v39  ;;  %v2317_v12 = vrot.slane %v2315_v25, 1  ;;  %v2320_v47 = vshll.u32 %v2274_v54, 16  ;;  %v2503_v36 = vrot.slane %v2274_v54, 1 }
 0x175   : > { %v4918_v41 = vadd.f32 %v1963_v51, %v1875_v59  ;;  %v2313_v59 = vshrl.u32 %v4068_v28, 16 }
 0x178   : > { %v1643_v2 = vpop.f32.mrf.mxu2  ;;  %v1876_v35 = vpop.f32.mrf.mxu3 }
 0x179   : > { %v1644_v55 = vadd.f32 %v1643_v2, %v1555_v32  ;;  %v1557_v22 = vpop.f32.mrf.mxu1  ;;  %v1968_v3 = vpop.f32.mrf.mxu0  ;;  %v2322_v32 = vrot.slane %v2320_v47, 1  ;;  %v3739_v2 = vld [vmem:[%s4364_s9 + $0x44] sm:$0x1] }
 0x17a   : > { %v1558_v5 = vadd.f32 %v1557_v22, %v4660_v15  ;;  %v2318_v15 = vor.u32 %v2317_v12, %v2313_v59  ;;  %v2259_v54 = vunpack.c.l.b16 %v3739_v2  ;;  %v3742_v2 = vld [vmem:[%s4364_s9 + $0x50] sm:$0x1] }
 0x17b   : > { %v1877_v51 = vadd.f32 %v1876_v35, %v1644_v55 }
 0x17c   : > { %2016 = vmatmul.bf16.gmra.mxu1 %v646_v50  ;;  %2944 = vmatmul.bf16.gmra.mxu0 %v2501_v56  ;;  %v2275_v25 = vpack.c.b16 %v2259_v54, %v2259_v54  ;;  %v4070_v54 = vld [vmem:[%s4364_s9 + $0x48] sm:$0xff] }
 0x17d   : > { %2766 = vmatmul.bf16.gmra.mxu2 %v4067_v14  ;;  %2855 = vmatmul.bf16.gmra.mxu3 %v2311_v29  ;;  %v4926_v62 = vadd.f32 %v1965_v43, %v1877_v51  ;;  %v648_v14 = vrot.slane %v4566_v1, 1  ;;  %v2502_v43 = vrot.slane %v4068_v28, 1  ;;  %v2323_v1 = vsel %vm431_vm0, %v2318_v15, %v2322_v32  ;;  %v4069_v51 = vld [vmem:[%s4364_s9 + $0x3c] sm:$0xff] }
 0x17e   : > { %v2325_v47 = vshrl.u32 %v4069_v51, 16  ;;  %v2332_v53 = vshll.u32 %v2275_v25, 16 }
 0x17f   : > { %v649_v29 = vsel %vm640_vm1, %v647_v11, %v648_v14  ;;  %v2504_v34 = vsel %vm640_vm1, %v2502_v43, %v2503_v36  ;;  %v4258_v14 = vld [vmem:[%s4364_s9 + $0x24] sm:$0xff]  ;;  %v2506_v36 = vrot.slane %v2275_v25, 1 }
 0x180   : > { %v1646_v39 = vpop.f32.mrf.mxu2  ;;  %v1879_v31 = vpop.f32.mrf.mxu3  ;;  %v650_v43 = vrot.slane %v4258_v14, 1  ;;  %v2334_v32 = vrot.slane %v2332_v53, 1 }
 0x181   : > { %v1647_v18 = vadd.f32 %v1646_v39, %v1558_v5  ;;  %v1559_v60 = vpop.f32.mrf.mxu1  ;;  %v1970_v46 = vpop.f32.mrf.mxu0  ;;  %v2327_v5 = vshll.u32 %v4069_v51, 16 }
 0x182   : > { %v1560_v20 = vadd.f32 %v1559_v60, %v4673_v42 }
 0x183   : > { %v1880_v30 = vadd.f32 %v1879_v31, %v1647_v18 }
 0x185   : > { %v4931_v19 = vadd.f32 %v1968_v3, %v1880_v30  ;;  %v2329_v30 = vrot.slane %v2327_v5, 1  ;;  %v2339_v5 = vshll.u32 %v4070_v54, 16 }
 0x187   : > { %v2341_v53 = vrot.slane %v2339_v5, 1 }
 0x188   : > { %v1648_v35 = vpop.f32.mrf.mxu2  ;;  %v1881_v55 = vpop.f32.mrf.mxu3 }
 0x189   : > { %v1649_v22 = vadd.f32 %v1648_v35, %v1560_v20  ;;  %v1562_v50 = vpop.f32.mrf.mxu1  ;;  %v1973_v56 = vpop.f32.mrf.mxu0 }
 0x18a   : > { %v1563_v39 = vadd.f32 %v1562_v50, %v4694_v4  ;;  %v2330_v4 = vor.u32 %v2329_v30, %v2325_v47  ;;  %v2337_v30 = vshrl.u32 %v4070_v54, 16 }
 0x18b   : > { %v1882_v3 = vadd.f32 %v1881_v55, %v1649_v22 }
 0x18c   : > { %2021 = vmatmul.bf16.gmra.mxu1 %v649_v29  ;;  %2949 = vmatmul.bf16.gmra.mxu0 %v2504_v34 }
 0x18d   : > { %2771 = vmatmul.bf16.gmra.mxu2 %v4068_v28  ;;  %2860 = vmatmul.bf16.gmra.mxu3 %v2323_v1  ;;  %v4939_v42 = vadd.f32 %v1970_v46, %v1882_v3  ;;  %v651_v28 = vrot.slane %v4578_v48, 1  ;;  %v2505_v46 = vrot.slane %v4069_v51, 1  ;;  %v2335_v48 = vsel %vm431_vm0, %v2330_v4, %v2334_v32 }
 0x18e   : > { %v2260_v3 = vunpack.c.l.b16 %v3742_v2 }
 0x18f   : > { %v652_v34 = vsel %vm640_vm1, %v650_v43, %v651_v28  ;;  %v2507_v1 = vsel %vm640_vm1, %v2505_v46, %v2506_v36  ;;  %v4259_v43 = vld [vmem:[%s4364_s9 + $0x30] sm:$0xff] }
 0x190   : > { %v1651_v31 = vpop.f32.mrf.mxu2  ;;  %v1884_v18 = vpop.f32.mrf.mxu3  ;;  %v2276_v25 = vpack.c.b16 %v2260_v3, %v2260_v3  ;;  %v653_v28 = vrot.slane %v4259_v43, 1  ;;  %v4260_v43 = vld [vmem:[%s4364_s9 + $0x3c] sm:$0xff] }
 0x191   : > { %v1652_v60 = vadd.f32 %v1651_v31, %v1563_v39  ;;  %v1564_v59 = vpop.f32.mrf.mxu1  ;;  %v1975_v12 = vpop.f32.mrf.mxu0 }
 0x192   : > { %v1565_v20 = vadd.f32 %v1564_v59, %v4713_v38  ;;  %v2509_v46 = vrot.slane %v2276_v25, 1 }
 0x193   : > { %v1885_v11 = vadd.f32 %v1884_v18, %v1652_v60 }
 0x195   : > { %v4944_v15 = vadd.f32 %v1973_v56, %v1885_v11  ;;  %v2344_v11 = vshll.u32 %v2276_v25, 16 }
 0x197   : > { %v2346_v4 = vrot.slane %v2344_v11, 1 }
 0x198   : > { %v1653_v35 = vpop.f32.mrf.mxu2  ;;  %v1886_v55 = vpop.f32.mrf.mxu3 }
 0x199   : > { %v1654_v22 = vadd.f32 %v1653_v35, %v1565_v20  ;;  %v1567_v50 = vpop.f32.mrf.mxu1  ;;  %v1978_v29 = vpop.f32.mrf.mxu0  ;;  %v3745_v20 = vld [vmem:[%s4364_s9 + $0x5c] sm:$0x1] }
 0x19a   : > { %v1568_v39 = vadd.f32 %v1567_v50, %v4728_v7  ;;  %v2342_v7 = vor.u32 %v2341_v53, %v2337_v30  ;;  %v2261_v3 = vunpack.c.l.b16 %v3745_v20 }
 0x19b   : > { %v1887_v56 = vadd.f32 %v1886_v55, %v1654_v22 }
 0x19c   : > { %2026 = vmatmul.bf16.gmra.mxu1 %v652_v34  ;;  %2954 = vmatmul.bf16.gmra.mxu0 %v2507_v1 }
 0x19d   : > { %2776 = vmatmul.bf16.gmra.mxu2 %v4069_v51  ;;  %2865 = vmatmul.bf16.gmra.mxu3 %v2335_v48  ;;  %v4952_v38 = vadd.f32 %v1975_v12, %v1887_v56  ;;  %v654_v51 = vrot.slane %v4602_v0, 1  ;;  %v2508_v12 = vrot.slane %v4070_v54, 1  ;;  %v2347_v0 = vsel %vm431_vm0, %v2342_v7, %v2346_v4  ;;  %v4071_v48 = vld [vmem:[%s4364_s9 + $0x54] sm:$0xff]  ;;  %v3748_v4 = vld [vmem:[%s4364_s9 + $0x68] sm:$0x1] }
 0x19e   : > { %v2277_v56 = vpack.c.b16 %v2261_v3, %v2261_v3  ;;  %v2351_v25 = vshll.u32 %v4071_v48, 16  ;;  %v2349_v30 = vshrl.u32 %v4071_v48, 16 }
 0x19f   : > { %v655_v34 = vsel %vm640_vm1, %v653_v28, %v654_v51  ;;  %v2510_v1 = vsel %vm640_vm1, %v2508_v12, %v2509_v46  ;;  %v656_v28 = vrot.slane %v4260_v43, 1 }
 0x1a0   : > { %v1656_v31 = vpop.f32.mrf.mxu2  ;;  %v1889_v18 = vpop.f32.mrf.mxu3  ;;  %v2353_v53 = vrot.slane %v2351_v25, 1  ;;  %v2356_v11 = vshll.u32 %v2277_v56, 16  ;;  %v2512_v51 = vrot.slane %v2277_v56, 1 }
 0x1a1   : > { %v1657_v60 = vadd.f32 %v1656_v31, %v1568_v39  ;;  %v1569_v59 = vpop.f32.mrf.mxu1  ;;  %v1980_v47 = vpop.f32.mrf.mxu0 }
 0x1a2   : > { %v1570_v32 = vadd.f32 %v1569_v59, %v4741_v49  ;;  %v2358_v46 = vrot.slane %v2356_v11, 1 }
 0x1a3   : > { %v1890_v14 = vadd.f32 %v1889_v18, %v1657_v60 }
 0x1a5   : > { %v4957_v36 = vadd.f32 %v1978_v29, %v1890_v14 }
 0x1a8   : > { %v1658_v2 = vpop.f32.mrf.mxu2  ;;  %v1891_v35 = vpop.f32.mrf.mxu3 }
 0x1a9   : > { %v1659_v55 = vadd.f32 %v1658_v2, %v1570_v32  ;;  %v1572_v22 = vpop.f32.mrf.mxu1  ;;  %v1983_v50 = vpop.f32.mrf.mxu0 }
 0x1aa   : > { %v1573_v5 = vadd.f32 %v1572_v22, %v4628_v37  ;;  %v2354_v37 = vor.u32 %v2353_v53, %v2349_v30 }
 0x1ab   : > { %v1892_v29 = vadd.f32 %v1891_v35, %v1659_v55 }
 0x1ac   : > { %2031 = vmatmul.bf16.gmra.mxu1 %v655_v34  ;;  %2959 = vmatmul.bf16.gmra.mxu0 %v2510_v1  ;;  %v4072_v1 = vld [vmem:[%s4364_s9 + $0x60] sm:$0xff] }
 0x1ad   : > { %2781 = vmatmul.bf16.gmra.mxu2 %v4070_v54  ;;  %2870 = vmatmul.bf16.gmra.mxu3 %v2347_v0  ;;  %v4965_v49 = vadd.f32 %v1980_v47, %v1892_v29  ;;  %v657_v54 = vrot.slane %v4618_v10, 1  ;;  %v2511_v47 = vrot.slane %v4071_v48, 1  ;;  %v2359_v10 = vsel %vm431_vm0, %v2354_v37, %v2358_v46  ;;  %v3751_v46 = vld [vmem:[%s4364_s9 + $0x74] sm:$0x1] }
 0x1ae   : > { %v2262_v0 = vunpack.c.l.b16 %v3748_v4  ;;  %v2363_v29 = vshll.u32 %v4072_v1, 16 }
 0x1af   : > { %v658_v22 = vsel %vm640_vm1, %v656_v28, %v657_v54  ;;  %v2513_v34 = vsel %vm640_vm1, %v2511_v47, %v2512_v51  ;;  %v5196_v51 = vld [vmem:[#allocation2_spill] sm:$0xff] }
 0x1b0   : > { %v1661_v39 = vpop.f32.mrf.mxu2  ;;  %v1894_v31 = vpop.f32.mrf.mxu3  ;;  %v2278_v3 = vpack.c.b16 %v2262_v0, %v2262_v0  ;;  %v2365_v30 = vrot.slane %v2363_v29, 1  ;;  %v5197_v29 = vld [vmem:[#allocation4_spill] sm:$0xff] }
 0x1b1   : > { %v1662_v18 = vadd.f32 %v1661_v39, %v1573_v5  ;;  %v1574_v60 = vpop.f32.mrf.mxu1  ;;  %v1985_v59 = vpop.f32.mrf.mxu0 }
 0x1b2   : > { %v1575_v7 = vadd.f32 %v1574_v60, %v4647_v63  ;;  %v2361_v60 = vshrl.u32 %v4072_v1, 16  ;;  %v2368_v53 = vshll.u32 %v2278_v3, 16  ;;  %v2515_v28 = vrot.slane %v2278_v3, 1 }
 0x1b3   : > { %v1895_v14 = vadd.f32 %v1894_v31, %v1662_v18 }
 0x1b4   : > { %v2370_v47 = vrot.slane %v2368_v53, 1 }
 0x1b5   : > { %v4970_v12 = vadd.f32 %v1983_v50, %v1895_v14  ;;  %v4261_v14 = vld [vmem:[%s4364_s9 + $0x48] sm:$0xff] }
 0x1b6   : > { %v659_v43 = vrot.slane %v4261_v14, 1 }
 0x1b8   : > { %v1663_v32 = vpop.f32.mrf.mxu2  ;;  %v1896_v20 = vpop.f32.mrf.mxu3 }
 0x1b9   : > { %v1664_v2 = vadd.f32 %v1663_v32, %v1575_v7  ;;  %v1577_v35 = vpop.f32.mrf.mxu1  ;;  %v1988_v55 = vpop.f32.mrf.mxu0 }
 0x1ba   : > { %v1578_v56 = vadd.f32 %v1577_v35, %v4662_v16  ;;  %v2366_v16 = vor.u32 %v2365_v30, %v2361_v60 }
 0x1bb   : > { %v1897_v50 = vadd.f32 %v1896_v20, %v1664_v2 }
 0x1bc   : > { %2036 = vmatmul.bf16.gmra.mxu1 %v658_v22  ;;  %2964 = vmatmul.bf16.gmra.mxu0 %v2513_v34  ;;  %v4073_v34 = vld [vmem:[%s4364_s9 + $0x6c] sm:$0xff] }
 0x1bd   : > { %2786 = vmatmul.bf16.gmra.mxu2 %v4071_v48  ;;  %2875 = vmatmul.bf16.gmra.mxu3 %v2359_v10  ;;  %v4978_v63 = vadd.f32 %v1985_v59, %v1897_v50  ;;  %v660_v48 = vrot.slane %v4658_v13, 1  ;;  %v2514_v59 = vrot.slane %v4072_v1, 1  ;;  %v2371_v13 = vsel %vm431_vm0, %v2366_v16, %v2370_v47 }
 0x1be   : > { %v2263_v10 = vunpack.c.l.b16 %v3751_v46  ;;  %v2375_v3 = vshll.u32 %v4073_v34, 16  ;;  %v2373_v30 = vshrl.u32 %v4073_v34, 16 }
 0x1bf   : > { %v661_v35 = vsel %vm640_vm1, %v659_v43, %v660_v48  ;;  %v2516_v22 = vsel %vm640_vm1, %v2514_v59, %v2515_v28  ;;  %v4262_v43 = vld [vmem:[%s4364_s9 + $0x54] sm:$0xff] }
 0x1c0   : > { %v1666_v25 = vpop.f32.mrf.mxu2  ;;  %v1899_v5 = vpop.f32.mrf.mxu3  ;;  %v2279_v50 = vpack.c.b16 %v2263_v10, %v2263_v10  ;;  %v2377_v53 = vrot.slane %v2375_v3, 1  ;;  %v662_v48 = vrot.slane %v4262_v43, 1  ;;  %v4074_v3 = vld [vmem:[%s4364_s9 + $0x78] sm:$0xff] }
 0x1c1   : > { %v1667_v39 = vadd.f32 %v1666_v25, %v1578_v56  ;;  %v1579_v31 = vpop.f32.mrf.mxu1  ;;  %v1990_v18 = vpop.f32.mrf.mxu0  ;;  %v2385_v43 = vshrl.u32 %v4074_v3, 16 }
 0x1c2   : > { %v1580_v37 = vadd.f32 %v1579_v31, %v5196_v51  ;;  %v2518_v28 = vrot.slane %v2279_v50, 1  ;;  %v2378_v47 = vor.u32 %v2377_v53, %v2373_v30 }
 0x1c3   : > { %v1900_v11 = vadd.f32 %v1899_v5, %v1667_v39 }
 0x1c5   : > { %v4983_v54 = vadd.f32 %v1988_v55, %v1900_v11  ;;  %v2380_v11 = vshll.u32 %v2279_v50, 16 }
 0x1c7   : > { %v2382_v51 = vrot.slane %v2380_v11, 1 }
 0x1c8   : > { %v1668_v7 = vpop.f32.mrf.mxu2  ;;  %v1901_v4 = vpop.f32.mrf.mxu3 }
 0x1c9   : > { %v1669_v32 = vadd.f32 %v1668_v7, %v1580_v37  ;;  %v1582_v20 = vpop.f32.mrf.mxu1  ;;  %v1993_v2 = vpop.f32.mrf.mxu0  ;;  %v5199_v37 = vld [vmem:[#allocation5_spill] sm:$0xff]  ;;  %v3754_v7 = vld [vmem:[%s4364_s9 + $0x80] sm:$0x1] }
 0x1ca   : > { %v1583_v56 = vadd.f32 %v1582_v20, %v5197_v29  ;;  %v2264_v50 = vunpack.c.l.b16 %v3754_v7 }
 0x1cb   : > { %v1902_v55 = vadd.f32 %v1901_v4, %v1669_v32 }
 0x1cc   : > { %2041 = vmatmul.bf16.gmra.mxu1 %v661_v35  ;;  %2969 = vmatmul.bf16.gmra.mxu0 %v2516_v22 }
 0x1cd   : > { %2791 = vmatmul.bf16.gmra.mxu2 %v4072_v1  ;;  %2880 = vmatmul.bf16.gmra.mxu3 %v2371_v13  ;;  %v4991_v0 = vadd.f32 %v1990_v18, %v1902_v55  ;;  %v5198_v1 = vld [vmem:[#allocation3_spill] sm:$0xff]  ;;  %v2517_v18 = vrot.slane %v4073_v34, 1  ;;  %v2383_v55 = vsel %vm431_vm0, %v2378_v47, %v2382_v51 }
 0x1ce   : > { %v663_v59 = vrot.slane %v5198_v1, 1 }
 0x1cf   : > { %v2519_v10 = vsel %vm640_vm1, %v2517_v18, %v2518_v28  ;;  %v4263_v18 = vld [vmem:[%s4364_s9 + $0x60] sm:$0xff] }
 0x1d0   : > { %v1671_v25 = vpop.f32.mrf.mxu2  ;;  %v1904_v5 = vpop.f32.mrf.mxu3  ;;  %v664_v13 = vsel %vm640_vm1, %v662_v48, %v663_v59  ;;  %v665_v28 = vrot.slane %v4263_v18, 1 }
 0x1d1   : > { %v1672_v39 = vadd.f32 %v1671_v25, %v1583_v56  ;;  %v1584_v31 = vpop.f32.mrf.mxu1  ;;  %v1995_v60 = vpop.f32.mrf.mxu0  ;;  %v2280_v56 = vpack.c.b16 %v2264_v50, %v2264_v50  ;;  %v2387_v25 = vshll.u32 %v4074_v3, 16 }
 0x1d2   : > { %v1585_v46 = vadd.f32 %v1584_v31, %v5199_v37 }
 0x1d3   : > { %v1905_v14 = vadd.f32 %v1904_v5, %v1672_v39  ;;  %v5200_v5 = vld [vmem:[#allocation7_spill] sm:$0xff]  ;;  %v2389_v48 = vrot.slane %v2387_v25, 1  ;;  %v2392_v1 = vshll.u32 %v2280_v56, 16  ;;  %v2521_v51 = vrot.slane %v2280_v56, 1 }
 0x1d5   : > { %v4996_v16 = vadd.f32 %v1993_v2, %v1905_v14  ;;  %v2394_v7 = vrot.slane %v2392_v1, 1 }
 0x1d8   : > { %v1673_v4 = vpop.f32.mrf.mxu2  ;;  %v1906_v32 = vpop.f32.mrf.mxu3 }
 0x1d9   : > { %v1674_v20 = vadd.f32 %v1673_v4, %v1585_v46  ;;  %v1587_v35 = vpop.f32.mrf.mxu1  ;;  %v1998_v22 = vpop.f32.mrf.mxu0  ;;  %v2390_v46 = vor.u32 %v2389_v48, %v2385_v43  ;;  %v5202_v4 = vld [vmem:[#allocation8_spill] sm:$0xff] }
 0x1da   : > { %v1588_v39 = vadd.f32 %v1587_v35, %v5200_v5 }
 0x1db   : > { %v1907_v2 = vadd.f32 %v1906_v32, %v1674_v20  ;;  %v3757_v20 = vld [vmem:[%s4364_s9 + $0x8c] sm:$0x1]  ;;  %v2395_v5 = vsel %vm431_vm0, %v2390_v46, %v2394_v7  ;;  %v5203_v46 = vld [vmem:[#allocation9_spill] sm:$0xff] }
 0x1dc   : > { %2046 = vmatmul.bf16.gmra.mxu1 %v664_v13  ;;  %2974 = vmatmul.bf16.gmra.mxu0 %v2519_v10  ;;  %v2265_v56 = vunpack.c.l.b16 %v3757_v20 }
 0x1dd   : > { %2796 = vmatmul.bf16.gmra.mxu2 %v4073_v34  ;;  %2885 = vmatmul.bf16.gmra.mxu3 %v2383_v55  ;;  %v5004_v29 = vadd.f32 %v1995_v60, %v1907_v2  ;;  %v5201_v34 = vld [vmem:[#allocation6_spill] sm:$0xff]  ;;  %v2520_v60 = vrot.slane %v4074_v3, 1 }
 0x1de   : > { %v666_v47 = vrot.slane %v5201_v34, 1 }
 0x1df   : > { %v2522_v25 = vsel %vm640_vm1, %v2520_v60, %v2521_v51 }
 0x1e0   : > { %v1676_v31 = vpop.f32.mrf.mxu2  ;;  %v1909_v30 = vpop.f32.mrf.mxu3  ;;  %v667_v2 = vsel %vm640_vm1, %v665_v28, %v666_v47  ;;  %v4264_v47 = vld [vmem:[%s4364_s9 + $0x6c] sm:$0xff] }
 0x1e1   : > { %v1677_v53 = vadd.f32 %v1676_v31, %v1588_v39  ;;  %v1589_v11 = vpop.f32.mrf.mxu1  ;;  %v2000_v14 = vpop.f32.mrf.mxu0  ;;  %v4075_v39 = vld [vmem:[%s4364_s9 + $0x84] sm:$0xff]  ;;  %v668_v60 = vrot.slane %v4264_v47, 1 }
 0x1e2   : > { %v1590_v32 = vadd.f32 %v1589_v11, %v5202_v4  ;;  %v2397_v18 = vshrl.u32 %v4075_v39, 16  ;;  %v2523_v7 = vrot.slane %v4075_v39, 1 }
 0x1e3   : > { %v1910_v59 = vadd.f32 %v1909_v30, %v1677_v53  ;;  %v2281_v30 = vpack.c.b16 %v2265_v56, %v2265_v56  ;;  %v2399_v53 = vshll.u32 %v4075_v39, 16 }
 0x1e5   : > { %v5009_v37 = vadd.f32 %v1998_v22, %v1910_v59  ;;  %v2401_v28 = vrot.slane %v2399_v53, 1  ;;  %v2404_v34 = vshll.u32 %v2281_v30, 16 }
 0x1e7   : > { %v2402_v4 = vor.u32 %v2401_v28, %v2397_v18 }
 0x1e8   : > { %v1678_v35 = vpop.f32.mrf.mxu2  ;;  %v1911_v13 = vpop.f32.mrf.mxu3 }
 0x1e9   : > { %v1679_v10 = vadd.f32 %v1678_v35, %v1590_v32  ;;  %v2012_v55 = vpop.f32.mrf.mxu1  ;;  %v2940_v50 = vpop.f32.mrf.mxu0  ;;  %v2406_v32 = vrot.slane %v2404_v34, 1  ;;  %v3760_v35 = vld [vmem:[%s4364_s9 + $0x98] sm:$0x1] }
 0x1ea   : > { %v2013_v20 = vadd.f32 %v2012_v55, %v4769_v52  ;;  %v2266_v53 = vunpack.c.l.b16 %v3760_v35  ;;  %v4265_v35 = vld [vmem:[%s4364_s9 + $0x78] sm:$0xff] }
 0x1eb   : > { %v1912_v22 = vadd.f32 %v1911_v13, %v1679_v10  ;;  %v2407_v55 = vsel %vm431_vm0, %v2402_v4, %v2406_v32 }
 0x1ec   : > { %2051 = vmatmul.bf16.gmra.mxu1 %v667_v2  ;;  %2979 = vmatmul.bf16.gmra.mxu0 %v2522_v25  ;;  %v2282_v34 = vpack.c.b16 %v2266_v53, %v2266_v53 }
 0x1ed   : > { %2801 = vmatmul.bf16.gmra.mxu2 %v4074_v3  ;;  %2890 = vmatmul.bf16.gmra.mxu3 %v2395_v5  ;;  %v5017_v31 = vadd.f32 %v2000_v14, %v1912_v22  ;;  %v669_v3 = vrot.slane %v5203_v46, 1  ;;  %v2524_v14 = vrot.slane %v2281_v30, 1  ;;  %v4076_v30 = vld [vmem:[%s4364_s9 + $0x90] sm:$0xff] }
 0x1ee   : > { %v2411_v47 = vshll.u32 %v4076_v30, 16  ;;  %v2416_v32 = vshll.u32 %v2282_v34, 16 }
 0x1ef   : > { %v670_v22 = vsel %vm640_vm1, %v668_v60, %v669_v3  ;;  %v2525_v52 = vsel %vm640_vm1, %v2523_v7, %v2524_v14 }
 0x1f0   : > { %v2762_v11 = vpop.f32.mrf.mxu2  ;;  %v2851_v43 = vpop.f32.mrf.mxu3  ;;  %v2413_v4 = vrot.slane %v2411_v47, 1  ;;  %v2418_v53 = vrot.slane %v2416_v32, 1 }
 0x1f1   : > { %v2852_v48 = vadd.f32 %v2851_v43, %v2762_v11  ;;  %v2014_v1 = vpop.f32.mrf.mxu1  ;;  %v2942_v59 = vpop.f32.mrf.mxu0  ;;  %v5205_v11 = vld [vmem:[#allocation11_spill] sm:$0xff] }
 0x1f2   : > { %v2015_v43 = vadd.f32 %v2014_v1, %v5205_v11 }
 0x1f3   : > { %v2941_v51 = vadd.f32 %v2940_v50, %v2852_v48  ;;  %v5031_v50 = vld [vmem:[%s5174_s2] ss:$0 sm:$0xff] }
 0x1f5   : > { %v3020_v2 = vadd.f32 %v2941_v51, %v2013_v20 }
 0x1f7   : > { %v3056_v18 = vadd.f32 %v5031_v50, %v3020_v2  ;;  %v5206_v2 = vld [vmem:[#allocation10_spill] sm:$0xff] }
 0x1f8   : > { %v2764_v13 = vpop.f32.mrf.mxu2  ;;  %v2853_v10 = vpop.f32.mrf.mxu3 }
 0x1f9   : > { %v2854_v25 = vadd.f32 %v2853_v10, %v2764_v13  ;;  %v2017_v5 = vpop.f32.mrf.mxu1  ;;  %v2945_v56 = vpop.f32.mrf.mxu0  ;;  %v3088_v3 = vmax.f32 %v3056_v18, 0.0  ;;  %v671_v13 = vrot.slane %v4265_v35, 1 }
 0x1fa   : > { %v2018_v11 = vadd.f32 %v2017_v5, %v4787_v33 }
 0x1fb   : > { %v2943_v48 = vadd.f32 %v2942_v59, %v2854_v25  ;;  %v672_v25 = vrot.slane %v5206_v2, 1 }
 0x1fc   : > { %2056 = vmatmul.bf16.gmra.mxu1 %v670_v22  ;;  %2984 = vmatmul.bf16.gmra.mxu0 %v2525_v52  ;;  %v2526_v22 = vrot.slane %v4076_v30, 1  ;;  %v2527_v52 = vrot.slane %v2282_v34, 1 }
 0x1fd   : > { %v3021_v28 = vadd.f32 %v2943_v48, %v2015_v43  ;;  %2806 = vmatmul.bf16.gmra.mxu2 %v4075_v39  ;;  %2895 = vmatmul.bf16.gmra.mxu3 %v2407_v55  ;;  %v2409_v39 = vshrl.u32 %v4076_v30, 16  ;;  %v3763_v43 = vld [vmem:[%s4364_s9 + $0xa4] sm:$0x1] }
 0x1ff   : > { %v3057_v60 = vadd.f32 %v5031_v50, %v3021_v28  ;;  %v2414_v55 = vor.u32 %v2413_v4, %v2409_v39 }
 0x200   : > { %v2767_v51 = vpop.f32.mrf.mxu2  ;;  %v2856_v46 = vpop.f32.mrf.mxu3 }
 0x201   : > { %v3089_v1 = vmax.f32 %v3057_v60, 0.0  ;;  %v2857_v7 = vadd.f32 %v2856_v46, %v2767_v51  ;;  %v2019_v14 = vpop.f32.mrf.mxu1  ;;  %v2947_v59 = vpop.f32.mrf.mxu0  ;;  %v673_v46 = vsel %vm640_vm1, %v671_v13, %v672_v25 }
 0x202   : > { %v2020_v34 = vadd.f32 %v2019_v14, %v4805_v6 }
 0x203   : > { %v4109_v20 = vpack.c.bf16 %v3089_v1, %v3088_v3  ;;  %v2946_v10 = vadd.f32 %v2945_v56, %v2857_v7  ;;  %v2528_v56 = vsel %vm640_vm1, %v2526_v22, %v2527_v52  ;;  %v2419_v3 = vsel %vm431_vm0, %v2414_v55, %v2418_v53  ;;  %v4077_v1 = vld [vmem:[%s4364_s9 + $0x9c] sm:$0xff] }
 0x204   : > { %v2267_v7 = vunpack.c.l.b16 %v3763_v43  ;;  %v2423_v32 = vshll.u32 %v4077_v1, 16  ;;  %v675_v43 = vrot.slane %v4797_v57, 1 }
 0x205   : > { %4110 = vst [vmem:[%s5045_s16] sm:$0xff] %v4109_v20   ;;  %v3022_v28 = vadd.f32 %v2946_v10, %v2018_v11 }
 0x206   : > { %v2283_v4 = vpack.c.b16 %v2267_v7, %v2267_v7  ;;  %v2425_v22 = vrot.slane %v2423_v32, 1 }
 0x207   : > { %v3058_v33 = vadd.f32 %v5031_v50, %v3022_v28 }
 0x208   : > { %v2769_v48 = vpop.f32.mrf.mxu2  ;;  %v2858_v18 = vpop.f32.mrf.mxu3  ;;  %v2428_v52 = vshll.u32 %v2283_v4, 16 }
 0x209   : > { %v2859_v47 = vadd.f32 %v2858_v18, %v2769_v48  ;;  %v2022_v60 = vpop.f32.mrf.mxu1  ;;  %v2950_v51 = vpop.f32.mrf.mxu0  ;;  %v3090_v10 = vmax.f32 %v3058_v33, 0.0  ;;  %v2529_v48 = vrot.slane %v4077_v1, 1  ;;  %v2530_v18 = vrot.slane %v2283_v4, 1 }
 0x20b   : > { %v2948_v39 = vadd.f32 %v2947_v59, %v2859_v47  ;;  %v2421_v59 = vshrl.u32 %v4077_v1, 16  ;;  %v2430_v47 = vrot.slane %v2428_v52, 1 }
 0x20c   : > { %2061 = vmatmul.bf16.gmra.mxu1 %v673_v46  ;;  %2989 = vmatmul.bf16.gmra.mxu0 %v2528_v56  ;;  %v2023_v46 = vadd.f32 %v2022_v60, %v4817_v24  ;;  %v3766_v56 = vld [vmem:[%s4364_s9 + $0xb0] sm:$0x1] }
 0x20d   : > { %v3023_v5 = vadd.f32 %v2948_v39, %v2020_v34  ;;  %2811 = vmatmul.bf16.gmra.mxu2 %v4076_v30  ;;  %2900 = vmatmul.bf16.gmra.mxu3 %v2419_v3  ;;  %v4266_v30 = vld [vmem:[%s4364_s9 + $0x84] sm:$0xff]  ;;  %v2426_v28 = vor.u32 %v2425_v22, %v2421_v59 }
 0x20e   : > { %v674_v53 = vrot.slane %v4266_v30, 1 }
 0x20f   : > { %v3059_v20 = vadd.f32 %v5031_v50, %v3023_v5  ;;  %v2431_v57 = vsel %vm431_vm0, %v2426_v28, %v2430_v47  ;;  %v5207_v28 = vld [vmem:[#allocation12_spill] sm:$0xff] }
 0x210   : > { %v2772_v35 = vpop.f32.mrf.mxu2  ;;  %v2861_v13 = vpop.f32.mrf.mxu3  ;;  %v676_v32 = vsel %vm640_vm1, %v674_v53, %v675_v43  ;;  %v678_v47 = vrot.slane %v5207_v28, 1 }
 0x211   : > { %v3091_v2 = vmax.f32 %v3059_v20, 0.0  ;;  %v2862_v25 = vadd.f32 %v2861_v13, %v2772_v35  ;;  %v2024_v6 = vpop.f32.mrf.mxu1  ;;  %v2952_v14 = vpop.f32.mrf.mxu0  ;;  %v4078_v20 = vld [vmem:[%s4364_s9 + $0xa8] sm:$0xff]  ;;  %v2268_v35 = vunpack.c.l.b16 %v3766_v56 }
 0x212   : > { %v2025_v4 = vadd.f32 %v2024_v6, %v4829_v9 }
 0x213   : > { %v4114_v55 = vpack.c.bf16 %v3091_v2, %v3090_v10  ;;  %v2951_v11 = vadd.f32 %v2950_v51, %v2862_v25  ;;  %v2531_v51 = vsel %vm640_vm1, %v2529_v48, %v2530_v18  ;;  %v2284_v10 = vpack.c.b16 %v2268_v35, %v2268_v35 }
 0x214   : > { %v2435_v2 = vshll.u32 %v4078_v20, 16 }
 0x215   : > { %4186 = vst [vmem:[%s5045_s16 + $0x8] sm:$0xff] %v4114_v55   ;;  %v3024_v34 = vadd.f32 %v2951_v11, %v2023_v46  ;;  %v2440_v11 = vshll.u32 %v2284_v10, 16  ;;  %v2532_v46 = vrot.slane %v4078_v20, 1  ;;  %v2533_v56 = vrot.slane %v2284_v10, 1 }
 0x216   : > { %v2437_v53 = vrot.slane %v2435_v2, 1  ;;  %v4079_v2 = vld [vmem:[%s4364_s9 + $0xb4] sm:$0xff] }
 0x217   : > { %v3060_v24 = vadd.f32 %v5031_v50, %v3024_v34 }
 0x218   : > { %v2774_v3 = vpop.f32.mrf.mxu2  ;;  %v2863_v7 = vpop.f32.mrf.mxu3 }
 0x219   : > { %v2864_v39 = vadd.f32 %v2863_v7, %v2774_v3  ;;  %v2027_v33 = vpop.f32.mrf.mxu1  ;;  %v2955_v5 = vpop.f32.mrf.mxu0  ;;  %v3092_v52 = vmax.f32 %v3060_v24, 0.0  ;;  %v2442_v7 = vrot.slane %v2440_v11, 1 }
 0x21a   : > { %v2028_v34 = vadd.f32 %v2027_v33, %v4834_v40 }
 0x21b   : > { %v2953_v13 = vadd.f32 %v2952_v14, %v2864_v39  ;;  %v2433_v14 = vshrl.u32 %v4078_v20, 16  ;;  %v3769_v39 = vld [vmem:[%s4364_s9 + $0xbc] sm:$0x1] }
 0x21c   : > { %2066 = vmatmul.bf16.gmra.mxu1 %v676_v32  ;;  %2994 = vmatmul.bf16.gmra.mxu0 %v2531_v51 }
 0x21d   : > { %v3025_v60 = vadd.f32 %v2953_v13, %v2025_v4  ;;  %2816 = vmatmul.bf16.gmra.mxu2 %v4077_v1  ;;  %2905 = vmatmul.bf16.gmra.mxu3 %v2431_v57  ;;  %v4267_v1 = vld [vmem:[%s4364_s9 + $0x90] sm:$0xff]  ;;  %v2438_v3 = vor.u32 %v2437_v53, %v2433_v14 }
 0x21e   : > { %v677_v48 = vrot.slane %v4267_v1, 1 }
 0x21f   : > { %v3061_v25 = vadd.f32 %v5031_v50, %v3025_v60  ;;  %v2443_v60 = vsel %vm431_vm0, %v2438_v3, %v2442_v7 }
 0x220   : > { %v2777_v59 = vpop.f32.mrf.mxu2  ;;  %v2866_v22 = vpop.f32.mrf.mxu3  ;;  %v679_v24 = vsel %vm640_vm1, %v677_v48, %v678_v47 }
 0x221   : > { %v3093_v55 = vmax.f32 %v3061_v25, 0.0  ;;  %v2867_v30 = vadd.f32 %v2866_v22, %v2777_v59  ;;  %v2029_v9 = vpop.f32.mrf.mxu1  ;;  %v2957_v6 = vpop.f32.mrf.mxu0  ;;  %v2269_v25 = vunpack.c.l.b16 %v3769_v39 }
 0x222   : > { %v2030_v10 = vadd.f32 %v2029_v9, %v4850_v58 }
 0x223   : > { %v4119_v43 = vpack.c.bf16 %v3093_v55, %v3092_v52  ;;  %v2956_v18 = vadd.f32 %v2955_v5, %v2867_v30  ;;  %v2534_v5 = vsel %vm640_vm1, %v2532_v46, %v2533_v56  ;;  %v2285_v22 = vpack.c.b16 %v2269_v25, %v2269_v25 }
 0x224   : > { %v2447_v52 = vshll.u32 %v4079_v2, 16  ;;  %v681_v46 = vrot.slane %v4842_v27, 1  ;;  %v2535_v56 = vrot.slane %v4079_v2, 1 }
 0x225   : > { %4187 = vst [vmem:[%s5045_s16 + $0x10] sm:$0xff] %v4119_v43   ;;  %v3026_v57 = vadd.f32 %v2956_v18, %v2028_v34  ;;  %v2452_v48 = vshll.u32 %v2285_v22, 16  ;;  %v2536_v3 = vrot.slane %v2285_v22, 1 }
 0x226   : > { %v2449_v1 = vrot.slane %v2447_v52, 1 }
 0x227   : > { %v3062_v40 = vadd.f32 %v5031_v50, %v3026_v57  ;;  %v2454_v34 = vrot.slane %v2452_v48, 1 }
 0x228   : > { %v2779_v32 = vpop.f32.mrf.mxu2  ;;  %v2868_v51 = vpop.f32.mrf.mxu3 }
 0x229   : > { %v2869_v35 = vadd.f32 %v2868_v51, %v2779_v32  ;;  %v2032_v4 = vpop.f32.mrf.mxu1  ;;  %v2960_v13 = vpop.f32.mrf.mxu0  ;;  %v3094_v53 = vmax.f32 %v3062_v40, 0.0  ;;  %v3772_v32 = vld [vmem:[%s4364_s9 + $0xc8] sm:$0x1] }
 0x22a   : > { %v2033_v39 = vadd.f32 %v2032_v4, %v4861_v61 }
 0x22b   : > { %v2958_v59 = vadd.f32 %v2957_v6, %v2869_v35  ;;  %v2445_v6 = vshrl.u32 %v4079_v2, 16 }
 0x22c   : > { %2071 = vmatmul.bf16.gmra.mxu1 %v679_v24  ;;  %2999 = vmatmul.bf16.gmra.mxu0 %v2534_v5 }
 0x22d   : > { %v3027_v33 = vadd.f32 %v2958_v59, %v2030_v10  ;;  %2821 = vmatmul.bf16.gmra.mxu2 %v4078_v20  ;;  %2910 = vmatmul.bf16.gmra.mxu3 %v2443_v60  ;;  %v4268_v20 = vld [vmem:[%s4364_s9 + $0x9c] sm:$0xff]  ;;  %v2450_v7 = vor.u32 %v2449_v1, %v2445_v6  ;;  %v2270_v59 = vunpack.c.l.b16 %v3772_v32 }
 0x22e   : > { %v680_v28 = vrot.slane %v4268_v20, 1  ;;  %v4080_v10 = vld [vmem:[%s4364_s9 + $0xc0] sm:$0xff] }
 0x22f   : > { %v3063_v55 = vadd.f32 %v5031_v50, %v3027_v33  ;;  %v2455_v27 = vsel %vm431_vm0, %v2450_v7, %v2454_v34  ;;  %v2286_v22 = vpack.c.b16 %v2270_v59, %v2270_v59  ;;  %v2459_v52 = vshll.u32 %v4080_v10, 16  ;;  %v4081_v59 = vld [vmem:[%s4364_s9 + $0xcc] sm:$0xff] }
 0x230   : > { %v2782_v30 = vpop.f32.mrf.mxu2  ;;  %v2871_v14 = vpop.f32.mrf.mxu3  ;;  %v682_v25 = vsel %vm640_vm1, %v680_v28, %v681_v46  ;;  %v5208_v28 = vld [vmem:[#allocation13_spill] sm:$0xff]  ;;  %v2538_v46 = vrot.slane %v4080_v10, 1 }
 0x231   : > { %v3095_v11 = vmax.f32 %v3063_v55, 0.0  ;;  %v2872_v43 = vadd.f32 %v2871_v14, %v2782_v30  ;;  %v2034_v58 = vpop.f32.mrf.mxu1  ;;  %v2962_v9 = vpop.f32.mrf.mxu0  ;;  %v2461_v6 = vrot.slane %v2459_v52, 1  ;;  %v2464_v1 = vshll.u32 %v2286_v22, 16 }
 0x232   : > { %v2035_v40 = vadd.f32 %v2034_v58, %v4872_v21 }
 0x233   : > { %v4124_v18 = vpack.c.bf16 %v3095_v11, %v3094_v53  ;;  %v2961_v47 = vadd.f32 %v2960_v13, %v2872_v43  ;;  %v2537_v13 = vsel %vm640_vm1, %v2535_v56, %v2536_v3  ;;  %v2539_v56 = vrot.slane %v2286_v22, 1 }
 0x234   : > { %v2466_v7 = vrot.slane %v2464_v1, 1  ;;  %v2471_v22 = vshll.u32 %v4081_v59, 16  ;;  %v4270_v1 = vld [vmem:[%s4364_s9 + $0xb4] sm:$0xff] }
 0x235   : > { %4188 = vst [vmem:[%s5045_s16 + $0x18] sm:$0xff] %v4124_v18   ;;  %v3028_v35 = vadd.f32 %v2961_v47, %v2033_v39  ;;  %v684_v47 = vrot.slane %v5208_v28, 1  ;;  %v3775_v39 = vld [vmem:[%s4364_s9 + $0xd4] sm:$0x1] }
 0x237   : > { %v3064_v61 = vadd.f32 %v5031_v50, %v3028_v35 }
 0x238   : > { %v2784_v51 = vpop.f32.mrf.mxu2  ;;  %v2873_v57 = vpop.f32.mrf.mxu3 }
 0x239   : > { %v2874_v24 = vadd.f32 %v2873_v57, %v2784_v51  ;;  %v2037_v5 = vpop.f32.mrf.mxu1  ;;  %v2965_v60 = vpop.f32.mrf.mxu0  ;;  %v3096_v53 = vmax.f32 %v3064_v61, 0.0 }
 0x23a   : > { %v2038_v34 = vadd.f32 %v2037_v5, %v4877_v44 }
 0x23b   : > { %v2963_v33 = vadd.f32 %v2962_v9, %v2874_v24  ;;  %v2457_v9 = vshrl.u32 %v4080_v10, 16 }
 0x23c   : > { %2076 = vmatmul.bf16.gmra.mxu1 %v682_v25  ;;  %3004 = vmatmul.bf16.gmra.mxu0 %v2537_v13 }
 0x23d   : > { %v3029_v4 = vadd.f32 %v2963_v33, %v2035_v40  ;;  %2826 = vmatmul.bf16.gmra.mxu2 %v4079_v2  ;;  %2915 = vmatmul.bf16.gmra.mxu3 %v2455_v27  ;;  %v4269_v2 = vld [vmem:[%s4364_s9 + $0xa8] sm:$0xff]  ;;  %v2462_v3 = vor.u32 %v2461_v6, %v2457_v9  ;;  %v2271_v40 = vunpack.c.l.b16 %v3775_v39 }
 0x23e   : > { %v683_v18 = vrot.slane %v4269_v2, 1  ;;  %v5209_v2 = vld [vmem:[#allocation14_spill] sm:$0xff] }
 0x23f   : > { %v3065_v55 = vadd.f32 %v5031_v50, %v3029_v4  ;;  %v2467_v27 = vsel %vm431_vm0, %v2462_v3, %v2466_v7  ;;  %v2287_v4 = vpack.c.b16 %v2271_v40, %v2271_v40 }
 0x240   : > { %v2787_v30 = vpop.f32.mrf.mxu2  ;;  %v2876_v14 = vpop.f32.mrf.mxu3  ;;  %v685_v13 = vsel %vm640_vm1, %v683_v18, %v684_v47  ;;  %v687_v18 = vrot.slane %v5209_v2, 1 }
 0x241   : > { %v3097_v11 = vmax.f32 %v3065_v55, 0.0  ;;  %v2877_v43 = vadd.f32 %v2876_v14, %v2787_v30  ;;  %v2039_v21 = vpop.f32.mrf.mxu1  ;;  %v2967_v58 = vpop.f32.mrf.mxu0  ;;  %v2476_v9 = vshll.u32 %v2287_v4, 16  ;;  %v2542_v28 = vrot.slane %v2287_v4, 1 }
 0x242   : > { %v2040_v33 = vadd.f32 %v2039_v21, %v4888_v17  ;;  %v2469_v21 = vshrl.u32 %v4081_v59, 16 }
 0x243   : > { %v4129_v48 = vpack.c.bf16 %v3097_v11, %v3096_v53  ;;  %v2966_v20 = vadd.f32 %v2965_v60, %v2877_v43  ;;  %v2540_v60 = vsel %vm640_vm1, %v2538_v46, %v2539_v56  ;;  %v2478_v46 = vrot.slane %v2476_v9, 1 }
 0x245   : > { %4189 = vst [vmem:[%s5045_s16 + $0x20] sm:$0xff] %v4129_v48   ;;  %v3030_v57 = vadd.f32 %v2966_v20, %v2038_v34  ;;  %v2541_v20 = vrot.slane %v4081_v59, 1 }
 0x247   : > { %v3066_v44 = vadd.f32 %v5031_v50, %v3030_v57 }
 0x248   : > { %v2789_v32 = vpop.f32.mrf.mxu2  ;;  %v2878_v51 = vpop.f32.mrf.mxu3 }
 0x249   : > { %v2879_v35 = vadd.f32 %v2878_v51, %v2789_v32  ;;  %v2042_v24 = vpop.f32.mrf.mxu1  ;;  %v2970_v25 = vpop.f32.mrf.mxu0  ;;  %v3098_v14 = vmax.f32 %v3066_v44, 0.0 }
 0x24a   : > { %v2043_v56 = vadd.f32 %v2042_v24, %v4892_v45 }
 0x24b   : > { %v2968_v61 = vadd.f32 %v2967_v58, %v2879_v35  ;;  %v2473_v58 = vrot.slane %v2471_v22, 1  ;;  %v2543_v35 = vsel %vm640_vm1, %v2541_v20, %v2542_v28 }
 0x24c   : > { %2081 = vmatmul.bf16.gmra.mxu1 %v685_v13  ;;  %3009 = vmatmul.bf16.gmra.mxu0 %v2540_v60 }
 0x24d   : > { %v3031_v5 = vadd.f32 %v2968_v61, %v2040_v33  ;;  %2831 = vmatmul.bf16.gmra.mxu2 %v4080_v10  ;;  %2920 = vmatmul.bf16.gmra.mxu3 %v2467_v27  ;;  %v686_v10 = vrot.slane %v4270_v1, 1  ;;  %v2474_v47 = vor.u32 %v2473_v58, %v2469_v21 }
 0x24f   : > { %v3067_v52 = vadd.f32 %v5031_v50, %v3031_v5  ;;  %v688_v57 = vsel %vm640_vm1, %v686_v10, %v687_v18 }
 0x250   : > { %v2792_v55 = vpop.f32.mrf.mxu2  ;;  %v2881_v30 = vpop.f32.mrf.mxu3 }
 0x251   : > { %v3099_v53 = vmax.f32 %v3067_v52, 0.0  ;;  %v2882_v11 = vadd.f32 %v2881_v30, %v2792_v55  ;;  %v2044_v17 = vpop.f32.mrf.mxu1  ;;  %v2972_v43 = vpop.f32.mrf.mxu0 }
 0x252   : > { %v2045_v13 = vadd.f32 %v2044_v17, %v4900_v8 }
 0x253   : > { %v4134_v6 = vpack.c.bf16 %v3099_v53, %v3098_v14  ;;  %v2971_v48 = vadd.f32 %v2970_v25, %v2882_v11  ;;  %v2479_v25 = vsel %vm431_vm0, %v2474_v47, %v2478_v46 }
 0x255   : > { %4190 = vst [vmem:[%s5045_s16 + $0x28] sm:$0xff] %v4134_v6   ;;  %v3032_v34 = vadd.f32 %v2971_v48, %v2043_v56 }
 0x257   : > { %v3068_v45 = vadd.f32 %v5031_v50, %v3032_v34 }
 0x258   : > { %v2794_v3 = vpop.f32.mrf.mxu2  ;;  %v2883_v7 = vpop.f32.mrf.mxu3 }
 0x259   : > { %v2884_v39 = vadd.f32 %v2883_v7, %v2794_v3  ;;  %v2047_v32 = vpop.f32.mrf.mxu1  ;;  %v2975_v51 = vpop.f32.mrf.mxu0  ;;  %v3100_v61 = vmax.f32 %v3068_v45, 0.0 }
 0x25a   : > { %v2048_v55 = vadd.f32 %v2047_v32, %v4905_v26 }
 0x25b   : > { %v2973_v60 = vadd.f32 %v2972_v43, %v2884_v39 }
 0x25c   : > { %2086 = vmatmul.bf16.gmra.mxu1 %v688_v57  ;;  %3014 = vmatmul.bf16.gmra.mxu0 %v2543_v35 }
 0x25d   : > { %v3033_v24 = vadd.f32 %v2973_v60, %v2045_v13  ;;  %2836 = vmatmul.bf16.gmra.mxu2 %v4081_v59  ;;  %2925 = vmatmul.bf16.gmra.mxu3 %v2479_v25 }
 0x25f   : > { %v3069_v27 = vadd.f32 %v5031_v50, %v3033_v24 }
 0x260   : > { %v2797_v40 = vpop.f32.mrf.mxu2  ;;  %v2886_v33 = vpop.f32.mrf.mxu3 }
 0x261   : > { %v3101_v44 = vmax.f32 %v3069_v27, 0.0  ;;  %v2887_v5 = vadd.f32 %v2886_v33, %v2797_v40  ;;  %v2049_v4 = vpop.f32.mrf.mxu1  ;;  %v2977_v22 = vpop.f32.mrf.mxu0 }
 0x262   : > { %v2050_v43 = vadd.f32 %v2049_v4, %v4913_v23 }
 0x263   : > { %v4139_v52 = vpack.c.bf16 %v3101_v44, %v3100_v61  ;;  %v2976_v8 = vadd.f32 %v2975_v51, %v2887_v5 }
 0x265   : > { %4191 = vst [vmem:[%s5045_s16 + $0x30] sm:$0xff] %v4139_v52   ;;  %v3034_v53 = vadd.f32 %v2976_v8, %v2048_v55 }
 0x267   : > { %v3070_v58 = vadd.f32 %v5031_v50, %v3034_v53 }
 0x268   : > { %v2799_v30 = vpop.f32.mrf.mxu2  ;;  %v2888_v14 = vpop.f32.mrf.mxu3 }
 0x269   : > { %v2889_v11 = vadd.f32 %v2888_v14, %v2799_v30  ;;  %v2052_v59 = vpop.f32.mrf.mxu1  ;;  %v2980_v17 = vpop.f32.mrf.mxu0  ;;  %v3102_v48 = vmax.f32 %v3070_v58, 0.0 }
 0x26a   : > { %v2053_v46 = vadd.f32 %v2052_v59, %v4918_v41 }
 0x26b   : > { %v2978_v21 = vadd.f32 %v2977_v22, %v2889_v11 }
 0x26d   : > { %v3035_v9 = vadd.f32 %v2978_v21, %v2050_v43 }
 0x26f   : > { %v3071_v6 = vadd.f32 %v5031_v50, %v3035_v9 }
 0x270   : > { %v2802_v1 = vpop.f32.mrf.mxu2  ;;  %v2891_v10 = vpop.f32.mrf.mxu3 }
 0x271   : > { %v3103_v2 = vmax.f32 %v3071_v6, 0.0  ;;  %v2892_v26 = vadd.f32 %v2891_v10, %v2802_v1  ;;  %v2054_v18 = vpop.f32.mrf.mxu1  ;;  %v2982_v20 = vpop.f32.mrf.mxu0 }
 0x272   : > { %v2055_v32 = vadd.f32 %v2054_v18, %v4926_v62 }
 0x273   : > { %v4144_v28 = vpack.c.bf16 %v3103_v2, %v3102_v48  ;;  %v2981_v47 = vadd.f32 %v2980_v17, %v2892_v26 }
 0x275   : > { %4192 = vst [vmem:[%s5045_s16 + $0x38] sm:$0xff] %v4144_v28   ;;  %v3036_v3 = vadd.f32 %v2981_v47, %v2053_v46 }
 0x277   : > { %v3072_v57 = vadd.f32 %v5031_v50, %v3036_v3 }
 0x278   : > { %v2804_v56 = vpop.f32.mrf.mxu2  ;;  %v2893_v23 = vpop.f32.mrf.mxu3 }
 0x279   : > { %v2894_v7 = vadd.f32 %v2893_v23, %v2804_v56  ;;  %v2057_v34 = vpop.f32.mrf.mxu1  ;;  %v2985_v39 = vpop.f32.mrf.mxu0  ;;  %v3104_v45 = vmax.f32 %v3072_v57, 0.0 }
 0x27a   : > { %v2058_v44 = vadd.f32 %v2057_v34, %v4931_v19 }
 0x27b   : > { %v2983_v51 = vadd.f32 %v2982_v20, %v2894_v7 }
 0x27d   : > { %v3037_v35 = vadd.f32 %v2983_v51, %v2055_v32 }
 0x27f   : > { %v3073_v25 = vadd.f32 %v5031_v50, %v3037_v35 }
 0x280   : > { %v2807_v13 = vpop.f32.mrf.mxu2  ;;  %v2896_v60 = vpop.f32.mrf.mxu3 }
 0x281   : > { %v3105_v24 = vmax.f32 %v3073_v25, 0.0  ;;  %v2897_v41 = vadd.f32 %v2896_v60, %v2807_v13  ;;  %v2059_v27 = vpop.f32.mrf.mxu1  ;;  %v2987_v40 = vpop.f32.mrf.mxu0 }
 0x282   : > { %v2060_v55 = vadd.f32 %v2059_v27, %v4939_v42 }
 0x283   : > { %v4149_v33 = vpack.c.bf16 %v3105_v24, %v3104_v45  ;;  %v2986_v61 = vadd.f32 %v2985_v39, %v2897_v41 }
 0x285   : > { %4193 = vst [vmem:[%s5045_s16 + $0x40] sm:$0xff] %v4149_v33   ;;  %v3038_v4 = vadd.f32 %v2986_v61, %v2058_v44 }
 0x287   : > { %v3074_v14 = vadd.f32 %v5031_v50, %v3038_v4 }
 0x288   : > { %v2809_v5 = vpop.f32.mrf.mxu2  ;;  %v2898_v62 = vpop.f32.mrf.mxu3 }
 0x289   : > { %v2899_v22 = vadd.f32 %v2898_v62, %v2809_v5  ;;  %v2062_v52 = vpop.f32.mrf.mxu1  ;;  %v2990_v8 = vpop.f32.mrf.mxu0  ;;  %v3106_v43 = vmax.f32 %v3074_v14, 0.0 }
 0x28a   : > { %v2063_v10 = vadd.f32 %v2062_v52, %v4944_v15 }
 0x28b   : > { %v2988_v30 = vadd.f32 %v2987_v40, %v2899_v22 }
 0x28d   : > { %v3039_v53 = vadd.f32 %v2988_v30, %v2060_v55 }
 0x28f   : > { %v3075_v11 = vadd.f32 %v5031_v50, %v3039_v53 }
 0x290   : > { %v2812_v59 = vpop.f32.mrf.mxu2  ;;  %v2901_v17 = vpop.f32.mrf.mxu3 }
 0x291   : > { %v3107_v21 = vmax.f32 %v3075_v11, 0.0  ;;  %v2902_v19 = vadd.f32 %v2901_v17, %v2812_v59  ;;  %v2064_v58 = vpop.f32.mrf.mxu1  ;;  %v2992_v9 = vpop.f32.mrf.mxu0 }
 0x292   : > { %v2065_v28 = vadd.f32 %v2064_v58, %v4952_v38 }
 0x293   : > { %v4154_v6 = vpack.c.bf16 %v3107_v21, %v3106_v43  ;;  %v2991_v1 = vadd.f32 %v2990_v8, %v2902_v19 }
 0x295   : > { %4194 = vst [vmem:[%s5045_s16 + $0x48] sm:$0xff] %v4154_v6   ;;  %v3040_v2 = vadd.f32 %v2991_v1, %v2063_v10 }
 0x297   : > { %v3076_v46 = vadd.f32 %v5031_v50, %v3040_v2 }
 0x298   : > { %v2814_v48 = vpop.f32.mrf.mxu2  ;;  %v2903_v42 = vpop.f32.mrf.mxu3 }
 0x299   : > { %v2904_v26 = vadd.f32 %v2903_v42, %v2814_v48  ;;  %v2067_v18 = vpop.f32.mrf.mxu1  ;;  %v2995_v20 = vpop.f32.mrf.mxu0  ;;  %v3108_v34 = vmax.f32 %v3076_v46, 0.0 }
 0x29a   : > { %v2068_v25 = vadd.f32 %v2067_v18, %v4957_v36 }
 0x29b   : > { %v2993_v47 = vadd.f32 %v2992_v9, %v2904_v26 }
 0x29d   : > { %v3041_v56 = vadd.f32 %v2993_v47, %v2065_v28 }
 0x29f   : > { %v3077_v23 = vadd.f32 %v5031_v50, %v3041_v56 }
 0x2a0   : > { %v2817_v3 = vpop.f32.mrf.mxu2  ;;  %v2906_v7 = vpop.f32.mrf.mxu3 }
 0x2a1   : > { %v3109_v39 = vmax.f32 %v3077_v23, 0.0  ;;  %v2907_v15 = vadd.f32 %v2906_v7, %v2817_v3  ;;  %v2069_v32 = vpop.f32.mrf.mxu1  ;;  %v2997_v51 = vpop.f32.mrf.mxu0 }
 0x2a2   : > { %v2070_v27 = vadd.f32 %v2069_v32, %v4965_v49 }
 0x2a3   : > { %v4159_v57 = vpack.c.bf16 %v3109_v39, %v3108_v34  ;;  %v2996_v35 = vadd.f32 %v2995_v20, %v2907_v15 }
 0x2a5   : > { %4195 = vst [vmem:[%s5045_s16 + $0x50] sm:$0xff] %v4159_v57   ;;  %v3042_v60 = vadd.f32 %v2996_v35, %v2068_v25 }
 0x2a7   : > { %v3078_v33 = vadd.f32 %v5031_v50, %v3042_v60 }
 0x2a8   : > { %v2819_v13 = vpop.f32.mrf.mxu2  ;;  %v2908_v38 = vpop.f32.mrf.mxu3 }
 0x2a9   : > { %v2909_v45 = vadd.f32 %v2908_v38, %v2819_v13  ;;  %v2072_v24 = vpop.f32.mrf.mxu1  ;;  %v3000_v41 = vpop.f32.mrf.mxu0  ;;  %v3110_v4 = vmax.f32 %v3078_v33, 0.0 }
 0x2aa   : > { %v2073_v14 = vadd.f32 %v2072_v24, %v4970_v12 }
 0x2ab   : > { %v2998_v40 = vadd.f32 %v2997_v51, %v2909_v45 }
 0x2ad   : > { %v3043_v61 = vadd.f32 %v2998_v40, %v2070_v27 }
 0x2af   : > { %v3079_v44 = vadd.f32 %v5031_v50, %v3043_v61 }
 0x2b0   : > { %v2822_v5 = vpop.f32.mrf.mxu2  ;;  %v2911_v62 = vpop.f32.mrf.mxu3 }
 0x2b1   : > { %v3111_v22 = vmax.f32 %v3079_v44, 0.0  ;;  %v2912_v36 = vadd.f32 %v2911_v62, %v2822_v5  ;;  %v2074_v52 = vpop.f32.mrf.mxu1  ;;  %v3002_v8 = vpop.f32.mrf.mxu0 }
 0x2b2   : > { %v2075_v21 = vadd.f32 %v2074_v52, %v4978_v63 }
 0x2b3   : > { %v4164_v55 = vpack.c.bf16 %v3111_v22, %v3110_v4  ;;  %v3001_v30 = vadd.f32 %v3000_v41, %v2912_v36 }
 0x2b5   : > { %4196 = vst [vmem:[%s5045_s16 + $0x58] sm:$0xff] %v4164_v55   ;;  %v3044_v11 = vadd.f32 %v3001_v30, %v2073_v14 }
 0x2b7   : > { %v3080_v58 = vadd.f32 %v5031_v50, %v3044_v11 }
 0x2b8   : > { %v2824_v53 = vpop.f32.mrf.mxu2  ;;  %v2913_v49 = vpop.f32.mrf.mxu3 }
 0x2b9   : > { %v2914_v59 = vadd.f32 %v2913_v49, %v2824_v53  ;;  %v2077_v17 = vpop.f32.mrf.mxu1  ;;  %v3005_v43 = vpop.f32.mrf.mxu0  ;;  %v3112_v48 = vmax.f32 %v3080_v58, 0.0 }
 0x2ba   : > { %v2078_v28 = vadd.f32 %v2077_v17, %v4983_v54 }
 0x2bb   : > { %v3003_v19 = vadd.f32 %v3002_v8, %v2914_v59 }
 0x2bd   : > { %v3045_v9 = vadd.f32 %v3003_v19, %v2075_v21 }
 0x2bf   : > { %v3081_v6 = vadd.f32 %v5031_v50, %v3045_v9 }
 0x2c0   : > { %v2827_v1 = vpop.f32.mrf.mxu2  ;;  %v2916_v10 = vpop.f32.mrf.mxu3 }
 0x2c1   : > { %v3113_v42 = vmax.f32 %v3081_v6, 0.0  ;;  %v2917_v12 = vadd.f32 %v2916_v10, %v2827_v1  ;;  %v2079_v2 = vpop.f32.mrf.mxu1  ;;  %v3007_v26 = vpop.f32.mrf.mxu0 }
 0x2c2   : > { %v2080_v3 = vadd.f32 %v2079_v2, %v4991_v0 }
 0x2c3   : > { %v4169_v18 = vpack.c.bf16 %v3113_v42, %v3112_v48  ;;  %v3006_v20 = vadd.f32 %v3005_v43, %v2917_v12 }
 0x2c5   : > { %4197 = vst [vmem:[%s5045_s16 + $0x60] sm:$0xff] %v4169_v18   ;;  %v3046_v46 = vadd.f32 %v3006_v20, %v2078_v28 }
 0x2c7   : > { %v3082_v39 = vadd.f32 %v5031_v50, %v3046_v46 }
 0x2c8   : > { %v2829_v47 = vpop.f32.mrf.mxu2  ;;  %v2918_v63 = vpop.f32.mrf.mxu3 }
 0x2c9   : > { %v2919_v56 = vadd.f32 %v2918_v63, %v2829_v47  ;;  %v2082_v23 = vpop.f32.mrf.mxu1  ;;  %v3010_v34 = vpop.f32.mrf.mxu0  ;;  %v3114_v35 = vmax.f32 %v3082_v39, 0.0 }
 0x2ca   : > { %v2083_v24 = vadd.f32 %v2082_v23, %v4996_v16 }
 0x2cb   : > { %v3008_v7 = vadd.f32 %v3007_v26, %v2919_v56 }
 0x2cd   : > { %v3047_v15 = vadd.f32 %v3008_v7, %v2080_v3 }
 0x2cf   : > { %v3083_v32 = vadd.f32 %v5031_v50, %v3047_v15 }
 0x2d0   : > { %v2832_v51 = vpop.f32.mrf.mxu2  ;;  %v2921_v57 = vpop.f32.mrf.mxu3 }
 0x2d1   : > { %v3115_v25 = vmax.f32 %v3083_v32, 0.0  ;;  %v2922_v54 = vadd.f32 %v2921_v57, %v2832_v51  ;;  %v2084_v38 = vpop.f32.mrf.mxu1  ;;  %v3012_v45 = vpop.f32.mrf.mxu0 }
 0x2d2   : > { %v2085_v33 = vadd.f32 %v2084_v38, %v5004_v29 }
 0x2d3   : > { %v4174_v13 = vpack.c.bf16 %v3115_v25, %v3114_v35  ;;  %v3011_v60 = vadd.f32 %v3010_v34, %v2922_v54 }
 0x2d5   : > { %4198 = vst [vmem:[%s5045_s16 + $0x68] sm:$0xff] %v4174_v13   ;;  %v3048_v27 = vadd.f32 %v3011_v60, %v2083_v24 }
 0x2d7   : > { %v3084_v44 = vadd.f32 %v5031_v50, %v3048_v27 }
 0x2d8   : > { %v2834_v0 = vpop.f32.mrf.mxu2  ;;  %v2923_v41 = vpop.f32.mrf.mxu3 }
 0x2d9   : > { %v2924_v40 = vadd.f32 %v2923_v41, %v2834_v0  ;;  %v2087_v62 = vpop.f32.mrf.mxu1  ;;  %v3015_v22 = vpop.f32.mrf.mxu0  ;;  %v3116_v8 = vmax.f32 %v3084_v44, 0.0 }
 0x2da   : > { %v2088_v53 = vadd.f32 %v2087_v62, %v5009_v37 }
 0x2db   : > { %v3013_v61 = vadd.f32 %v3012_v45, %v2924_v40 }
 0x2dd   : > { %v3049_v5 = vadd.f32 %v3013_v61, %v2085_v33 }
 0x2df   : > { %v3085_v4 = vadd.f32 %v5031_v50, %v3049_v5 }
 0x2e0   : > { %v2837_v36 = vpop.f32.mrf.mxu2  ;;  %v2926_v52 = vpop.f32.mrf.mxu3 }
 0x2e1   : > { %v3117_v55 = vmax.f32 %v3085_v4, 0.0  ;;  %v2927_v16 = vadd.f32 %v2926_v52, %v2837_v36  ;;  %v2089_v29 = vpop.f32.mrf.mxu1  ;;  %v3017_v43 = vpop.f32.mrf.mxu0 }
 0x2e2   : > { %v2090_v21 = vadd.f32 %v2089_v29, %v5017_v31 }
 0x2e3   : > { %v4179_v30 = vpack.c.bf16 %v3117_v55, %v3116_v8  ;;  %v3016_v14 = vadd.f32 %v3015_v22, %v2927_v16 }
 0x2e5   : > { %4199 = vst [vmem:[%s5045_s16 + $0x70] sm:$0xff] %v4179_v30   ;;  %v3050_v59 = vadd.f32 %v3016_v14, %v2088_v53 }
 0x2e7   : > { %v3086_v58 = vadd.f32 %v5031_v50, %v3050_v59 }
 0x2e8   : > { %v2839_v49 = vpop.f32.mrf.mxu2  ;;  %v2928_v11 = vpop.f32.mrf.mxu3 }
 0x2e9   : > { %v2929_v17 = vadd.f32 %v2928_v11, %v2839_v49  ;;  %v3118_v1 = vmax.f32 %v3086_v58, 0.0 }
 0x2eb   : > { %v3018_v19 = vadd.f32 %v3017_v43, %v2929_v17 }
 0x2ed   : > { %v3051_v9 = vadd.f32 %v3018_v19, %v2090_v21 }
 0x2ef   : > { %v3087_v6 = vadd.f32 %v5031_v50, %v3051_v9 }
 0x2f1   : > { %v3119_v10 = vmax.f32 %v3087_v6, 0.0 }
 0x2f3   : > { %v4184_v48 = vpack.c.bf16 %v3119_v10, %v3118_v1 }
 0x2f5   : > { %4200 = vst [vmem:[%s5045_s16 + $0x78] sm:$0xff] %v4184_v48  }
 0x2f6 PF: > { %s13_s14 = sadd.s32 1, %s4293_s14   ;;  %s5210_s12 = smov %s4289_s13 }
 0x2f7   : > { %p10_p6 = scmp.ge.s32.totalorder %s13_s14, 4   ;;  %s5211_s13 = smov %s5213_s15 }
 0x2f9   :  { %12 = sbr.rel (!%p10_p6) target bundleno = 2 (0x2), region = 73 }

</bundles_post_ra>
